<compile_context>
chip_gen: v5e
topology: v5e:2x2
jax: 0.10.0
libtpu: 0.0.40
codegen_flags: <defaults>
</compile_context>

<pallas_src>
import functools

import jax
import jax.numpy as jnp
import numpy as np
from jax import lax
from jax.experimental import pallas as pl
from jax.experimental.pallas import tpu as pltpu


# --------------------------------------------------------------------------------------
# Generation-aware heuristics
# --------------------------------------------------------------------------------------
def _device_kind():
    try:
        return jax.devices()[0].device_kind.lower()
    except Exception:
        return ""


def _default_fuse_kv(kind):
    # The [f|pos] K-stacked k/v projection carries one all-zero (C,C) weight block; it
    # pays off on 256-wide MXUs (v6e/v7x) but would waste 1/4 of the pushes on the
    # 128x128 MXUs of <=v5 parts, where the separate projections are kept instead.
    return not any(t in kind for t in ("v2", "v3", "v4", "v5"))


def _default_num_tensorcores(kind):
    return 2 if "v7" in kind else 1


def _footprint_bytes(bt, N2, N3, N4, C):
    """Rough per-step VMEM footprint: activation/output blocks (double-buffered),
    in-kernel f32 temporaries (q/k/v, softmaxes, att parts), weights/biases/mask."""
    act = (3 * N2 + 2 * (N3 + N4)) * C * 4 * bt        # f32 activation + output blocks
    tmp = 4 * act                                       # in-kernel f32 temporaries
    weights = 16 * C * C * 4 + 16 * C * 4               # weights + mask + biases (f32-equiv)
    return 2 * act + tmp + 2 * weights                  # x2: double buffering


def _pick_block_batch(B, N2, N3, N4, C, *, num_tensorcores=1, target_rows=256,
                      vmem_budget_bytes=24 * 1024 * 1024):
    """Batch elements per grid step.

    Enough rows (Bt*N2) to fill the MXU M dimension, small enough to stay inside a
    conservative VMEM budget (safe for v7x's 64 MiB) including weights and in-kernel
    temporaries.  Only shrinks Bt to keep >= 2 grid steps on multi-TensorCore parts.
    """
    divs = [d for d in range(1, B + 1) if B % d == 0]
    fits = [d for d in divs
            if _footprint_bytes(d, N2, N3, N4, C) <= vmem_budget_bytes] or [1]
    for d in fits:                                      # smallest Bt reaching target rows
        if d * N2 >= target_rows:
            bt = d
            break
    else:
        bt = fits[-1]
    if num_tensorcores >= 2 and B // bt < 2:            # only worth it with 2 TCs (v7x)
        smaller = [d for d in fits if d < bt and B // d >= 2]
        if smaller and smaller[-1] * N2 * 2 >= target_rows:
            bt = smaller[-1]
    return bt


# --------------------------------------------------------------------------------------
# Kernel
# --------------------------------------------------------------------------------------
def _multi_efficient_attention_kernel(*refs, compute_dtype, fuse_kv):
    f32 = jnp.float32
    cd = compute_dtype
    approx = jnp.dtype(cd) != jnp.dtype(jnp.float32)    # EUP reciprocal in the bf16 path

    if fuse_kv:
        (f2_ref, p2_ref, f3_ref, p3_ref, f4_ref, p4_ref,
         wq12_ref, wkv3_ref, bkv3_ref, wkv4_ref, bkv4_ref,
         wr32_ref, wr42_ref, br_ref, mask_ref, out_ref) = refs
    else:
        (f2_ref, p2_ref, f3_ref, p3_ref, f4_ref, p4_ref,
         wq12_ref, wk1_ref, bk1_ref, wv1_ref, bv1_ref,
         wk2_ref, bk2_ref, wv2_ref, bv2_ref,
         wr32_ref, wr42_ref, br_ref, mask_ref, out_ref) = refs

    Bt, N2, C = f2_ref.shape
    _, N3, _ = f3_ref.shape
    _, N4, _ = f4_ref.shape

    mask_cd = mask_ref[...]                              # (C, C) 0/1 block-diag head mask
    mask_f32 = mask_cd.astype(f32)                       # hoisted; one tiny cast per step

    # ---- query projections: one (Bt*N2, C) x (C, 2C) MXU matmul -----------------------
    # bq1/bq2 are dropped: softmax over the sequence axis cancels per-channel constants.
    x2c = (f2_ref[...].astype(f32) + p2_ref[...].astype(f32)).reshape(Bt * N2, C)
    q12 = jnp.dot(x2c.astype(cd), wq12_ref[...], preferred_element_type=f32)  # (Bt*N2, 2C)

    # ---- key/value projections ---------------------------------------------------------
    if fuse_kv:
        # [f | pos] (rows, 2C) @ [[wk, wv], [wk, 0]] -> [k, v]; pos-add folded into MXU.
        def kv_proj(f_ref, p_ref, wkv_ref, bkv_ref, n):
            fc = f_ref[...].reshape(Bt * n, C).astype(cd)
            pc = p_ref[...].reshape(Bt * n, C).astype(cd)
            x = jnp.concatenate([fc, pc], axis=-1)                       # (Bt*n, 2C)
            kv = (jnp.dot(x, wkv_ref[...], preferred_element_type=f32)
                  + bkv_ref[...].astype(f32))                            # (Bt*n, 2C)
            return kv[:, :C], kv[:, C:]

        k3, v3 = kv_proj(f3_ref, p3_ref, wkv3_ref, bkv3_ref, N3)
        k4, v4 = kv_proj(f4_ref, p4_ref, wkv4_ref, bkv4_ref, N4)
    else:
        def proj(xc, w_ref, b_ref):
            return (jnp.dot(xc, w_ref[...], preferred_element_type=f32)
                    + b_ref[...].astype(f32))

        x3c = (f3_ref[...].astype(f32) + p3_ref[...].astype(f32)
               ).reshape(Bt * N3, C).astype(cd)
        f3c = f3_ref[...].reshape(Bt * N3, C).astype(cd)
        x4c = (f4_ref[...].astype(f32) + p4_ref[...].astype(f32)
               ).reshape(Bt * N4, C).astype(cd)
        f4c = f4_ref[...].reshape(Bt * N4, C).astype(cd)
        k3 = proj(x3c, wk1_ref, bk1_ref)
        v3 = proj(f3c, wv1_ref, bv1_ref)
        k4 = proj(x4c, wk2_ref, bk2_ref)
        v4 = proj(f4c, wv2_ref, bv2_ref)

    # ---- query softmax over the sequence axis (per batch & channel column) -------------
    # Head-independent, so it runs once on the full 2C-wide fused q tensor.
    q12_3d = q12.reshape(Bt, N2, 2 * C)
    qe = jnp.exp(q12_3d - jnp.max(q12_3d, axis=1, keepdims=True))
    q12_cd = (qe * pl.reciprocal(jnp.sum(qe, axis=1, keepdims=True),
                                 approx=approx)).astype(cd)              # (Bt, N2, 2C)

    # ---- key softmax per token within each head-channel block (lane-dense) -------------
    # The full-row max shift is >= every block max and cancels exactly in the ratio;
    # the per-block sums come from a single MXU matmul with the block-diagonal mask.
    def key_softmax(k):
        e = jnp.exp(k - jnp.max(k, axis=-1, keepdims=True))
        s = jnp.dot(e.astype(cd), mask_cd, preferred_element_type=f32)
        return (e * pl.reciprocal(s, approx=approx)).astype(cd)

    k3_cd = key_softmax(k3).reshape(Bt, N3, C)
    v3_cd = v3.astype(cd).reshape(Bt, N3, C)
    k4_cd = key_softmax(k4).reshape(Bt, N4, C)
    v4_cd = v4.astype(cd).reshape(Bt, N4, C)

    wr32 = wr32_ref[...]
    wr42 = wr42_ref[...]
    br = br_ref[...].astype(f32)

    # ---- per-batch fused attend + reprojection (no concats; bounded live ranges) -------
    # ctx = K_sm^T @ V masked to its head blocks reproduces the per-head loop exactly;
    # the reprojection uses split weights (att32@wr[:C] + att42@wr[C:]) so the channel
    # concat of the PyTorch module never materializes.
    for b in range(Bt):                                  # static unroll; Bt is small
        ctx3 = lax.dot_general(k3_cd[b], v3_cd[b], (((0,), (0,)), ((), ())),
                               preferred_element_type=f32)               # (C, C)
        ctx3 = (ctx3 * mask_f32).astype(cd)
        att32 = jnp.dot(q12_cd[b, :, :C], ctx3, preferred_element_type=f32)

        ctx4 = lax.dot_general(k4_cd[b], v4_cd[b], (((0,), (0,)), ((), ())),
                               preferred_element_type=f32)               # (C, C)
        ctx4 = (ctx4 * mask_f32).astype(cd)
        att42 = jnp.dot(q12_cd[b, :, C:], ctx4, preferred_element_type=f32)

        out_b = (jnp.dot(att32.astype(cd), wr32, preferred_element_type=f32)
                 + jnp.dot(att42.astype(cd), wr42, preferred_element_type=f32)
                 + br)                                                    # (N2, C)
        # TODO(synk): nn.Dropout(p=0.0) is the identity; a nonzero-p training-mode dropout
        # would use pltpu.prng_seed / pltpu.stateful_bernoulli here.
        out_ref[b] = out_b.astype(out_ref.dtype)


# --------------------------------------------------------------------------------------
# Wrapper
# --------------------------------------------------------------------------------------
def multi_efficient_attention(f2, f3, f4, f2_pos, f3_pos, f4_pos, params, head_count, *,
                              compute_dtype=jnp.bfloat16, block_batch=None,
                              fuse_kv_proj=None, num_tensorcores=None):
    """f2/f3/f4, *_pos: (B, Ni, C) float32. params: weights (in,out), biases (1,out)."""
    B, N2, C = f2.shape
    _, N3, _ = f3.shape
    _, N4, _ = f4.shape
    assert C % head_count == 0

    kind = _device_kind()
    if fuse_kv_proj is None:
        fuse_kv_proj = _default_fuse_kv(kind)
    if num_tensorcores is None:
        num_tensorcores = _default_num_tensorcores(kind)

    Bt = (block_batch if block_batch is not None
          else _pick_block_batch(B, N2, N3, N4, C, num_tensorcores=num_tensorcores))
    assert B % Bt == 0, "block_batch must divide the batch size"

    # Static block-diagonal head mask (pre-cast to the MXU compute dtype; 0/1 are exact).
    hkc = C // head_count
    hid = np.arange(C) // hkc
    head_mask = jnp.asarray((hid[:, None] == hid[None, :]).astype(np.float32)
                            ).astype(compute_dtype)

    wd = compute_dtype
    wq12 = jnp.concatenate([params["wq1"], params["wq2"]], axis=1).astype(wd)  # (C, 2C)
    wr32 = params["wr"][:C].astype(wd)          # reprojection rows for the f3-stream
    wr42 = params["wr"][C:].astype(wd)          # reprojection rows for the f4-stream

    def act_spec(n):
        return pl.BlockSpec((Bt, n, C), lambda b: (b, 0, 0))

    def full_spec(shape):
        return pl.BlockSpec(shape, lambda b: tuple(0 for _ in shape))

    in_specs = [act_spec(N2), act_spec(N2),     # f2, f2_pos
                act_spec(N3), act_spec(N3),     # f3, f3_pos
                act_spec(N4), act_spec(N4),     # f4, f4_pos
                full_spec((C, 2 * C))]          # wq12
    operands = [f2, f2_pos, f3, f3_pos, f4, f4_pos, wq12]

    if fuse_kv_proj:
        zeros = jnp.zeros((C, C), params["wk1"].dtype)
        wkv3 = jnp.concatenate(
            [jnp.concatenate([params["wk1"], params["wv1"]], axis=1),
             jnp.concatenate([params["wk1"], zeros], axis=1)], axis=0).astype(wd)
        bkv3 = jnp.concatenate([params["bk1"], params["bv1"]], axis=1)   # (1, 2C) f32
        wkv4 = jnp.concatenate(
            [jnp.concatenate([params["wk2"], params["wv2"]], axis=1),
             jnp.concatenate([params["wk2"], zeros], axis=1)], axis=0).astype(wd)
        bkv4 = jnp.concatenate([params["bk2"], params["bv2"]], axis=1)   # (1, 2C) f32
        in_specs += [full_spec((2 * C, 2 * C)), full_spec((1, 2 * C)),
                     full_spec((2 * C, 2 * C)), full_spec((1, 2 * C))]
        operands += [wkv3, bkv3, wkv4, bkv4]
    else:
        in_specs += [full_spec((C, C)), full_spec((1, C))] * 4
        operands += [params["wk1"].astype(wd), params["bk1"],
                     params["wv1"].astype(wd), params["bv1"],
                     params["wk2"].astype(wd), params["bk2"],
                     params["wv2"].astype(wd), params["bv2"]]

    in_specs += [full_spec((C, C)), full_spec((C, C)),      # wr32, wr42
                 full_spec((1, C)), full_spec((C, C))]      # br, head mask
    operands += [wr32, wr42, params["br"], head_mask]

    # Set an explicit VMEM limit when the estimated footprint nears the default scoped
    # budget (conservative cap at v7x's 64 MiB physical per-TC VMEM).
    est = _footprint_bytes(Bt, N2, N3, N4, C)
    vmem_limit = None
    if est > 28 * 1024 * 1024:
        vmem_limit = int(min(est + 8 * 1024 * 1024, 64 * 1024 * 1024))

    kernel = functools.partial(_multi_efficient_attention_kernel,
                               compute_dtype=compute_dtype, fuse_kv=bool(fuse_kv_proj))

    return pl.pallas_call(
        kernel,
        out_shape=jax.ShapeDtypeStruct((B, N2, C), jnp.float32),
        grid_spec=pltpu.PrefetchScalarGridSpec(
            num_scalar_prefetch=0,
            grid=(B // Bt,),
            in_specs=in_specs,
            out_specs=pl.BlockSpec((Bt, N2, C), lambda b: (b, 0, 0)),
        ),
        compiler_params=pltpu.CompilerParams(
            dimension_semantics=("parallel",),
            vmem_limit_bytes=vmem_limit),
    )(*operands)


# --------------------------------------------------------------------------------------
# Pure-JAX reference (mirrors the PyTorch forward exactly)
# --------------------------------------------------------------------------------------
def multi_efficient_attention_ref(f2, f3, f4, f2_pos, f3_pos, f4_pos, params, head_count):
    C = f2.shape[-1]
    hk = C // head_count
    q1 = ((f2 + f2_pos) @ params["wq1"] + params["bq1"]).transpose(0, 2, 1)  # (B, C, N2)
    q2 = ((f2 + f2_pos) @ params["wq2"] + params["bq2"]).transpose(0, 2, 1)
    k3 = ((f3 + f3_pos) @ params["wk1"] + params["bk1"]).transpose(0, 2, 1)  # (B, C, N3)
    v3 = (f3 @ params["wv1"] + params["bv1"]).transpose(0, 2, 1)
    k4 = ((f4 + f4_pos) @ params["wk2"] + params["bk2"]).transpose(0, 2, 1)  # (B, C, N4)
    v4 = (f4 @ params["wv2"] + params["bv2"]).transpose(0, 2, 1)
    parts32, parts42 = [], []
    for i in range(head_count):
        sl = slice(i * hk, (i + 1) * hk)
        fq1 = jax.nn.softmax(q1[:, sl, :], axis=2)
        fk3 = jax.nn.softmax(k3[:, sl, :], axis=1)
        fv3 = v3[:, sl, :]
        fq2 = jax.nn.softmax(q2[:, sl, :], axis=2)
        fk4 = jax.nn.softmax(k4[:, sl, :], axis=1)
        fv4 = v4[:, sl, :]
        ctx32 = fk3 @ jnp.swapaxes(fv3, 1, 2)                 # (B, hk, hk)
        parts32.append(jnp.swapaxes(ctx32, 1, 2) @ fq1)       # (B, hk, N2)
        ctx42 = fk4 @ jnp.swapaxes(fv4, 1, 2)
        parts42.append(jnp.swapaxes(ctx42, 1, 2) @ fq2)
    agg32 = jnp.swapaxes(jnp.concatenate(parts32, axis=1), 1, 2)   # (B, N2, C)
    agg42 = jnp.swapaxes(jnp.concatenate(parts42, axis=1), 1, 2)   # (B, N2, C)
    out = jnp.concatenate([agg32, agg42], axis=-1)                 # (B, N2, 2C)
    return out @ params["wr"] + params["br"]                       # (B, N2, C)


def make_params(key, dim):
    ks = jax.random.split(key, 14)
    s_in = 1.0 / np.sqrt(dim)
    s_r = 1.0 / np.sqrt(2 * dim)

    def lin(kw, kb, n_in, n_out, s):
        return (jax.random.normal(kw, (n_in, n_out), jnp.float32) * s,
                jax.random.normal(kb, (1, n_out), jnp.float32) * 0.02)

    wq1, bq1 = lin(ks[0], ks[1], dim, dim, s_in)
    wq2, bq2 = lin(ks[2], ks[3], dim, dim, s_in)
    wk1, bk1 = lin(ks[4], ks[5], dim, dim, s_in)
    wv1, bv1 = lin(ks[6], ks[7], dim, dim, s_in)
    wk2, bk2 = lin(ks[8], ks[9], dim, dim, s_in)
    wv2, bv2 = lin(ks[10], ks[11], dim, dim, s_in)
    wr, br = lin(ks[12], ks[13], 2 * dim, dim, s_r)
    return dict(wq1=wq1, bq1=bq1, wq2=wq2, bq2=bq2, wk1=wk1, bk1=bk1,
                wv1=wv1, bv1=bv1, wk2=wk2, bk2=bk2, wv2=wv2, bv2=bv2,
                wr=wr, br=br)


if __name__ == "__main__":
    B, C, head_count = 4, 128, 4
    N2, N3, N4 = 64, 32, 16          # three pyramid levels (token counts)

    root = jax.random.PRNGKey(0)
    ks = jax.random.split(root, 7)
    f2 = jax.random.normal(ks[0], (B, N2, C), jnp.float32)
    f3 = jax.random.normal(ks[1], (B, N3, C), jnp.float32)
    f4 = jax.random.normal(ks[2], (B, N4, C), jnp.float32)
    f2_pos = jax.random.normal(ks[3], (B, N2, C), jnp.float32) * 0.1
    f3_pos = jax.random.normal(ks[4], (B, N3, C), jnp.float32) * 0.1
    f4_pos = jax.random.normal(ks[5], (B, N4, C), jnp.float32) * 0.1
    params = make_params(ks[6], C)

    with jax.default_matmul_precision("highest"):
        ref = multi_efficient_attention_ref(f2, f3, f4, f2_pos, f3_pos, f4_pos,
                                            params, head_count)
    ref = np.asarray(jax.block_until_ready(ref))

    # Exercise both the fused (v6e/v7x) and separate (<=v5) k/v projection paths so the
    # script validates correctness on any chip generation.
    for fuse in (False, True):
        out_f32 = multi_efficient_attention(f2, f3, f4, f2_pos, f3_pos, f4_pos,
                                            params, head_count,
                                            compute_dtype=jnp.float32,
                                            fuse_kv_proj=fuse)
        out_f32 = np.asarray(jax.block_until_ready(out_f32))
        np.testing.assert_allclose(out_f32, ref, rtol=2e-2, atol=2e-3)

        out_bf16 = multi_efficient_attention(f2, f3, f4, f2_pos, f3_pos, f4_pos,
                                             params, head_count,
                                             compute_dtype=jnp.bfloat16,
                                             fuse_kv_proj=fuse)
        out_bf16 = np.asarray(jax.block_until_ready(out_bf16))
        np.testing.assert_allclose(out_bf16, ref, rtol=6e-2, atol=2e-2)

    # Default (auto-gated) configuration once more, blocked on, as the "real" run.
    out = multi_efficient_attention(f2, f3, f4, f2_pos, f3_pos, f4_pos,
                                    params, head_count)
    jax.block_until_ready(out)
    print("KERNEL_OK")
</pallas_src>

<mosaic_0001>
module attributes {stable_mosaic.version = 11 : i64} {
  func.func @_multi_efficient_attention_kernel(%arg0: i32, %arg1: memref<4x64x128xf32, #tpu.memory_space<vmem>>, %arg2: memref<4x64x128xf32, #tpu.memory_space<vmem>>, %arg3: memref<4x32x128xf32, #tpu.memory_space<vmem>>, %arg4: memref<4x32x128xf32, #tpu.memory_space<vmem>>, %arg5: memref<4x16x128xf32, #tpu.memory_space<vmem>>, %arg6: memref<4x16x128xf32, #tpu.memory_space<vmem>>, %arg7: memref<128x256xf32, #tpu.memory_space<vmem>>, %arg8: memref<128x128xf32, #tpu.memory_space<vmem>>, %arg9: memref<1x128xf32, #tpu.memory_space<vmem>>, %arg10: memref<128x128xf32, #tpu.memory_space<vmem>>, %arg11: memref<1x128xf32, #tpu.memory_space<vmem>>, %arg12: memref<128x128xf32, #tpu.memory_space<vmem>>, %arg13: memref<1x128xf32, #tpu.memory_space<vmem>>, %arg14: memref<128x128xf32, #tpu.memory_space<vmem>>, %arg15: memref<1x128xf32, #tpu.memory_space<vmem>>, %arg16: memref<128x128xf32, #tpu.memory_space<vmem>>, %arg17: memref<128x128xf32, #tpu.memory_space<vmem>>, %arg18: memref<1x128xf32, #tpu.memory_space<vmem>>, %arg19: memref<128x128xf32, #tpu.memory_space<vmem>>, %arg20: memref<4x64x128xf32, #tpu.memory_space<vmem>>) attributes {dimension_semantics = [#tpu.dimension_semantics<parallel>], iteration_bounds = array<i64: 1>, scalar_prefetch = 0 : i64, scratch_operands = 0 : i64, tpu.core_type = #tpu.core_type<tc>, window_params = [{transform_indices = @transform_0, window_bounds = array<i64: 4, 64, 128>}, {transform_indices = @transform_1, window_bounds = array<i64: 4, 64, 128>}, {transform_indices = @transform_2, window_bounds = array<i64: 4, 32, 128>}, {transform_indices = @transform_3, window_bounds = array<i64: 4, 32, 128>}, {transform_indices = @transform_4, window_bounds = array<i64: 4, 16, 128>}, {transform_indices = @transform_5, window_bounds = array<i64: 4, 16, 128>}, {pipeline_mode = #tpu.pipeline_mode<synchronous>, transform_indices = @transform_6, window_bounds = array<i64: 128, 256>}, {pipeline_mode = #tpu.pipeline_mode<synchronous>, transform_indices = @transform_7, window_bounds = array<i64: 128, 128>}, {pipeline_mode = #tpu.pipeline_mode<synchronous>, transform_indices = @transform_8, window_bounds = array<i64: 1, 128>}, {pipeline_mode = #tpu.pipeline_mode<synchronous>, transform_indices = @transform_9, window_bounds = array<i64: 128, 128>}, {pipeline_mode = #tpu.pipeline_mode<synchronous>, transform_indices = @transform_10, window_bounds = array<i64: 1, 128>}, {pipeline_mode = #tpu.pipeline_mode<synchronous>, transform_indices = @transform_11, window_bounds = array<i64: 128, 128>}, {pipeline_mode = #tpu.pipeline_mode<synchronous>, transform_indices = @transform_12, window_bounds = array<i64: 1, 128>}, {pipeline_mode = #tpu.pipeline_mode<synchronous>, transform_indices = @transform_13, window_bounds = array<i64: 128, 128>}, {pipeline_mode = #tpu.pipeline_mode<synchronous>, transform_indices = @transform_14, window_bounds = array<i64: 1, 128>}, {pipeline_mode = #tpu.pipeline_mode<synchronous>, transform_indices = @transform_15, window_bounds = array<i64: 128, 128>}, {pipeline_mode = #tpu.pipeline_mode<synchronous>, transform_indices = @transform_16, window_bounds = array<i64: 128, 128>}, {pipeline_mode = #tpu.pipeline_mode<synchronous>, transform_indices = @transform_17, window_bounds = array<i64: 1, 128>}, {pipeline_mode = #tpu.pipeline_mode<synchronous>, transform_indices = @transform_18, window_bounds = array<i64: 128, 128>}, {transform_indices = @transform_19, window_bounds = array<i64: 4, 64, 128>}]} {
    %c0 = arith.constant 0 : index
    %c0_0 = arith.constant 0 : index
    %0 = vector.load %arg19[%c0, %c0_0] : memref<128x128xf32, #tpu.memory_space<vmem>>, vector<128x128xf32>
    %c0_1 = arith.constant 0 : index
    %c0_2 = arith.constant 0 : index
    %c0_3 = arith.constant 0 : index
    %1 = vector.load %arg1[%c0_1, %c0_2, %c0_3] : memref<4x64x128xf32, #tpu.memory_space<vmem>>, vector<4x64x128xf32>
    %c0_4 = arith.constant 0 : index
    %c0_5 = arith.constant 0 : index
    %c0_6 = arith.constant 0 : index
    %2 = vector.load %arg2[%c0_4, %c0_5, %c0_6] : memref<4x64x128xf32, #tpu.memory_space<vmem>>, vector<4x64x128xf32>
    %3 = arith.addf %1, %2 : vector<4x64x128xf32>
    %4 = vector.shape_cast %3 : vector<4x64x128xf32> to vector<256x128xf32>
    %c0_7 = arith.constant 0 : index
    %c0_8 = arith.constant 0 : index
    %5 = vector.load %arg7[%c0_7, %c0_8] : memref<128x256xf32, #tpu.memory_space<vmem>>, vector<128x256xf32>
    %cst = arith.constant dense<0.000000e+00> : vector<256x256xf32>
    %6 = tpu.matmul %4, %5, %cst {dimension_numbers = #tpu.dot_dimension_numbers<[1], [0], [0], [1], [0, 0, 1, 1], [], []>} : vector<256x128xf32>, vector<128x256xf32>, vector<256x256xf32> -> vector<256x256xf32>
    %c0_9 = arith.constant 0 : index
    %c0_10 = arith.constant 0 : index
    %c0_11 = arith.constant 0 : index
    %7 = vector.load %arg3[%c0_9, %c0_10, %c0_11] : memref<4x32x128xf32, #tpu.memory_space<vmem>>, vector<4x32x128xf32>
    %c0_12 = arith.constant 0 : index
    %c0_13 = arith.constant 0 : index
    %c0_14 = arith.constant 0 : index
    %8 = vector.load %arg4[%c0_12, %c0_13, %c0_14] : memref<4x32x128xf32, #tpu.memory_space<vmem>>, vector<4x32x128xf32>
    %9 = arith.addf %7, %8 : vector<4x32x128xf32>
    %10 = vector.shape_cast %9 : vector<4x32x128xf32> to vector<128x128xf32>
    %c0_15 = arith.constant 0 : index
    %c0_16 = arith.constant 0 : index
    %c0_17 = arith.constant 0 : index
    %11 = vector.load %arg3[%c0_15, %c0_16, %c0_17] : memref<4x32x128xf32, #tpu.memory_space<vmem>>, vector<4x32x128xf32>
    %12 = vector.shape_cast %11 : vector<4x32x128xf32> to vector<128x128xf32>
    %c0_18 = arith.constant 0 : index
    %c0_19 = arith.constant 0 : index
    %c0_20 = arith.constant 0 : index
    %13 = vector.load %arg5[%c0_18, %c0_19, %c0_20] : memref<4x16x128xf32, #tpu.memory_space<vmem>>, vector<4x16x128xf32>
    %c0_21 = arith.constant 0 : index
    %c0_22 = arith.constant 0 : index
    %c0_23 = arith.constant 0 : index
    %14 = vector.load %arg6[%c0_21, %c0_22, %c0_23] : memref<4x16x128xf32, #tpu.memory_space<vmem>>, vector<4x16x128xf32>
    %15 = arith.addf %13, %14 : vector<4x16x128xf32>
    %16 = vector.shape_cast %15 : vector<4x16x128xf32> to vector<64x128xf32>
    %c0_24 = arith.constant 0 : index
    %c0_25 = arith.constant 0 : index
    %c0_26 = arith.constant 0 : index
    %17 = vector.load %arg5[%c0_24, %c0_25, %c0_26] : memref<4x16x128xf32, #tpu.memory_space<vmem>>, vector<4x16x128xf32>
    %18 = vector.shape_cast %17 : vector<4x16x128xf32> to vector<64x128xf32>
    %c0_27 = arith.constant 0 : index
    %c0_28 = arith.constant 0 : index
    %19 = vector.load %arg8[%c0_27, %c0_28] : memref<128x128xf32, #tpu.memory_space<vmem>>, vector<128x128xf32>
    %cst_29 = arith.constant dense<0.000000e+00> : vector<128x128xf32>
    %20 = tpu.matmul %10, %19, %cst_29 {dimension_numbers = #tpu.dot_dimension_numbers<[1], [0], [0], [1], [0, 0, 1, 1], [], []>} : vector<128x128xf32>, vector<128x128xf32>, vector<128x128xf32> -> vector<128x128xf32>
    %c0_30 = arith.constant 0 : index
    %c0_31 = arith.constant 0 : index
    %21 = vector.load %arg9[%c0_30, %c0_31] : memref<1x128xf32, #tpu.memory_space<vmem>>, vector<1x128xf32>
    %22 = vector.broadcast %21 : vector<1x128xf32> to vector<128x128xf32>
    %23 = arith.addf %20, %22 : vector<128x128xf32>
    %c0_32 = arith.constant 0 : index
    %c0_33 = arith.constant 0 : index
    %24 = vector.load %arg10[%c0_32, %c0_33] : memref<128x128xf32, #tpu.memory_space<vmem>>, vector<128x128xf32>
    %cst_34 = arith.constant dense<0.000000e+00> : vector<128x128xf32>
    %25 = tpu.matmul %12, %24, %cst_34 {dimension_numbers = #tpu.dot_dimension_numbers<[1], [0], [0], [1], [0, 0, 1, 1], [], []>} : vector<128x128xf32>, vector<128x128xf32>, vector<128x128xf32> -> vector<128x128xf32>
    %c0_35 = arith.constant 0 : index
    %c0_36 = arith.constant 0 : index
    %26 = vector.load %arg11[%c0_35, %c0_36] : memref<1x128xf32, #tpu.memory_space<vmem>>, vector<1x128xf32>
    %27 = vector.broadcast %26 : vector<1x128xf32> to vector<128x128xf32>
    %28 = arith.addf %25, %27 : vector<128x128xf32>
    %c0_37 = arith.constant 0 : index
    %c0_38 = arith.constant 0 : index
    %29 = vector.load %arg12[%c0_37, %c0_38] : memref<128x128xf32, #tpu.memory_space<vmem>>, vector<128x128xf32>
    %cst_39 = arith.constant dense<0.000000e+00> : vector<64x128xf32>
    %30 = tpu.matmul %16, %29, %cst_39 {dimension_numbers = #tpu.dot_dimension_numbers<[1], [0], [0], [1], [0, 0, 1, 1], [], []>} : vector<64x128xf32>, vector<128x128xf32>, vector<64x128xf32> -> vector<64x128xf32>
    %c0_40 = arith.constant 0 : index
    %c0_41 = arith.constant 0 : index
    %31 = vector.load %arg13[%c0_40, %c0_41] : memref<1x128xf32, #tpu.memory_space<vmem>>, vector<1x128xf32>
    %32 = vector.broadcast %31 : vector<1x128xf32> to vector<64x128xf32>
    %33 = arith.addf %30, %32 : vector<64x128xf32>
    %c0_42 = arith.constant 0 : index
    %c0_43 = arith.constant 0 : index
    %34 = vector.load %arg14[%c0_42, %c0_43] : memref<128x128xf32, #tpu.memory_space<vmem>>, vector<128x128xf32>
    %cst_44 = arith.constant dense<0.000000e+00> : vector<64x128xf32>
    %35 = tpu.matmul %18, %34, %cst_44 {dimension_numbers = #tpu.dot_dimension_numbers<[1], [0], [0], [1], [0, 0, 1, 1], [], []>} : vector<64x128xf32>, vector<128x128xf32>, vector<64x128xf32> -> vector<64x128xf32>
    %c0_45 = arith.constant 0 : index
    %c0_46 = arith.constant 0 : index
    %36 = vector.load %arg15[%c0_45, %c0_46] : memref<1x128xf32, #tpu.memory_space<vmem>>, vector<1x128xf32>
    %37 = vector.broadcast %36 : vector<1x128xf32> to vector<64x128xf32>
    %38 = arith.addf %35, %37 : vector<64x128xf32>
    %39 = vector.shape_cast %6 : vector<256x256xf32> to vector<4x64x256xf32>
    %cst_47 = arith.constant dense<0xFF800000> : vector<4x256xf32>
    %40 = vector.multi_reduction <maximumf>, %39, %cst_47 [1] : vector<4x64x256xf32> to vector<4x256xf32>
    %41 = vector.shape_cast %40 : vector<4x256xf32> to vector<4x1x256xf32>
    %42 = vector.broadcast %41 : vector<4x1x256xf32> to vector<4x64x256xf32>
    %43 = arith.subf %39, %42 : vector<4x64x256xf32>
    %44 = math.exp %43 : vector<4x64x256xf32>
    %cst_48 = arith.constant dense<0.000000e+00> : vector<4x256xf32>
    %45 = vector.multi_reduction <add>, %44, %cst_48 [1] : vector<4x64x256xf32> to vector<4x256xf32>
    %46 = vector.shape_cast %45 : vector<4x256xf32> to vector<4x1x256xf32>
    %47 = tpu.reciprocal %46 : vector<4x1x256xf32> -> vector<4x1x256xf32>
    %48 = vector.broadcast %47 : vector<4x1x256xf32> to vector<4x64x256xf32>
    %49 = arith.mulf %44, %48 : vector<4x64x256xf32>
    %cst_49 = arith.constant dense<0xFF800000> : vector<128xf32>
    %50 = vector.multi_reduction <maximumf>, %23, %cst_49 [1] : vector<128x128xf32> to vector<128xf32>
    %51 = vector.shape_cast %50 : vector<128xf32> to vector<128x1xf32>
    %52 = vector.broadcast %51 : vector<128x1xf32> to vector<128x128xf32>
    %53 = arith.subf %23, %52 : vector<128x128xf32>
    %54 = math.exp %53 : vector<128x128xf32>
    %cst_50 = arith.constant dense<0.000000e+00> : vector<128x128xf32>
    %55 = tpu.matmul %54, %0, %cst_50 {dimension_numbers = #tpu.dot_dimension_numbers<[1], [0], [0], [1], [0, 0, 1, 1], [], []>} : vector<128x128xf32>, vector<128x128xf32>, vector<128x128xf32> -> vector<128x128xf32>
    %56 = tpu.reciprocal %55 : vector<128x128xf32> -> vector<128x128xf32>
    %57 = arith.mulf %54, %56 : vector<128x128xf32>
    %58 = vector.shape_cast %57 : vector<128x128xf32> to vector<4x32x128xf32>
    %59 = vector.shape_cast %28 : vector<128x128xf32> to vector<4x32x128xf32>
    %cst_51 = arith.constant dense<0xFF800000> : vector<64xf32>
    %60 = vector.multi_reduction <maximumf>, %33, %cst_51 [1] : vector<64x128xf32> to vector<64xf32>
    %61 = vector.shape_cast %60 : vector<64xf32> to vector<64x1xf32>
    %62 = vector.broadcast %61 : vector<64x1xf32> to vector<64x128xf32>
    %63 = arith.subf %33, %62 : vector<64x128xf32>
    %64 = math.exp %63 : vector<64x128xf32>
    %cst_52 = arith.constant dense<0.000000e+00> : vector<64x128xf32>
    %65 = tpu.matmul %64, %0, %cst_52 {dimension_numbers = #tpu.dot_dimension_numbers<[1], [0], [0], [1], [0, 0, 1, 1], [], []>} : vector<64x128xf32>, vector<128x128xf32>, vector<64x128xf32> -> vector<64x128xf32>
    %66 = tpu.reciprocal %65 : vector<64x128xf32> -> vector<64x128xf32>
    %67 = arith.mulf %64, %66 : vector<64x128xf32>
    %68 = vector.shape_cast %67 : vector<64x128xf32> to vector<4x16x128xf32>
    %69 = vector.shape_cast %38 : vector<64x128xf32> to vector<4x16x128xf32>
    %c0_53 = arith.constant 0 : index
    %c0_54 = arith.constant 0 : index
    %70 = vector.load %arg16[%c0_53, %c0_54] : memref<128x128xf32, #tpu.memory_space<vmem>>, vector<128x128xf32>
    %c0_55 = arith.constant 0 : index
    %c0_56 = arith.constant 0 : index
    %71 = vector.load %arg17[%c0_55, %c0_56] : memref<128x128xf32, #tpu.memory_space<vmem>>, vector<128x128xf32>
    %c0_57 = arith.constant 0 : index
    %c0_58 = arith.constant 0 : index
    %72 = vector.load %arg18[%c0_57, %c0_58] : memref<1x128xf32, #tpu.memory_space<vmem>>, vector<1x128xf32>
    %73 = vector.extract_strided_slice %58 {offsets = [0, 0, 0], sizes = [1, 32, 128], strides = [1, 1, 1]} : vector<4x32x128xf32> to vector<1x32x128xf32>
    %74 = vector.shape_cast %73 : vector<1x32x128xf32> to vector<32x128xf32>
    %75 = vector.extract_strided_slice %59 {offsets = [0, 0, 0], sizes = [1, 32, 128], strides = [1, 1, 1]} : vector<4x32x128xf32> to vector<1x32x128xf32>
    %76 = vector.shape_cast %75 : vector<1x32x128xf32> to vector<32x128xf32>
    %cst_59 = arith.constant dense<0.000000e+00> : vector<128x128xf32>
    %77 = tpu.matmul %74, %76, %cst_59 {dimension_numbers = #tpu.dot_dimension_numbers<[0], [0], [1], [1], [0, 1, 1, 1], [], []>} : vector<32x128xf32>, vector<32x128xf32>, vector<128x128xf32> -> vector<128x128xf32>
    %78 = arith.mulf %77, %0 : vector<128x128xf32>
    %79 = vector.extract_strided_slice %49 {offsets = [0, 0, 0], sizes = [1, 64, 128], strides = [1, 1, 1]} : vector<4x64x256xf32> to vector<1x64x128xf32>
    %80 = vector.shape_cast %79 : vector<1x64x128xf32> to vector<64x128xf32>
    %cst_60 = arith.constant dense<0.000000e+00> : vector<64x128xf32>
    %81 = tpu.matmul %80, %78, %cst_60 {dimension_numbers = #tpu.dot_dimension_numbers<[1], [0], [0], [1], [0, 0, 1, 1], [], []>} : vector<64x128xf32>, vector<128x128xf32>, vector<64x128xf32> -> vector<64x128xf32>
    %82 = vector.extract_strided_slice %68 {offsets = [0, 0, 0], sizes = [1, 16, 128], strides = [1, 1, 1]} : vector<4x16x128xf32> to vector<1x16x128xf32>
    %83 = vector.shape_cast %82 : vector<1x16x128xf32> to vector<16x128xf32>
    %84 = vector.extract_strided_slice %69 {offsets = [0, 0, 0], sizes = [1, 16, 128], strides = [1, 1, 1]} : vector<4x16x128xf32> to vector<1x16x128xf32>
    %85 = vector.shape_cast %84 : vector<1x16x128xf32> to vector<16x128xf32>
    %cst_61 = arith.constant dense<0.000000e+00> : vector<128x128xf32>
    %86 = tpu.matmul %83, %85, %cst_61 {dimension_numbers = #tpu.dot_dimension_numbers<[0], [0], [1], [1], [0, 1, 1, 1], [], []>} : vector<16x128xf32>, vector<16x128xf32>, vector<128x128xf32> -> vector<128x128xf32>
    %87 = arith.mulf %86, %0 : vector<128x128xf32>
    %88 = vector.extract_strided_slice %49 {offsets = [0, 0, 128], sizes = [1, 64, 128], strides = [1, 1, 1]} : vector<4x64x256xf32> to vector<1x64x128xf32>
    %89 = vector.shape_cast %88 : vector<1x64x128xf32> to vector<64x128xf32>
    %cst_62 = arith.constant dense<0.000000e+00> : vector<64x128xf32>
    %90 = tpu.matmul %89, %87, %cst_62 {dimension_numbers = #tpu.dot_dimension_numbers<[1], [0], [0], [1], [0, 0, 1, 1], [], []>} : vector<64x128xf32>, vector<128x128xf32>, vector<64x128xf32> -> vector<64x128xf32>
    %cst_63 = arith.constant dense<0.000000e+00> : vector<64x128xf32>
    %91 = tpu.matmul %81, %70, %cst_63 {dimension_numbers = #tpu.dot_dimension_numbers<[1], [0], [0], [1], [0, 0, 1, 1], [], []>} : vector<64x128xf32>, vector<128x128xf32>, vector<64x128xf32> -> vector<64x128xf32>
    %cst_64 = arith.constant dense<0.000000e+00> : vector<64x128xf32>
    %92 = tpu.matmul %90, %71, %cst_64 {dimension_numbers = #tpu.dot_dimension_numbers<[1], [0], [0], [1], [0, 0, 1, 1], [], []>} : vector<64x128xf32>, vector<128x128xf32>, vector<64x128xf32> -> vector<64x128xf32>
    %93 = arith.addf %91, %92 : vector<64x128xf32>
    %94 = vector.broadcast %72 : vector<1x128xf32> to vector<64x128xf32>
    %95 = arith.addf %93, %94 : vector<64x128xf32>
    %c0_65 = arith.constant 0 : index
    %c0_66 = arith.constant 0 : index
    %c0_67 = arith.constant 0 : index
    %96 = vector.load %arg20[%c0_65, %c0_66, %c0_67] : memref<4x64x128xf32, #tpu.memory_space<vmem>>, vector<1x64x128xf32>
    %97 = vector.shape_cast %96 : vector<1x64x128xf32> to vector<64x128xf32>
    %98 = vector.shape_cast %95 : vector<64x128xf32> to vector<1x64x128xf32>
    tpu.vector_store %arg20[%c0_65, %c0_66, %c0_67], %98 {strides = array<i32>} : memref<4x64x128xf32, #tpu.memory_space<vmem>>, vector<1x64x128xf32>,
    %99 = vector.extract_strided_slice %58 {offsets = [1, 0, 0], sizes = [1, 32, 128], strides = [1, 1, 1]} : vector<4x32x128xf32> to vector<1x32x128xf32>
    %100 = vector.shape_cast %99 : vector<1x32x128xf32> to vector<32x128xf32>
    %101 = vector.extract_strided_slice %59 {offsets = [1, 0, 0], sizes = [1, 32, 128], strides = [1, 1, 1]} : vector<4x32x128xf32> to vector<1x32x128xf32>
    %102 = vector.shape_cast %101 : vector<1x32x128xf32> to vector<32x128xf32>
    %cst_68 = arith.constant dense<0.000000e+00> : vector<128x128xf32>
    %103 = tpu.matmul %100, %102, %cst_68 {dimension_numbers = #tpu.dot_dimension_numbers<[0], [0], [1], [1], [0, 1, 1, 1], [], []>} : vector<32x128xf32>, vector<32x128xf32>, vector<128x128xf32> -> vector<128x128xf32>
    %104 = arith.mulf %103, %0 : vector<128x128xf32>
    %105 = vector.extract_strided_slice %49 {offsets = [1, 0, 0], sizes = [1, 64, 128], strides = [1, 1, 1]} : vector<4x64x256xf32> to vector<1x64x128xf32>
    %106 = vector.shape_cast %105 : vector<1x64x128xf32> to vector<64x128xf32>
    %cst_69 = arith.constant dense<0.000000e+00> : vector<64x128xf32>
    %107 = tpu.matmul %106, %104, %cst_69 {dimension_numbers = #tpu.dot_dimension_numbers<[1], [0], [0], [1], [0, 0, 1, 1], [], []>} : vector<64x128xf32>, vector<128x128xf32>, vector<64x128xf32> -> vector<64x128xf32>
    %108 = vector.extract_strided_slice %68 {offsets = [1, 0, 0], sizes = [1, 16, 128], strides = [1, 1, 1]} : vector<4x16x128xf32> to vector<1x16x128xf32>
    %109 = vector.shape_cast %108 : vector<1x16x128xf32> to vector<16x128xf32>
    %110 = vector.extract_strided_slice %69 {offsets = [1, 0, 0], sizes = [1, 16, 128], strides = [1, 1, 1]} : vector<4x16x128xf32> to vector<1x16x128xf32>
    %111 = vector.shape_cast %110 : vector<1x16x128xf32> to vector<16x128xf32>
    %cst_70 = arith.constant dense<0.000000e+00> : vector<128x128xf32>
    %112 = tpu.matmul %109, %111, %cst_70 {dimension_numbers = #tpu.dot_dimension_numbers<[0], [0], [1], [1], [0, 1, 1, 1], [], []>} : vector<16x128xf32>, vector<16x128xf32>, vector<128x128xf32> -> vector<128x128xf32>
    %113 = arith.mulf %112, %0 : vector<128x128xf32>
    %114 = vector.extract_strided_slice %49 {offsets = [1, 0, 128], sizes = [1, 64, 128], strides = [1, 1, 1]} : vector<4x64x256xf32> to vector<1x64x128xf32>
    %115 = vector.shape_cast %114 : vector<1x64x128xf32> to vector<64x128xf32>
    %cst_71 = arith.constant dense<0.000000e+00> : vector<64x128xf32>
    %116 = tpu.matmul %115, %113, %cst_71 {dimension_numbers = #tpu.dot_dimension_numbers<[1], [0], [0], [1], [0, 0, 1, 1], [], []>} : vector<64x128xf32>, vector<128x128xf32>, vector<64x128xf32> -> vector<64x128xf32>
    %cst_72 = arith.constant dense<0.000000e+00> : vector<64x128xf32>
    %117 = tpu.matmul %107, %70, %cst_72 {dimension_numbers = #tpu.dot_dimension_numbers<[1], [0], [0], [1], [0, 0, 1, 1], [], []>} : vector<64x128xf32>, vector<128x128xf32>, vector<64x128xf32> -> vector<64x128xf32>
    %cst_73 = arith.constant dense<0.000000e+00> : vector<64x128xf32>
    %118 = tpu.matmul %116, %71, %cst_73 {dimension_numbers = #tpu.dot_dimension_numbers<[1], [0], [0], [1], [0, 0, 1, 1], [], []>} : vector<64x128xf32>, vector<128x128xf32>, vector<64x128xf32> -> vector<64x128xf32>
    %119 = arith.addf %117, %118 : vector<64x128xf32>
    %120 = vector.broadcast %72 : vector<1x128xf32> to vector<64x128xf32>
    %121 = arith.addf %119, %120 : vector<64x128xf32>
    %c1 = arith.constant 1 : index
    %c0_74 = arith.constant 0 : index
    %c0_75 = arith.constant 0 : index
    %122 = vector.load %arg20[%c1, %c0_74, %c0_75] : memref<4x64x128xf32, #tpu.memory_space<vmem>>, vector<1x64x128xf32>
    %123 = vector.shape_cast %122 : vector<1x64x128xf32> to vector<64x128xf32>
    %124 = vector.shape_cast %121 : vector<64x128xf32> to vector<1x64x128xf32>
    tpu.vector_store %arg20[%c1, %c0_74, %c0_75], %124 {strides = array<i32>} : memref<4x64x128xf32, #tpu.memory_space<vmem>>, vector<1x64x128xf32>,
    %125 = vector.extract_strided_slice %58 {offsets = [2, 0, 0], sizes = [1, 32, 128], strides = [1, 1, 1]} : vector<4x32x128xf32> to vector<1x32x128xf32>
    %126 = vector.shape_cast %125 : vector<1x32x128xf32> to vector<32x128xf32>
    %127 = vector.extract_strided_slice %59 {offsets = [2, 0, 0], sizes = [1, 32, 128], strides = [1, 1, 1]} : vector<4x32x128xf32> to vector<1x32x128xf32>
    %128 = vector.shape_cast %127 : vector<1x32x128xf32> to vector<32x128xf32>
    %cst_76 = arith.constant dense<0.000000e+00> : vector<128x128xf32>
    %129 = tpu.matmul %126, %128, %cst_76 {dimension_numbers = #tpu.dot_dimension_numbers<[0], [0], [1], [1], [0, 1, 1, 1], [], []>} : vector<32x128xf32>, vector<32x128xf32>, vector<128x128xf32> -> vector<128x128xf32>
    %130 = arith.mulf %129, %0 : vector<128x128xf32>
    %131 = vector.extract_strided_slice %49 {offsets = [2, 0, 0], sizes = [1, 64, 128], strides = [1, 1, 1]} : vector<4x64x256xf32> to vector<1x64x128xf32>
    %132 = vector.shape_cast %131 : vector<1x64x128xf32> to vector<64x128xf32>
    %cst_77 = arith.constant dense<0.000000e+00> : vector<64x128xf32>
    %133 = tpu.matmul %132, %130, %cst_77 {dimension_numbers = #tpu.dot_dimension_numbers<[1], [0], [0], [1], [0, 0, 1, 1], [], []>} : vector<64x128xf32>, vector<128x128xf32>, vector<64x128xf32> -> vector<64x128xf32>
    %134 = vector.extract_strided_slice %68 {offsets = [2, 0, 0], sizes = [1, 16, 128], strides = [1, 1, 1]} : vector<4x16x128xf32> to vector<1x16x128xf32>
    %135 = vector.shape_cast %134 : vector<1x16x128xf32> to vector<16x128xf32>
    %136 = vector.extract_strided_slice %69 {offsets = [2, 0, 0], sizes = [1, 16, 128], strides = [1, 1, 1]} : vector<4x16x128xf32> to vector<1x16x128xf32>
    %137 = vector.shape_cast %136 : vector<1x16x128xf32> to vector<16x128xf32>
    %cst_78 = arith.constant dense<0.000000e+00> : vector<128x128xf32>
    %138 = tpu.matmul %135, %137, %cst_78 {dimension_numbers = #tpu.dot_dimension_numbers<[0], [0], [1], [1], [0, 1, 1, 1], [], []>} : vector<16x128xf32>, vector<16x128xf32>, vector<128x128xf32> -> vector<128x128xf32>
    %139 = arith.mulf %138, %0 : vector<128x128xf32>
    %140 = vector.extract_strided_slice %49 {offsets = [2, 0, 128], sizes = [1, 64, 128], strides = [1, 1, 1]} : vector<4x64x256xf32> to vector<1x64x128xf32>
    %141 = vector.shape_cast %140 : vector<1x64x128xf32> to vector<64x128xf32>
    %cst_79 = arith.constant dense<0.000000e+00> : vector<64x128xf32>
    %142 = tpu.matmul %141, %139, %cst_79 {dimension_numbers = #tpu.dot_dimension_numbers<[1], [0], [0], [1], [0, 0, 1, 1], [], []>} : vector<64x128xf32>, vector<128x128xf32>, vector<64x128xf32> -> vector<64x128xf32>
    %cst_80 = arith.constant dense<0.000000e+00> : vector<64x128xf32>
    %143 = tpu.matmul %133, %70, %cst_80 {dimension_numbers = #tpu.dot_dimension_numbers<[1], [0], [0], [1], [0, 0, 1, 1], [], []>} : vector<64x128xf32>, vector<128x128xf32>, vector<64x128xf32> -> vector<64x128xf32>
    %cst_81 = arith.constant dense<0.000000e+00> : vector<64x128xf32>
    %144 = tpu.matmul %142, %71, %cst_81 {dimension_numbers = #tpu.dot_dimension_numbers<[1], [0], [0], [1], [0, 0, 1, 1], [], []>} : vector<64x128xf32>, vector<128x128xf32>, vector<64x128xf32> -> vector<64x128xf32>
    %145 = arith.addf %143, %144 : vector<64x128xf32>
    %146 = vector.broadcast %72 : vector<1x128xf32> to vector<64x128xf32>
    %147 = arith.addf %145, %146 : vector<64x128xf32>
    %c2 = arith.constant 2 : index
    %c0_82 = arith.constant 0 : index
    %c0_83 = arith.constant 0 : index
    %148 = vector.load %arg20[%c2, %c0_82, %c0_83] : memref<4x64x128xf32, #tpu.memory_space<vmem>>, vector<1x64x128xf32>
    %149 = vector.shape_cast %148 : vector<1x64x128xf32> to vector<64x128xf32>
    %150 = vector.shape_cast %147 : vector<64x128xf32> to vector<1x64x128xf32>
    tpu.vector_store %arg20[%c2, %c0_82, %c0_83], %150 {strides = array<i32>} : memref<4x64x128xf32, #tpu.memory_space<vmem>>, vector<1x64x128xf32>,
    %151 = vector.extract_strided_slice %58 {offsets = [3, 0, 0], sizes = [1, 32, 128], strides = [1, 1, 1]} : vector<4x32x128xf32> to vector<1x32x128xf32>
    %152 = vector.shape_cast %151 : vector<1x32x128xf32> to vector<32x128xf32>
    %153 = vector.extract_strided_slice %59 {offsets = [3, 0, 0], sizes = [1, 32, 128], strides = [1, 1, 1]} : vector<4x32x128xf32> to vector<1x32x128xf32>
    %154 = vector.shape_cast %153 : vector<1x32x128xf32> to vector<32x128xf32>
    %cst_84 = arith.constant dense<0.000000e+00> : vector<128x128xf32>
    %155 = tpu.matmul %152, %154, %cst_84 {dimension_numbers = #tpu.dot_dimension_numbers<[0], [0], [1], [1], [0, 1, 1, 1], [], []>} : vector<32x128xf32>, vector<32x128xf32>, vector<128x128xf32> -> vector<128x128xf32>
    %156 = arith.mulf %155, %0 : vector<128x128xf32>
    %157 = vector.extract_strided_slice %49 {offsets = [3, 0, 0], sizes = [1, 64, 128], strides = [1, 1, 1]} : vector<4x64x256xf32> to vector<1x64x128xf32>
    %158 = vector.shape_cast %157 : vector<1x64x128xf32> to vector<64x128xf32>
    %cst_85 = arith.constant dense<0.000000e+00> : vector<64x128xf32>
    %159 = tpu.matmul %158, %156, %cst_85 {dimension_numbers = #tpu.dot_dimension_numbers<[1], [0], [0], [1], [0, 0, 1, 1], [], []>} : vector<64x128xf32>, vector<128x128xf32>, vector<64x128xf32> -> vector<64x128xf32>
    %160 = vector.extract_strided_slice %68 {offsets = [3, 0, 0], sizes = [1, 16, 128], strides = [1, 1, 1]} : vector<4x16x128xf32> to vector<1x16x128xf32>
    %161 = vector.shape_cast %160 : vector<1x16x128xf32> to vector<16x128xf32>
    %162 = vector.extract_strided_slice %69 {offsets = [3, 0, 0], sizes = [1, 16, 128], strides = [1, 1, 1]} : vector<4x16x128xf32> to vector<1x16x128xf32>
    %163 = vector.shape_cast %162 : vector<1x16x128xf32> to vector<16x128xf32>
    %cst_86 = arith.constant dense<0.000000e+00> : vector<128x128xf32>
    %164 = tpu.matmul %161, %163, %cst_86 {dimension_numbers = #tpu.dot_dimension_numbers<[0], [0], [1], [1], [0, 1, 1, 1], [], []>} : vector<16x128xf32>, vector<16x128xf32>, vector<128x128xf32> -> vector<128x128xf32>
    %165 = arith.mulf %164, %0 : vector<128x128xf32>
    %166 = vector.extract_strided_slice %49 {offsets = [3, 0, 128], sizes = [1, 64, 128], strides = [1, 1, 1]} : vector<4x64x256xf32> to vector<1x64x128xf32>
    %167 = vector.shape_cast %166 : vector<1x64x128xf32> to vector<64x128xf32>
    %cst_87 = arith.constant dense<0.000000e+00> : vector<64x128xf32>
    %168 = tpu.matmul %167, %165, %cst_87 {dimension_numbers = #tpu.dot_dimension_numbers<[1], [0], [0], [1], [0, 0, 1, 1], [], []>} : vector<64x128xf32>, vector<128x128xf32>, vector<64x128xf32> -> vector<64x128xf32>
    %cst_88 = arith.constant dense<0.000000e+00> : vector<64x128xf32>
    %169 = tpu.matmul %159, %70, %cst_88 {dimension_numbers = #tpu.dot_dimension_numbers<[1], [0], [0], [1], [0, 0, 1, 1], [], []>} : vector<64x128xf32>, vector<128x128xf32>, vector<64x128xf32> -> vector<64x128xf32>
    %cst_89 = arith.constant dense<0.000000e+00> : vector<64x128xf32>
    %170 = tpu.matmul %168, %71, %cst_89 {dimension_numbers = #tpu.dot_dimension_numbers<[1], [0], [0], [1], [0, 0, 1, 1], [], []>} : vector<64x128xf32>, vector<128x128xf32>, vector<64x128xf32> -> vector<64x128xf32>
    %171 = arith.addf %169, %170 : vector<64x128xf32>
    %172 = vector.broadcast %72 : vector<1x128xf32> to vector<64x128xf32>
    %173 = arith.addf %171, %172 : vector<64x128xf32>
    %c3 = arith.constant 3 : index
    %c0_90 = arith.constant 0 : index
    %c0_91 = arith.constant 0 : index
    %174 = vector.load %arg20[%c3, %c0_90, %c0_91] : memref<4x64x128xf32, #tpu.memory_space<vmem>>, vector<1x64x128xf32>
    %175 = vector.shape_cast %174 : vector<1x64x128xf32> to vector<64x128xf32>
    %176 = vector.shape_cast %173 : vector<64x128xf32> to vector<1x64x128xf32>
    tpu.vector_store %arg20[%c3, %c0_90, %c0_91], %176 {strides = array<i32>} : memref<4x64x128xf32, #tpu.memory_space<vmem>>, vector<1x64x128xf32>,
    return
  }
  func.func @transform_0(%arg0: i32) -> (i32, i32, i32) {
    %c0_i32 = arith.constant 0 : i32
    %c0_i32_0 = arith.constant 0 : i32
    %c0_i32_1 = arith.constant 0 : i32
    return %arg0, %c0_i32, %c0_i32_0 : i32, i32, i32
  }
  func.func @transform_1(%arg0: i32) -> (i32, i32, i32) {
    %c0_i32 = arith.constant 0 : i32
    %c0_i32_0 = arith.constant 0 : i32
    %c0_i32_1 = arith.constant 0 : i32
    return %arg0, %c0_i32, %c0_i32_0 : i32, i32, i32
  }
  func.func @transform_2(%arg0: i32) -> (i32, i32, i32) {
    %c0_i32 = arith.constant 0 : i32
    %c0_i32_0 = arith.constant 0 : i32
    %c0_i32_1 = arith.constant 0 : i32
    return %arg0, %c0_i32, %c0_i32_0 : i32, i32, i32
  }
  func.func @transform_3(%arg0: i32) -> (i32, i32, i32) {
    %c0_i32 = arith.constant 0 : i32
    %c0_i32_0 = arith.constant 0 : i32
    %c0_i32_1 = arith.constant 0 : i32
    return %arg0, %c0_i32, %c0_i32_0 : i32, i32, i32
  }
  func.func @transform_4(%arg0: i32) -> (i32, i32, i32) {
    %c0_i32 = arith.constant 0 : i32
    %c0_i32_0 = arith.constant 0 : i32
    %c0_i32_1 = arith.constant 0 : i32
    return %arg0, %c0_i32, %c0_i32_0 : i32, i32, i32
  }
  func.func @transform_5(%arg0: i32) -> (i32, i32, i32) {
    %c0_i32 = arith.constant 0 : i32
    %c0_i32_0 = arith.constant 0 : i32
    %c0_i32_1 = arith.constant 0 : i32
    return %arg0, %c0_i32, %c0_i32_0 : i32, i32, i32
  }
  func.func @transform_6(%arg0: i32) -> (i32, i32) {
    %c0_i32 = arith.constant 0 : i32
    %c0_i32_0 = arith.constant 0 : i32
    %c0_i32_1 = arith.constant 0 : i32
    return %c0_i32, %c0_i32_0 : i32, i32
  }
  func.func @transform_7(%arg0: i32) -> (i32, i32) {
    %c0_i32 = arith.constant 0 : i32
    %c0_i32_0 = arith.constant 0 : i32
    %c0_i32_1 = arith.constant 0 : i32
    return %c0_i32, %c0_i32_0 : i32, i32
  }
  func.func @transform_8(%arg0: i32) -> (i32, i32) {
    %c0_i32 = arith.constant 0 : i32
    %c0_i32_0 = arith.constant 0 : i32
    %c0_i32_1 = arith.constant 0 : i32
    return %c0_i32, %c0_i32_0 : i32, i32
  }
  func.func @transform_9(%arg0: i32) -> (i32, i32) {
    %c0_i32 = arith.constant 0 : i32
    %c0_i32_0 = arith.constant 0 : i32
    %c0_i32_1 = arith.constant 0 : i32
    return %c0_i32, %c0_i32_0 : i32, i32
  }
  func.func @transform_10(%arg0: i32) -> (i32, i32) {
    %c0_i32 = arith.constant 0 : i32
    %c0_i32_0 = arith.constant 0 : i32
    %c0_i32_1 = arith.constant 0 : i32
    return %c0_i32, %c0_i32_0 : i32, i32
  }
  func.func @transform_11(%arg0: i32) -> (i32, i32) {
    %c0_i32 = arith.constant 0 : i32
    %c0_i32_0 = arith.constant 0 : i32
    %c0_i32_1 = arith.constant 0 : i32
    return %c0_i32, %c0_i32_0 : i32, i32
  }
  func.func @transform_12(%arg0: i32) -> (i32, i32) {
    %c0_i32 = arith.constant 0 : i32
    %c0_i32_0 = arith.constant 0 : i32
    %c0_i32_1 = arith.constant 0 : i32
    return %c0_i32, %c0_i32_0 : i32, i32
  }
  func.func @transform_13(%arg0: i32) -> (i32, i32) {
    %c0_i32 = arith.constant 0 : i32
    %c0_i32_0 = arith.constant 0 : i32
    %c0_i32_1 = arith.constant 0 : i32
    return %c0_i32, %c0_i32_0 : i32, i32
  }
  func.func @transform_14(%arg0: i32) -> (i32, i32) {
    %c0_i32 = arith.constant 0 : i32
    %c0_i32_0 = arith.constant 0 : i32
    %c0_i32_1 = arith.constant 0 : i32
    return %c0_i32, %c0_i32_0 : i32, i32
  }
  func.func @transform_15(%arg0: i32) -> (i32, i32) {
    %c0_i32 = arith.constant 0 : i32
    %c0_i32_0 = arith.constant 0 : i32
    %c0_i32_1 = arith.constant 0 : i32
    return %c0_i32, %c0_i32_0 : i32, i32
  }
  func.func @transform_16(%arg0: i32) -> (i32, i32) {
    %c0_i32 = arith.constant 0 : i32
    %c0_i32_0 = arith.constant 0 : i32
    %c0_i32_1 = arith.constant 0 : i32
    return %c0_i32, %c0_i32_0 : i32, i32
  }
  func.func @transform_17(%arg0: i32) -> (i32, i32) {
    %c0_i32 = arith.constant 0 : i32
    %c0_i32_0 = arith.constant 0 : i32
    %c0_i32_1 = arith.constant 0 : i32
    return %c0_i32, %c0_i32_0 : i32, i32
  }
  func.func @transform_18(%arg0: i32) -> (i32, i32) {
    %c0_i32 = arith.constant 0 : i32
    %c0_i32_0 = arith.constant 0 : i32
    %c0_i32_1 = arith.constant 0 : i32
    return %c0_i32, %c0_i32_0 : i32, i32
  }
  func.func @transform_19(%arg0: i32) -> (i32, i32, i32) {
    %c0_i32 = arith.constant 0 : i32
    %c0_i32_0 = arith.constant 0 : i32
    %c0_i32_1 = arith.constant 0 : i32
    return %arg0, %c0_i32, %c0_i32_0 : i32, i32, i32
  }
}

</mosaic_0001>

<bundles_post_ra>
// kernel: tpu_custom_call.1
= control target key start
LH: loop header
LB: loop body
LE: loop exit
PB: predicated region body
PF: predicated region fallthrough
CT: control target
= control target key end

     0   :  { %s8018_s0 = inlined_call_operand.hbm [shape: f32[4,64,128], index: 0, kind: input, shape index: {}]   ;;  %s8019_s1 = inlined_call_operand.hbm [shape: f32[4,64,128], index: 1, kind: input, shape index: {}]   ;;  %s8020_s2 = inlined_call_operand.hbm [shape: f32[4,32,128], index: 2, kind: input, shape index: {}]   ;;  %s8021_s3 = inlined_call_operand.hbm [shape: f32[4,32,128], index: 3, kind: input, shape index: {}]   ;;  %s8022_s4 = inlined_call_operand.hbm [shape: f32[4,16,128], index: 4, kind: input, shape index: {}]   ;;  %s8023_s5 = inlined_call_operand.hbm [shape: f32[4,16,128], index: 5, kind: input, shape index: {}]   ;;  %s8024_s6 = inlined_call_operand.hbm [shape: f32[128,256], index: 6, kind: input, shape index: {}]   ;;  %s8025_s7 = inlined_call_operand.hbm [shape: f32[128,128], index: 7, kind: input, shape index: {}]   ;;  %s8026_s8 = inlined_call_operand.vmem [shape: f32[1,128], index: 8, kind: input, shape index: {}]   ;;  %s8027_s9 = inlined_call_operand.hbm [shape: f32[128,128], index: 9, kind: input, shape index: {}]   ;;  %s8028_s10 = inlined_call_operand.vmem [shape: f32[1,128], index: 10, kind: input, shape index: {}]   ;;  %s8029_s11 = inlined_call_operand.hbm [shape: f32[128,128], index: 11, kind: input, shape index: {}]   ;;  %s8030_s12 = inlined_call_operand.vmem [shape: f32[1,128], index: 12, kind: input, shape index: {}]   ;;  %s8031_s13 = inlined_call_operand.hbm [shape: f32[128,128], index: 13, kind: input, shape index: {}]   ;;  %s8032_s14 = inlined_call_operand.vmem [shape: f32[1,128], index: 14, kind: input, shape index: {}]   ;;  %s8033_s15 = inlined_call_operand.hbm [shape: f32[128,128], index: 15, kind: input, shape index: {}]   ;;  %s8034_s16 = inlined_call_operand.hbm [shape: f32[128,128], index: 16, kind: input, shape index: {}]   ;;  %s8035_s17 = inlined_call_operand.vmem [shape: f32[1,128], index: 17, kind: input, shape index: {}]   ;;  %s8036_s18 = inlined_call_operand.hbm [shape: f32[128,128], index: 18, kind: input, shape index: {}]   ;;  %s8037_s19 = inlined_call_operand.hbm [shape: f32[4,64,128], index: 19, kind: output, shape index: {}]  }
   0x1   :  { %8197 = sst [smem:[#allocation129_spill]] %s8018_s0 }
   0x2   :  { %8198 = sst [smem:[#allocation130_spill]] %s8019_s1 }
   0x3   :  { %8199 = sst [smem:[#allocation131_spill]] %s8020_s2 }
   0x4   :  { %8200 = sst [smem:[#allocation132_spill]] %s8021_s3 }
   0x5   :  { %24 = vsyncpa [#allocation3], 0 }
   0x6   :  { %25 = vsyncpa [#allocation6], 0 }
   0x7   :  { %26 = vsyncpa [#allocation9], 0 }
   0x8   :  { %27 = vsyncpa [#allocation12], 0 }
   0x9   :  { %28 = vsyncpa [#allocation15], 0 }
   0xa   :  { %29 = vsyncpa [#allocation18], 0 }
   0xb   :  { %30 = vsyncpa [#allocation21], 0 }
   0xc   :  { %31 = vsyncpa [#allocation24], 0 }
   0xd   :  { %32 = vsyncpa [#allocation4], 0  ;;  %s8201_s20 = sld [smem:[#allocation130_spill]]  ;;  %s5160_s1 = smov [#allocation5]  }
   0xe   :  { %s52_s22 = sshll.u32 %s5160_s1, 4  ;;  %s8202_s24 = sld [smem:[#allocation132_spill]]  ;;  %s53_s22 = int_to_ptr.vmem [resolvable:$true] %s52_s22 }
   0xf   :  { %s5161_s3 = smov 128   ;;  %s5162_s26 = smov 8  }
  0x10   :  { %s5163_s27 = smov [#allocation8]   ;;  %s102_s30 = sshll.u32 %s8023_s5, 4  ;;  %s103_s30 = int_to_ptr.hbm [resolvable:$true] %s102_s30 }
  0x11   :  { %s78_s28 = sshll.u32 %s5163_s27, 4  ;;  %s128_s2 = sshll.u32 %s8025_s7, 4  ;;  %s79_s28 = int_to_ptr.vmem [resolvable:$true] %s78_s28  ;;  %s129_s2 = int_to_ptr.hbm [resolvable:$true] %s128_s2 }
  0x12   :  { %s5164_s23 = smov [#allocation11]   ;;  %s158_s29 = sshll.u32 %s8029_s11, 4  ;;  %s159_s29 = int_to_ptr.hbm [resolvable:$true] %s158_s29 }
  0x13   :  { %s50_s21 = sshll.u32 %s8201_s20, 4  ;;  %s5166_s0 = smov [#allocation17]   ;;  %s51_s21 = int_to_ptr.hbm [resolvable:$true] %s50_s21 }
  0x14   :  { %s76_s25 = sshll.u32 %s8202_s24, 4  ;;  %s104_s24 = sshll.u32 %s5164_s23, 4  ;;  %s77_s25 = int_to_ptr.hbm [resolvable:$true] %s76_s25  ;;  %s105_s24 = int_to_ptr.vmem [resolvable:$true] %s104_s24 }
  0x15   :  { %58 = dma.hbm_to_vmem [thread:$0]  %s51_s21, 4096, %s53_s22, [#allocation6], %s5161_s3, %s5161_s3, %s5162_s26  }
  0x16   :  { %84 = dma.hbm_to_vmem [thread:$0]  %s77_s25, 2048, %s79_s28, [#allocation9], %s5161_s3, %s5161_s3, %s5162_s26  }
  0x17   :  { %110 = dma.hbm_to_vmem [thread:$0]  %s103_s30, 1024, %s105_s24, [#allocation12], %s5161_s3, %s5161_s3, %s5162_s26  }
  0x18   :  { %s5165_s21 = smov [#allocation14]   ;;  %s188_s28 = sshll.u32 %s8033_s15, 4  ;;  %s189_s28 = int_to_ptr.hbm [resolvable:$true] %s188_s28 }
  0x19   :  { %s130_s5 = sshll.u32 %s5165_s21, 4  ;;  %s160_s20 = sshll.u32 %s5166_s0, 4  ;;  %s131_s5 = int_to_ptr.vmem [resolvable:$true] %s130_s5  ;;  %s161_s20 = int_to_ptr.vmem [resolvable:$true] %s160_s20 }
  0x1a   :  { %136 = dma.hbm_to_vmem [thread:$0]  %s129_s2, 2048, %s131_s5, [#allocation15], %s5161_s3, %s5161_s3, %s5162_s26  }
  0x1b   :  { %166 = dma.hbm_to_vmem [thread:$0]  %s159_s29, 2048, %s161_s20, [#allocation18], %s5161_s3, %s5161_s3, %s5162_s26  }
  0x1c   :  { %s5167_s30 = smov [#allocation20]   ;;  %s8203_s24 = sld [smem:[#allocation129_spill]] }
  0x1d   :  { %s190_s11 = sshll.u32 %s5167_s30, 4  ;;  %s8204_s5 = sld [smem:[#allocation131_spill]]  ;;  %s191_s11 = int_to_ptr.vmem [resolvable:$true] %s190_s11 }
  0x1e   :  { %196 = dma.hbm_to_vmem [thread:$0]  %s189_s28, 2048, %s191_s11, [#allocation21], %s5161_s3, %s5161_s3, %s5162_s26  }
  0x1f   :  { %s5168_s27 = smov [#allocation2]   ;;  %s5169_s29 = smov [#allocation7]  }
  0x20   :  { %s39_s7 = sshll.u32 %s5168_s27, 4  ;;  %s65_s25 = sshll.u32 %s5169_s29, 4  ;;  %s40_s7 = int_to_ptr.vmem [resolvable:$true] %s39_s7  ;;  %s66_s25 = int_to_ptr.vmem [resolvable:$true] %s65_s25 }
  0x21   :  { %s89_s30 = sshll.u32 %s8022_s4, 4  ;;  %s115_s1 = sshll.u32 %s8024_s6, 4  ;;  %s90_s30 = int_to_ptr.hbm [resolvable:$true] %s89_s30  ;;  %s116_s1 = int_to_ptr.hbm [resolvable:$true] %s115_s1 }
  0x22   :  { %s37_s21 = sshll.u32 %s8203_s24, 4  ;;  %s5170_s23 = smov [#allocation10]   ;;  %s38_s21 = int_to_ptr.hbm [resolvable:$true] %s37_s21 }
  0x23   :  { %s63_s22 = sshll.u32 %s8204_s5, 4  ;;  %s91_s24 = sshll.u32 %s5170_s23, 4  ;;  %s64_s22 = int_to_ptr.hbm [resolvable:$true] %s63_s22  ;;  %s92_s24 = int_to_ptr.vmem [resolvable:$true] %s91_s24 }
  0x24   :  { %45 = dma.hbm_to_vmem [thread:$0]  %s38_s21, 4096, %s40_s7, [#allocation3], %s5161_s3, %s5161_s3, %s5162_s26  }
  0x25   :  { %71 = dma.hbm_to_vmem [thread:$0]  %s64_s22, 2048, %s66_s25, [#allocation6], %s5161_s3, %s5161_s3, %s5162_s26  }
  0x26   :  { %97 = dma.hbm_to_vmem [thread:$0]  %s90_s30, 1024, %s92_s24, [#allocation9], %s5161_s3, %s5161_s3, %s5162_s26  }
  0x27   :  { %s5171_s21 = smov [#allocation13]   ;;  %s5172_s15 = smov 256  }
  0x28   :  { %s117_s4 = sshll.u32 %s5171_s21, 4  ;;  %s5173_s2 = smov 16   ;;  %s118_s4 = int_to_ptr.vmem [resolvable:$true] %s117_s4 }
  0x29   :  { %123 = dma.hbm_to_vmem [thread:$0]  %s116_s1, 4096, %s118_s4, [#allocation12], %s5172_s15, %s5172_s15, %s5173_s2  }
  0x2a   :  { %s143_s27 = sshll.u32 %s8027_s9, 4  ;;  %s5174_s6 = smov [#allocation16]   ;;  %s144_s27 = int_to_ptr.hbm [resolvable:$true] %s143_s27 }
  0x2b   :  { %s145_s7 = sshll.u32 %s5174_s6, 4  ;;  %s173_s0 = sshll.u32 %s8031_s13, 4  ;;  %s146_s7 = int_to_ptr.vmem [resolvable:$true] %s145_s7  ;;  %s174_s0 = int_to_ptr.hbm [resolvable:$true] %s173_s0 }
  0x2c   :  { %151 = dma.hbm_to_vmem [thread:$0]  %s144_s27, 2048, %s146_s7, [#allocation15], %s5161_s3, %s5161_s3, %s5162_s26  }
  0x2d   :  { %s5175_s20 = smov [#allocation19]   ;;  %s201_s1 = sshll.u32 %s8034_s16, 4  ;;  %s202_s1 = int_to_ptr.hbm [resolvable:$true] %s201_s1 }
  0x2e   :  { %s175_s30 = sshll.u32 %s5175_s20, 4  ;;  %s216_s13 = sshll.u32 %s8036_s18, 4  ;;  %s176_s30 = int_to_ptr.vmem [resolvable:$true] %s175_s30  ;;  %s217_s13 = int_to_ptr.hbm [resolvable:$true] %s216_s13 }
  0x2f   :  { %181 = dma.hbm_to_vmem [thread:$0]  %s174_s0, 2048, %s176_s30, [#allocation18], %s5161_s3, %s5161_s3, %s5162_s26  }
  0x30   :  { %s5176_s24 = smov [#allocation22]   ;;  %s5177_s4 = smov [#allocation23]  }
  0x31   :  { %s203_s21 = sshll.u32 %s5176_s24, 4  ;;  %s218_s16 = sshll.u32 %s5177_s4, 4  ;;  %s204_s21 = int_to_ptr.vmem [resolvable:$true] %s203_s21  ;;  %s219_s16 = int_to_ptr.vmem [resolvable:$true] %s218_s16 }
  0x32   :  { %209 = dma.hbm_to_vmem [thread:$0]  %s202_s1, 2048, %s204_s21, [#allocation21], %s5161_s3, %s5161_s3, %s5162_s26  }
  0x33   :  { %224 = dma.hbm_to_vmem [thread:$0]  %s217_s13, 2048, %s219_s16, [#allocation24], %s5161_s3, %s5161_s3, %s5162_s26  }
  0x34   :  { %5142 = dma.done.wait [#allocation3], 4096  }
  0x35   :  { %5143 = vsyncadd [#allocation3], 4294963200 }
  0x36   :  { %5144 = dma.done.wait [#allocation6], 6144  }
  0x37   :  { %5145 = vsyncadd [#allocation6], 4294961152 }
  0x38   :  { %5146 = dma.done.wait [#allocation9], 3072  }
  0x39   :  { %5147 = vsyncadd [#allocation9], 4294964224 }
  0x3a   :  { %5148 = dma.done.wait [#allocation12], 5120  }
  0x3b   :  { %5149 = vsyncadd [#allocation12], 4294962176 }
  0x3c   :  { %5150 = dma.done.wait [#allocation15], 4096  }
  0x3d   :  { %5151 = vsyncadd [#allocation15], 4294963200 }
  0x3e   :  { %5152 = dma.done.wait [#allocation18], 4096  }
  0x3f   :  { %5153 = vsyncadd [#allocation18], 4294963200 }
  0x40   :  { %5154 = dma.done.wait [#allocation21], 4096  }
  0x41   :  { %5155 = vsyncadd [#allocation21], 4294963200 }
  0x42   :  { %5156 = dma.done.wait [#allocation24], 2048  }
  0x43   :  { %5157 = vsyncadd [#allocation24], 4294965248  ;;  %v738_v0 = vld [vmem:[#allocation14 + $0x78] sm:$0xff]  ;;  %v737_v1 = vld [vmem:[#allocation14 + $0x70] sm:$0xff]  ;;  %s4232_s23 = sshll.u32 %s8037_s19, 4  ;;  %s4233_s23 = int_to_ptr.hbm [resolvable:$true] %s4232_s23 }
  0x44   :  { %743 = vmatpush.msra.mxu2 %v738_v0  ;;  %v736_v2 = vld [vmem:[#allocation14 + $0x68] sm:$0xff]  ;;  %v735_v3 = vld [vmem:[#allocation14 + $0x60] sm:$0xff]  ;;  %v734_v4 = vld [vmem:[#allocation14 + $0x58] sm:$0xff] }
  0x45   :  { %v733_v5 = vld [vmem:[#allocation14 + $0x50] sm:$0xff]  ;;  %v732_v6 = vld [vmem:[#allocation14 + $0x48] sm:$0xff]  ;;  %v731_v7 = vld [vmem:[#allocation14 + $0x40] sm:$0xff] }
  0x46   :  { %744 = vmatpush.msra.mxu2 %v737_v1  ;;  %v730_v8 = vld [vmem:[#allocation14 + $0x38] sm:$0xff]  ;;  %v729_v9 = vld [vmem:[#allocation14 + $0x30] sm:$0xff]  ;;  %v728_v10 = vld [vmem:[#allocation14 + $0x28] sm:$0xff] }
  0x47   :  { %v727_v11 = vld [vmem:[#allocation14 + $0x20] sm:$0xff]  ;;  %v726_v12 = vld [vmem:[#allocation14 + $0x18] sm:$0xff]  ;;  %v725_v13 = vld [vmem:[#allocation14 + $0x10] sm:$0xff] }
  0x48   :  { %745 = vmatpush.msra.mxu2 %v736_v2  ;;  %v5360_v14 = vld [vmem:[#allocation7] sm:$0xff]  ;;  %v724_v16 = vld [vmem:[#allocation14 + $0x8] sm:$0xff]  ;;  %v5366_v22 = vld [vmem:[#allocation7 + $0x10] sm:$0xff] }
  0x49   :  { %v667_v15 = vld [vmem:[#allocation8] sm:$0xff]  ;;  %v5363_v19 = vld [vmem:[#allocation7 + $0x8] sm:$0xff]  ;;  %v669_v23 = vld [vmem:[#allocation8 + $0x10] sm:$0xff] }
  0x4a   :  { %746 = vmatpush.msra.mxu2 %v735_v3  ;;  %v723_v17 = vld [vmem:[#allocation14] sm:$0xff]  ;;  %v683_v18 = vadd.f32 %v667_v15, %v5360_v14  ;;  %v668_v20 = vld [vmem:[#allocation8 + $0x8] sm:$0xff]  ;;  %v685_v24 = vadd.f32 %v669_v23, %v5366_v22  ;;  %v5369_v25 = vld [vmem:[#allocation7 + $0x18] sm:$0xff] }
  0x4b   :  { %v684_v21 = vadd.f32 %v668_v20, %v5363_v19  ;;  %v670_v26 = vld [vmem:[#allocation8 + $0x18] sm:$0xff]  ;;  %v5372_v28 = vld [vmem:[#allocation7 + $0x20] sm:$0xff]  ;;  %v5375_v31 = vld [vmem:[#allocation7 + $0x28] sm:$0xff] }
  0x4c   :  { %747 = vmatpush.msra.mxu2 %v734_v4  ;;  %v686_v27 = vadd.f32 %v670_v26, %v5369_v25  ;;  %v671_v29 = vld [vmem:[#allocation8 + $0x20] sm:$0xff]  ;;  %v672_v32 = vld [vmem:[#allocation8 + $0x28] sm:$0xff]  ;;  %v5378_v34 = vld [vmem:[#allocation7 + $0x30] sm:$0xff] }
  0x4d   :  { %v687_v30 = vadd.f32 %v671_v29, %v5372_v28  ;;  %v688_v33 = vadd.f32 %v672_v32, %v5375_v31  ;;  %v673_v35 = vld [vmem:[#allocation8 + $0x30] sm:$0xff]  ;;  %v5381_v37 = vld [vmem:[#allocation7 + $0x38] sm:$0xff]  ;;  %v5384_v40 = vld [vmem:[#allocation7 + $0x40] sm:$0xff] }
  0x4e   :  { %748 = vmatpush.msra.mxu2 %v733_v5  ;;  %v689_v36 = vadd.f32 %v673_v35, %v5378_v34  ;;  %v674_v38 = vld [vmem:[#allocation8 + $0x38] sm:$0xff]  ;;  %v675_v41 = vld [vmem:[#allocation8 + $0x40] sm:$0xff]  ;;  %v907_v44 = vld [vmem:[#allocation17 + $0x70] sm:$0xff] }
  0x4f   :  { %v690_v39 = vadd.f32 %v674_v38, %v5381_v37  ;;  %v691_v42 = vadd.f32 %v675_v41, %v5384_v40  ;;  %v908_v43 = vld [vmem:[#allocation17 + $0x78] sm:$0xff]  ;;  %v5387_v45 = vld [vmem:[#allocation7 + $0x48] sm:$0xff]  ;;  %v905_v49 = vld [vmem:[#allocation17 + $0x60] sm:$0xff] }
  0x50   :  { %749 = vmatpush.msra.mxu2 %v732_v6  ;;  %v676_v46 = vld [vmem:[#allocation8 + $0x48] sm:$0xff]  ;;  %v904_v50 = vld [vmem:[#allocation17 + $0x58] sm:$0xff]  ;;  %v903_v51 = vld [vmem:[#allocation17 + $0x50] sm:$0xff] }
  0x51   :  { %v906_v47 = vld [vmem:[#allocation17 + $0x68] sm:$0xff]  ;;  %v692_v48 = vadd.f32 %v676_v46, %v5387_v45  ;;  %v5390_v52 = vld [vmem:[#allocation7 + $0x50] sm:$0xff]  ;;  %v901_v56 = vld [vmem:[#allocation17 + $0x40] sm:$0xff] }
  0x52   :  { %750 = vmatpush.msra.mxu2 %v731_v7  ;;  %v677_v53 = vld [vmem:[#allocation8 + $0x50] sm:$0xff]  ;;  %v902_v54 = vld [vmem:[#allocation17 + $0x48] sm:$0xff]  ;;  %v900_v57 = vld [vmem:[#allocation17 + $0x38] sm:$0xff] }
  0x53   :  { %v693_v55 = vadd.f32 %v677_v53, %v5390_v52  ;;  %v899_v58 = vld [vmem:[#allocation17 + $0x30] sm:$0xff]  ;;  %v5393_v59 = vld [vmem:[#allocation7 + $0x58] sm:$0xff]  ;;  %v898_v61 = vld [vmem:[#allocation17 + $0x28] sm:$0xff] }
  0x54   :  { %751 = vmatpush.msra.mxu2 %v730_v8  ;;  %v678_v60 = vld [vmem:[#allocation8 + $0x58] sm:$0xff]  ;;  %v897_v63 = vld [vmem:[#allocation17 + $0x20] sm:$0xff]  ;;  %v895_v1 = vld [vmem:[#allocation17 + $0x10] sm:$0xff] }
  0x55   :  { %v694_v62 = vadd.f32 %v678_v60, %v5393_v59  ;;  %v896_v0 = vld [vmem:[#allocation17 + $0x18] sm:$0xff]  ;;  %v5396_v3 = vld [vmem:[#allocation7 + $0x60] sm:$0xff]  ;;  %v822_v5 = vld [vmem:[#allocation16 + $0x70] sm:$0xff] }
  0x56   :  { %752 = vmatpush.msra.mxu2 %v729_v9  ;;  %v823_v2 = vld [vmem:[#allocation16 + $0x78] sm:$0xff]  ;;  %v679_v4 = vld [vmem:[#allocation8 + $0x60] sm:$0xff]  ;;  %v894_v6 = vld [vmem:[#allocation17 + $0x8] sm:$0xff] }
  0x57   :  { %828 = vmatpush.msra.mxu3 %v823_v2  ;;  %v821_v7 = vld [vmem:[#allocation16 + $0x68] sm:$0xff]  ;;  %v695_v8 = vadd.f32 %v679_v4, %v5396_v3  ;;  %v893_v9 = vld [vmem:[#allocation17] sm:$0xff]  ;;  %v818_v15 = vld [vmem:[#allocation16 + $0x50] sm:$0xff] }
  0x58   :  { %753 = vmatpush.msra.mxu2 %v728_v10  ;;  %v820_v10 = vld [vmem:[#allocation16 + $0x60] sm:$0xff]  ;;  %v5402_v20 = vld [vmem:[#allocation7 + $0x70] sm:$0xff]  ;;  %v815_v23 = vld [vmem:[#allocation16 + $0x38] sm:$0xff] }
  0x59   :  { %829 = vmatpush.msra.mxu3 %v822_v5  ;;  %v812_v29 = vld [vmem:[#allocation16 + $0x20] sm:$0xff]  ;;  %v682_v32 = vld [vmem:[#allocation8 + $0x78] sm:$0xff]  ;;  %v810_v35 = vld [vmem:[#allocation16 + $0x10] sm:$0xff] }
  0x5a   :  { %754 = vmatpush.msra.mxu2 %v727_v11  ;;  %v5399_v11 = vld [vmem:[#allocation7 + $0x68] sm:$0xff]  ;;  %v5408_v41 = vld [vmem:[#allocation10] sm:$0xff]  ;;  %v419_v53 = vld [vmem:[#allocation13 + $0xd0] sm:$0xff] }
  0x5b   :  { %830 = vmatpush.msra.mxu3 %v821_v7  ;;  %v809_v38 = vld [vmem:[#allocation16 + $0x8] sm:$0xff]  ;;  %v407_v2 = vld [vmem:[#allocation13 + $0x70] sm:$0xff] }
  0x5c   :  { %755 = vmatpush.msra.mxu2 %v726_v12  ;;  %v680_v12 = vld [vmem:[#allocation8 + $0x68] sm:$0xff]  ;;  %v403_v7 = vld [vmem:[#allocation13 + $0x50] sm:$0xff] }
  0x5d   :  { %831 = vmatpush.msra.mxu3 %v820_v10  ;;  %v5417_v46 = vld [vmem:[#allocation10 + $0x8] sm:$0xff]  ;;  %v401_v10 = vld [vmem:[#allocation13 + $0x40] sm:$0xff] }
  0x5e   :  { %756 = vmatpush.msra.mxu2 %v725_v13  ;;  %v819_v13 = vld [vmem:[#allocation16 + $0x58] sm:$0xff] }
  0x5f   :  { %832 = vmatpush.msra.mxu3 %v819_v13 }
  0x60   :  { %757 = vmatpush.msra.mxu2 %v724_v16  ;;  %v696_v16 = vadd.f32 %v680_v12, %v5399_v11  ;;  %v399_v12 = vld [vmem:[#allocation13 + $0x30] sm:$0xff] }
  0x61   :  { %833 = vmatpush.msra.mxu3 %v818_v15 }
  0x62   :  { %758 = vmatpush.msra.mxu2 %v723_v17  ;;  %v817_v17 = vld [vmem:[#allocation16 + $0x48] sm:$0xff] }
  0x63   :  { %759 = vmatmul.f32.vlgmr.msra.gmra.mxu2 %v683_v18  ;;  %834 = vmatpush.msra.mxu3 %v817_v17  ;;  %v816_v18 = vld [vmem:[#allocation16 + $0x40] sm:$0xff]  ;;  %v395_v17 = vld [vmem:[#allocation13 + $0x10] sm:$0xff] }
  0x64   :  { %913 = vmatpush.msrb.mxu2 %v908_v43 }
  0x65   :  { %835 = vmatpush.msra.mxu3 %v816_v18  ;;  %v5449_v18 = vld [vmem:[#allocation10 + $0x28] sm:$0xff] }
  0x66   :  { %914 = vmatpush.msrb.mxu2 %v907_v44  ;;  %v5415_v44 = vld [vmem:[%s8026_s8] ss:$0 sm:$0xff] }
  0x67   :  { %836 = vmatpush.msra.mxu3 %v815_v23  ;;  %v297_v23 = vld [vmem:[#allocation2] sm:$0xff] }
  0x68   :  { %915 = vmatpush.msrb.mxu2 %v906_v47  ;;  %v708_v47 = vld [vmem:[#allocation11 + $0x8] sm:$0xff] }
  0x6a   :  { %916 = vmatpush.msrb.mxu2 %v905_v49  ;;  %v423_v49 = vld [vmem:[#allocation13 + $0xf0] sm:$0xff] }
  0x6b   :  { %762 = vmatmul.f32.gmra.mxu2 %v684_v21  ;;  %v681_v21 = vld [vmem:[#allocation8 + $0x70] sm:$0xff]  ;;  %425 = vmatpush.msra.mxu0 %v423_v49 }
  0x6c   :  { %917 = vmatpush.msrb.mxu2 %v904_v50  ;;  %v697_v26 = vadd.f32 %v681_v21, %v5402_v20  ;;  %v421_v50 = vld [vmem:[#allocation13 + $0xe0] sm:$0xff]  ;;  %v712_v21 = vld [vmem:[#allocation11 + $0x28] sm:$0xff] }
  0x6d   :  { %426 = vmatpush.msra.mxu0 %v421_v50 }
  0x6e   :  { %918 = vmatpush.msrb.mxu2 %v903_v51 }
  0x6f   :  { %427 = vmatpush.msra.mxu0 %v419_v53  ;;  %v332_v53 = vld [vmem:[#allocation5 + $0x18] sm:$0xff] }
  0x70   :  { %919 = vmatpush.msrb.mxu2 %v902_v54  ;;  %v5425_v54 = vld [vmem:[#allocation10 + $0x10] sm:$0xff] }
  0x72   :  { %920 = vmatpush.msrb.mxu2 %v901_v56 }
  0x73   :  { %765 = vmatmul.f32.gmra.mxu2 %v685_v24  ;;  %v814_v24 = vld [vmem:[#allocation16 + $0x30] sm:$0xff] }
  0x74   :  { %921 = vmatpush.msrb.mxu2 %v900_v57  ;;  %837 = vmatpush.msra.mxu3 %v814_v24  ;;  %v415_v57 = vld [vmem:[#allocation13 + $0xb0] sm:$0xff]  ;;  %v329_v24 = vld [vmem:[#allocation5] sm:$0xff] }
  0x76   :  { %922 = vmatpush.msrb.mxu2 %v899_v58 }
  0x78   :  { %923 = vmatpush.msrb.mxu2 %v898_v61  ;;  %v413_v61 = vld [vmem:[#allocation13 + $0xa0] sm:$0xff] }
  0x7a   :  { %924 = vmatpush.msrb.mxu2 %v897_v63  ;;  %v5433_v63 = vld [vmem:[#allocation10 + $0x18] sm:$0xff] }
  0x7b   :  { %768 = vmatmul.f32.gmra.mxu2 %v686_v27  ;;  %v813_v27 = vld [vmem:[#allocation16 + $0x28] sm:$0xff] }
  0x7c   :  { %925 = vmatpush.msrb.mxu2 %v896_v0  ;;  %838 = vmatpush.msra.mxu3 %v813_v27  ;;  %v710_v0 = vld [vmem:[#allocation11 + $0x18] sm:$0xff]  ;;  %v5453_v27 = vadd.f32 %v329_v24, %v297_v23 }
  0x7d   :  { %v718_v5 = vadd.f32 %v710_v0, %v5433_v63  ;;  %v5493_v0 = vld [vmem:[#allocation23 + $0x68] sm:$0xff]  ;;  %v336_v23 = vld [vmem:[#allocation5 + $0x38] sm:$0xff] }
  0x7e   :  { %926 = vmatpush.msrb.mxu2 %v895_v1  ;;  %839 = vmatpush.msra.mxu3 %v812_v29  ;;  %v409_v1 = vld [vmem:[#allocation13 + $0x80] sm:$0xff]  ;;  %v720_v29 = vadd.f32 %v712_v21, %v5449_v18  ;;  %v304_v21 = vld [vmem:[#allocation2 + $0x38] sm:$0xff] }
  0x80   :  { %927 = vmatpush.msrb.mxu2 %v894_v6  ;;  %v405_v6 = vld [vmem:[#allocation13 + $0x60] sm:$0xff] }
  0x82   :  { %928 = vmatpush.msrb.mxu2 %v893_v9  ;;  %v711_v9 = vld [vmem:[#allocation11 + $0x20] sm:$0xff] }
  0x83   :  { %771 = vmatmul.f32.gmra.mxu2 %v687_v30  ;;  %v5405_v30 = vld [vmem:[#allocation7 + $0x78] sm:$0xff] }
  0x8b   :  { %774 = vmatmul.f32.gmra.mxu2 %v688_v33  ;;  %v811_v33 = vld [vmem:[#allocation16 + $0x18] sm:$0xff] }
  0x8c   :  { %840 = vmatpush.msra.mxu3 %v811_v33  ;;  %v713_v33 = vld [vmem:[#allocation11 + $0x30] sm:$0xff] }
  0x8e   :  { %841 = vmatpush.msra.mxu3 %v810_v35  ;;  %v298_v35 = vld [vmem:[#allocation2 + $0x8] sm:$0xff] }
  0x90   :  { %842 = vmatpush.msra.mxu3 %v809_v38 }
  0x93   :  { %777 = vmatmul.f32.gmra.mxu2 %v689_v36  ;;  %v698_v36 = vadd.f32 %v682_v32, %v5405_v30  ;;  %v5458_v32 = vld [vmem:[#allocation10 + $0x30] sm:$0xff] }
  0x9b   :  { %780 = vmatmul.f32.gmra.mxu2 %v690_v39  ;;  %v808_v39 = vld [vmem:[#allocation16] sm:$0xff] }
  0x9c   :  { %843 = vmatpush.msra.mxu3 %v808_v39 }
  0x9d   :  { %844 = vmatmul.f32.vlgmr.msra.gmra.mxu3 %v5360_v14  ;;  %v716_v14 = vadd.f32 %v708_v47, %v5417_v46  ;;  %v299_v47 = vld [vmem:[#allocation2 + $0x10] sm:$0xff] }
  0xa3   :  { %783 = vmatmul.f32.gmra.mxu2 %v691_v42  ;;  %v707_v42 = vld [vmem:[#allocation11] sm:$0xff] }
  0xa4   :  { %v715_v43 = vadd.f32 %v707_v42, %v5408_v41  ;;  %v721_v42 = vadd.f32 %v713_v33, %v5458_v32  ;;  %v5545_v33 = vld [vmem:[#allocation23 + $0x10] sm:$0xff] }
  0xa5   :  { %847 = vmatmul.f32.gmra.mxu3 %v5363_v19  ;;  %v417_v19 = vld [vmem:[#allocation13 + $0xc0] sm:$0xff] }
  0xa6   :  { %428 = vmatpush.msra.mxu0 %v417_v19  ;;  %v301_v19 = vld [vmem:[#allocation2 + $0x20] sm:$0xff] }
  0xa8   :  { %429 = vmatpush.msra.mxu0 %v415_v57  ;;  %v333_v57 = vld [vmem:[#allocation5 + $0x20] sm:$0xff] }
  0xaa   :  { %430 = vmatpush.msra.mxu0 %v413_v61  ;;  %v5486_v61 = vld [vmem:[#allocation23 + $0x78] sm:$0xff] }
  0xab   :  { %786 = vmatmul.f32.gmra.mxu2 %v692_v48 }
  0xac   :  { %1671 = vmatpush.msra.mxu2 %v5486_v61 }
  0xad   :  { %850 = vmatmul.f32.gmra.mxu3 %v5366_v22 }
  0xb3   :  { %789 = vmatmul.f32.gmra.mxu2 %v693_v55  ;;  %v709_v55 = vld [vmem:[#allocation11 + $0x10] sm:$0xff] }
  0xb4   :  { %v717_v60 = vadd.f32 %v709_v55, %v5425_v54 }
  0xb5   :  { %853 = vmatmul.f32.gmra.mxu3 %v5369_v25 }
  0xbb   :  { %792 = vmatmul.f32.gmra.mxu2 %v694_v62  ;;  %v411_v62 = vld [vmem:[#allocation13 + $0x90] sm:$0xff] }
  0xbc   :  { %431 = vmatpush.msra.mxu0 %v411_v62  ;;  %v5488_v62 = vld [vmem:[#allocation23 + $0x70] sm:$0xff] }
  0xbd   :  { %856 = vmatmul.f32.gmra.mxu3 %v5372_v28  ;;  %1672 = vmatpush.msra.mxu2 %v5488_v62 }
  0xbe   :  { %432 = vmatpush.msra.mxu0 %v409_v1 }
  0xbf   :  { %1673 = vmatpush.msra.mxu2 %v5493_v0 }
  0xc0   :  { %433 = vmatpush.msra.mxu0 %v407_v2  ;;  %v5499_v2 = vld [vmem:[#allocation23 + $0x60] sm:$0xff] }
  0xc1   :  { %1674 = vmatpush.msra.mxu2 %v5499_v2 }
  0xc2   :  { %434 = vmatpush.msra.mxu0 %v405_v6  ;;  %v5503_v6 = vld [vmem:[#allocation23 + $0x58] sm:$0xff] }
  0xc3   :  { %795 = vmatmul.f32.gmra.mxu2 %v695_v8  ;;  %v5441_v8 = vld [vmem:[#allocation10 + $0x20] sm:$0xff] }
  0xc4   :  { %435 = vmatpush.msra.mxu0 %v403_v7  ;;  %v719_v15 = vadd.f32 %v711_v9, %v5441_v8  ;;  %1675 = vmatpush.msra.mxu2 %v5503_v6  ;;  %v5511_v7 = vld [vmem:[#allocation23 + $0x48] sm:$0xff]  ;;  %v303_v9 = vld [vmem:[#allocation2 + $0x30] sm:$0xff] }
  0xc5   :  { %859 = vmatmul.f32.gmra.mxu3 %v5375_v31  ;;  %v5467_v31 = vld [vmem:[#allocation10 + $0x38] sm:$0xff] }
  0xc6   :  { %436 = vmatpush.msra.mxu0 %v401_v10 }
  0xc8   :  { %437 = vmatpush.msra.mxu0 %v399_v12  ;;  %v5517_v12 = vld [vmem:[#allocation23 + $0x40] sm:$0xff] }
  0xcb   :  { %798 = vmatmul.f32.gmra.mxu2 %v696_v16  ;;  %v397_v16 = vld [vmem:[#allocation13 + $0x20] sm:$0xff] }
  0xcc   :  { %438 = vmatpush.msra.mxu0 %v397_v16  ;;  %v5526_v16 = vld [vmem:[#allocation23 + $0x30] sm:$0xff] }
  0xcd   :  { %862 = vmatmul.f32.gmra.mxu3 %v5378_v34  ;;  %v300_v34 = vld [vmem:[#allocation2 + $0x18] sm:$0xff] }
  0xce   :  { %439 = vmatpush.msra.mxu0 %v395_v17  ;;  %v5530_v17 = vld [vmem:[#allocation23 + $0x28] sm:$0xff] }
  0xd3   :  { %801 = vmatmul.f32.gmra.mxu2 %v697_v26  ;;  %v393_v26 = vld [vmem:[#allocation13] sm:$0xff] }
  0xd4   :  { %440 = vmatpush.msra.mxu0 %v393_v26  ;;  %v5535_v26 = vld [vmem:[#allocation23 + $0x20] sm:$0xff] }
  0xd5   :  { %441 = vmatmul.f32.vlgmr.msra.gmra.mxu0 %v5453_v27  ;;  %865 = vmatmul.f32.gmra.mxu3 %v5381_v37  ;;  %v5484_v37 = vadd.f32 %v333_v57, %v301_v19  ;;  %v307_v19 = vld [vmem:[#allocation2 + $0x50] sm:$0xff] }
  0xd6   :  { %v339_v57 = vld [vmem:[#allocation5 + $0x50] sm:$0xff] }
  0xdb   :  { %804 = vmatmul.f32.gmra.mxu2 %v698_v36  ;;  %v330_v36 = vld [vmem:[#allocation5 + $0x8] sm:$0xff] }
  0xdc   :  { %v5462_v39 = vadd.f32 %v330_v36, %v298_v35  ;;  %v5548_v35 = vld [vmem:[#allocation23 + $0x8] sm:$0xff]  ;;  %v305_v36 = vld [vmem:[#allocation2 + $0x40] sm:$0xff] }
  0xdd   :  { %868 = vmatmul.f32.gmra.mxu3 %v5384_v40  ;;  %v302_v40 = vld [vmem:[#allocation2 + $0x28] sm:$0xff] }
  0xde   :  { %444 = vmatmul.f32.gmra.mxu0 %v5462_v39 }
  0xe3   :  { %929 = vmatmul.f32.vlgmr.msrb.gmra.mxu2 %v715_v43  ;;  %v714_v43 = vld [vmem:[#allocation11 + $0x38] sm:$0xff] }
  0xe5   :  { %871 = vmatmul.f32.gmra.mxu3 %v5387_v45  ;;  %v5508_v45 = vld [vmem:[#allocation23 + $0x50] sm:$0xff] }
  0xe6   :  { %v760_v48 = vpop.f32.mrf.mxu2  ;;  %1676 = vmatpush.msra.mxu2 %v5508_v45 }
  0xe7   :  { %v5421_v51 = vadd.f32 %v5415_v44, %v760_v48  ;;  %v331_v48 = vld [vmem:[#allocation5 + $0x10] sm:$0xff] }
  0xe8   :  { %v5471_v50 = vadd.f32 %v331_v48, %v299_v47  ;;  %1677 = vmatpush.msra.mxu2 %v5511_v7  ;;  %v306_v48 = vld [vmem:[#allocation2 + $0x48] sm:$0xff] }
  0xe9   :  { %1591 = vmax.xlane.f32.xlu0 %v5421_v51 }
  0xea   :  { %447 = vmatmul.f32.gmra.mxu0 %v5471_v50  ;;  %1678 = vmatpush.msra.mxu2 %v5517_v12 }
  0xeb   :  { %932 = vmatmul.f32.gmra.mxu2 %v716_v14  ;;  %v722_v14 = vadd.f32 %v714_v43, %v5467_v31 }
  0xed   :  { %874 = vmatmul.f32.gmra.mxu3 %v5390_v52 }
  0xee   :  { %v763_v56 = vpop.f32.mrf.mxu2 }
  0xef   :  { %v5429_v58 = vadd.f32 %v5415_v44, %v763_v56  ;;  %v5478_v56 = vadd.f32 %v332_v53, %v300_v34 }
  0xf1   :  { %1593 = vmax.xlane.f32.xlu0 %v5429_v58 }
  0xf2   :  { %450 = vmatmul.f32.gmra.mxu0 %v5478_v56 }
  0xf3   :  { %935 = vmatmul.f32.gmra.mxu2 %v717_v60 }
  0xf5   :  { %877 = vmatmul.f32.gmra.mxu3 %v5393_v59  ;;  %v5537_v59 = vadd.f32 %v336_v23, %v304_v21  ;;  %v340_v21 = vld [vmem:[#allocation5 + $0x58] sm:$0xff] }
  0xf6   :  { %v766_v22 = vpop.f32.mrf.mxu2 }
  0xf7   :  { %v5437_v4 = vadd.f32 %v5415_v44, %v766_v22  ;;  %v334_v22 = vld [vmem:[#allocation5 + $0x28] sm:$0xff]  ;;  %8206 = vst [vmem:[#allocation36_spill] sm:$0xff] %v5537_v59 }
  0xf9   :  { %1595 = vmax.xlane.f32.xlu1 %v5437_v4 }
  0xfa   :  { %453 = vmatmul.f32.gmra.mxu0 %v5484_v37 }
  0xfb   :  { %938 = vmatmul.f32.gmra.mxu2 %v718_v5  ;;  %v5501_v5 = vadd.f32 %v334_v22, %v302_v40  ;;  %v5568_v22 = vadd.f32 %v339_v57, %v307_v19  ;;  %v341_v19 = vld [vmem:[#allocation5 + $0x60] sm:$0xff] }
  0xfd   :  { %880 = vmatmul.f32.gmra.mxu3 %v5396_v3  ;;  %v5553_v3 = vld [vmem:[#allocation23] sm:$0xff]  ;;  %8212 = vst [vmem:[#allocation42_spill] sm:$0xff] %v5568_v22 }
  0xfe   :  { %v769_v25 = vpop.f32.mrf.mxu2 }
  0xff   :  { %v5445_v13 = vadd.f32 %v5415_v44, %v769_v25  ;;  %v335_v25 = vld [vmem:[#allocation5 + $0x30] sm:$0xff] }
 0x100   :  { %v5519_v52 = vadd.f32 %v335_v25, %v303_v9  ;;  %v308_v25 = vld [vmem:[#allocation2 + $0x58] sm:$0xff] }
 0x101   :  { %1597 = vmax.xlane.f32.xlu1 %v5445_v13 }
 0x102   :  { %456 = vmatmul.f32.gmra.mxu0 %v5501_v5  ;;  %8205 = vst [vmem:[#allocation35_spill] sm:$0xff] %v5519_v52 }
 0x103   :  { %941 = vmatmul.f32.gmra.mxu2 %v719_v15  ;;  %v5521_v15 = vld [vmem:[#allocation23 + $0x38] sm:$0xff] }
 0x104   :  { %1679 = vmatpush.msra.mxu2 %v5521_v15 }
 0x105   :  { %883 = vmatmul.f32.gmra.mxu3 %v5399_v11 }
 0x106   :  { %v5451_v28 = vpop.f32.mrf.mxu2  ;;  %1680 = vmatpush.msra.mxu2 %v5526_v16 }
 0x108   :  { %1681 = vmatpush.msra.mxu2 %v5530_v17 }
 0x10a   :  { %459 = vmatmul.f32.gmra.mxu0 %v5519_v52  ;;  %1682 = vmatpush.msra.mxu2 %v5535_v26 }
 0x10b   :  { %944 = vmatmul.f32.gmra.mxu2 %v720_v29  ;;  %v5542_v29 = vld [vmem:[#allocation23 + $0x18] sm:$0xff] }
 0x10c   :  { %1683 = vmatpush.msra.mxu2 %v5542_v29 }
 0x10d   :  { %886 = vmatmul.f32.gmra.mxu3 %v5402_v20  ;;  %v5575_v20 = vadd.f32 %v340_v21, %v308_v25  ;;  %v969_v25 = vld [vmem:[#allocation19 + $0x78] sm:$0xff] }
 0x10e   :  { %v5460_v38 = vpop.f32.mrf.mxu2  ;;  %1684 = vmatpush.msra.mxu2 %v5545_v33  ;;  %974 = vmatpush.msrb.mxu3 %v969_v25 }
 0x10f   :  { %8214 = vst [vmem:[#allocation44_spill] sm:$0xff] %v5575_v20 }
 0x110   :  { %1685 = vmatpush.msra.mxu2 %v5548_v35 }
 0x112   :  { %462 = vmatmul.f32.gmra.mxu0 %v5537_v59  ;;  %1686 = vmatpush.msra.mxu2 %v5553_v3 }
 0x113   :  { %947 = vmatmul.f32.gmra.mxu2 %v721_v42  ;;  %v337_v42 = vld [vmem:[#allocation5 + $0x40] sm:$0xff] }
 0x114   :  { %v5555_v47 = vadd.f32 %v337_v42, %v305_v36 }
 0x115   :  { %889 = vmatmul.f32.gmra.mxu3 %v5405_v30  ;;  %v5583_v30 = vld [vmem:[%s8030_s12] ss:$0 sm:$0xff] }
 0x116   :  { %v5469_v49 = vpop.f32.mrf.mxu2  ;;  %8208 = vst [vmem:[#allocation38_spill] sm:$0xff] %v5555_v47 }
 0x11a   :  { %465 = vmatmul.f32.gmra.mxu0 %v5555_v47 }
 0x11b   :  { %950 = vmatmul.f32.gmra.mxu2 %v722_v14  ;;  %v338_v14 = vld [vmem:[#allocation5 + $0x48] sm:$0xff] }
 0x11c   :  { %v5562_v53 = vadd.f32 %v338_v14, %v306_v48  ;;  %v309_v14 = vld [vmem:[#allocation2 + $0x60] sm:$0xff] }
 0x11e   :  { %v5476_v55 = vpop.f32.mrf.mxu2  ;;  %8210 = vst [vmem:[#allocation40_spill] sm:$0xff] %v5562_v53 }
 0x120   :  { %v5578_v42 = vpop.f32.mrf.mxu3 }
 0x122   :  { %468 = vmatmul.f32.gmra.mxu0 %v5562_v53  ;;  %v961_v53 = vld [vmem:[#allocation19 + $0x38] sm:$0xff] }
 0x126   :  { %v5482_v60 = vpop.f32.mrf.mxu2 }
 0x12a   :  { %471 = vmatmul.f32.gmra.mxu0 %v5568_v22 }
 0x12e   :  { %v5497_v1 = vpop.f32.mrf.mxu2 }
 0x132   :  { %474 = vmatmul.f32.gmra.mxu0 %v5575_v20 }
 0x136   :  { %v5515_v10 = vpop.f32.mrf.mxu2 }
 0x13e   :  { %v5533_v24 = vpop.f32.mrf.mxu2 }
 0x146   :  { %v5551_v43 = vpop.f32.mrf.mxu2 }
 0x147   :  { %8207 = vst [vmem:[#allocation37_spill] sm:$0xff] %v5551_v43  ;;  %v342_v43 = vld [vmem:[#allocation5 + $0x68] sm:$0xff] }
 0x14e   :  { %v5560_v34 = vpop.f32.mrf.mxu2 }
 0x14f   :  { %8209 = vst [vmem:[#allocation39_spill] sm:$0xff] %v5560_v34  ;;  %v967_v34 = vld [vmem:[#allocation19 + $0x68] sm:$0xff] }
 0x156   :  { %v5566_v40 = vpop.f32.mrf.mxu2 }
 0x157   :  { %8211 = vst [vmem:[#allocation41_spill] sm:$0xff] %v5566_v40  ;;  %v965_v40 = vld [vmem:[#allocation19 + $0x58] sm:$0xff] }
 0x15c   :  { %v1592_v11 = vpop.xlane.xlu0 %1591 }
 0x15d   :  { %v1623_v9 = vsub.f32 %v5421_v51, %v1592_v11  ;;  %v5586_v11 = vadd.f32 %v341_v19, %v309_v14 }
 0x15e   :  { %v5573_v23 = vpop.f32.mrf.mxu2 }
 0x15f   :  { %8213 = vst [vmem:[#allocation43_spill] sm:$0xff] %v5573_v23  ;;  %v1639_v36 = vmul.f32 1.442695, %v1623_v9  ;;  %477 = vmatmul.f32.gmra.mxu0 %v5586_v11  ;;  %v966_v23 = vld [vmem:[#allocation19 + $0x60] sm:$0xff] }
 0x160   :  { %8215 = vst [vmem:[#allocation45_spill] sm:$0xff] %v5586_v11 }
 0x161   :  { %4453 = vpow2.f32 %v1639_v36 }
 0x164   :  { %v1594_v48 = vpop.xlane.xlu0 %1593 }
 0x165   :  { %v1624_v51 = vsub.f32 %v5429_v58, %v1594_v48  ;;  %v848_v58 = vpop.f32.mrf.mxu3  ;;  %v968_v48 = vld [vmem:[#allocation19 + $0x70] sm:$0xff] }
 0x166   :  { %v930_v57 = vpop.f32.mrf.mxu2  ;;  %975 = vmatpush.msrb.mxu3 %v968_v48 }
 0x167   :  { %v5588_v9 = vpop.eup %4453  ;;  %v1641_v21 = vmul.f32 1.442695, %v1624_v51  ;;  %v5591_v36 = vadd.f32 %v5583_v30, %v930_v57  ;;  %v310_v51 = vld [vmem:[#allocation2 + $0x68] sm:$0xff] }
 0x168   :  { %1687 = vmatmul.f32.vlgmr.msra.gmra.mxu2 %v5588_v9  ;;  %976 = vmatpush.msrb.mxu3 %v967_v34  ;;  %v5597_v25 = vadd.f32 %v342_v43, %v310_v51  ;;  %v964_v34 = vld [vmem:[#allocation19 + $0x50] sm:$0xff]  ;;  %v963_v43 = vld [vmem:[#allocation19 + $0x48] sm:$0xff] }
 0x169   :  { %4455 = vpow2.f32 %v1641_v21  ;;  %1976 = vmax.xlane.f32.xlu0 %v5591_v36  ;;  %v343_v51 = vld [vmem:[#allocation5 + $0x70] sm:$0xff] }
 0x16a   :  { %8216 = vst [vmem:[#allocation46_spill] sm:$0xff] %v5597_v25  ;;  %977 = vmatpush.msrb.mxu3 %v966_v23  ;;  %480 = vmatmul.f32.gmra.mxu0 %v5597_v25  ;;  %v962_v23 = vld [vmem:[#allocation19 + $0x40] sm:$0xff] }
 0x16c   :  { %v1596_v14 = vpop.xlane.xlu1 %1595  ;;  %978 = vmatpush.msrb.mxu3 %v965_v40  ;;  %v4450_v40 = vld [vmem:[%s8028_s10] ss:$0 sm:$0xff] }
 0x16d   :  { %v1625_v19 = vsub.f32 %v5437_v4, %v1596_v14  ;;  %v851_v4 = vpop.f32.mrf.mxu3  ;;  %v849_v52 = vadd.f32 %v4450_v40, %v848_v58  ;;  %v313_v58 = vld [vmem:[#allocation2 + $0x80] sm:$0xff] }
 0x16e   :  { %v933_v57 = vpop.f32.mrf.mxu2  ;;  %979 = vmatpush.msrb.mxu3 %v964_v34 }
 0x16f   :  { %v5599_v20 = vpop.eup %4455  ;;  %v1643_v21 = vmul.f32 1.442695, %v1625_v19  ;;  %v5602_v11 = vadd.f32 %v5583_v30, %v933_v57  ;;  %v311_v19 = vld [vmem:[#allocation2 + $0x70] sm:$0xff] }
 0x170   :  { %1690 = vmatmul.f32.gmra.mxu2 %v5599_v20  ;;  %980 = vmatpush.msrb.mxu3 %v963_v43  ;;  %v5608_v22 = vadd.f32 %v343_v51, %v311_v19  ;;  %v344_v19 = vld [vmem:[#allocation5 + $0x78] sm:$0xff] }
 0x171   :  { %4457 = vpow2.f32 %v1643_v21  ;;  %1978 = vmax.xlane.f32.xlu1 %v5602_v11 }
 0x172   :  { %8217 = vst [vmem:[#allocation47_spill] sm:$0xff] %v5608_v22  ;;  %981 = vmatpush.msrb.mxu3 %v962_v23  ;;  %483 = vmatmul.f32.gmra.mxu0 %v5608_v22  ;;  %v958_v23 = vld [vmem:[#allocation19 + $0x20] sm:$0xff] }
 0x174   :  { %v1598_v48 = vpop.xlane.xlu1 %1597  ;;  %982 = vmatpush.msrb.mxu3 %v961_v53  ;;  %v957_v53 = vld [vmem:[#allocation19 + $0x18] sm:$0xff] }
 0x175   :  { %v1626_v14 = vsub.f32 %v5445_v13, %v1598_v48  ;;  %v960_v13 = vld [vmem:[#allocation19 + $0x30] sm:$0xff]  ;;  %v854_v34 = vpop.f32.mrf.mxu3  ;;  %v959_v48 = vld [vmem:[#allocation19 + $0x28] sm:$0xff] }
 0x176   :  { %v936_v57 = vpop.f32.mrf.mxu2  ;;  %v855_v43 = vadd.f32 %v4450_v40, %v854_v34  ;;  %983 = vmatpush.msrb.mxu3 %v960_v13  ;;  %v956_v13 = vld [vmem:[#allocation19 + $0x10] sm:$0xff]  ;;  %v345_v34 = vld [vmem:[#allocation5 + $0x80] sm:$0xff] }
 0x177   :  { %v5610_v25 = vpop.eup %4457  ;;  %v1645_v21 = vmul.f32 1.442695, %v1626_v14  ;;  %v5613_v47 = vadd.f32 %v5583_v30, %v936_v57  ;;  %v312_v14 = vld [vmem:[#allocation2 + $0x78] sm:$0xff]  ;;  %v852_v57 = vadd.f32 %v4450_v40, %v851_v4  ;;  %v846_v4 = vadd.f32 %v4450_v40, %v5578_v42  ;;  %v346_v42 = vld [vmem:[#allocation5 + $0x88] sm:$0xff] }
 0x178   :  { %1693 = vmatmul.f32.gmra.mxu2 %v5610_v25  ;;  %2303 = vmatpush.msrb.mxu0 %v855_v43  ;;  %v5621_v59 = vadd.f32 %v344_v19, %v312_v14  ;;  %v955_v43 = vld [vmem:[#allocation19 + $0x8] sm:$0xff]  ;;  %v954_v14 = vld [vmem:[#allocation19] sm:$0xff]  ;;  %v5634_v19 = vadd.f32 %v345_v34, %v313_v58 }
 0x179   :  { %4459 = vpow2.f32 %v1645_v21  ;;  %1980 = vmax.xlane.f32.xlu0 %v5613_v47  ;;  %984 = vmatpush.msrb.mxu3 %v959_v48  ;;  %v5632_v48 = vpop.f32.mrf.mxu0 }
 0x17a   :  { %2304 = vmatpush.msrb.mxu0 %v852_v57 }
 0x17b   :  { %985 = vmatpush.msrb.mxu3 %v958_v23  ;;  %486 = vmatmul.f32.gmra.mxu0 %v5621_v59 }
 0x17c   :  { %2305 = vmatpush.msrb.mxu0 %v849_v52  ;;  %v314_v52 = vld [vmem:[#allocation2 + $0x88] sm:$0xff] }
 0x17d   :  { %986 = vmatpush.msrb.mxu3 %v957_v53  ;;  %v5645_v23 = vadd.f32 %v346_v42, %v314_v52  ;;  %v319_v52 = vld [vmem:[#allocation2 + $0xb0] sm:$0xff] }
 0x17e   :  { %v939_v51 = vpop.f32.mrf.mxu2  ;;  %2306 = vmatpush.msrb.mxu0 %v846_v4 }
 0x17f   :  { %v5623_v22 = vpop.eup %4459  ;;  %v5626_v21 = vadd.f32 %v5583_v30, %v939_v51  ;;  %987 = vmatpush.msrb.mxu3 %v956_v13 }
 0x180   :  { %1696 = vmatmul.f32.gmra.mxu2 %v5623_v22 }
 0x181   :  { %1982 = vmax.xlane.f32.xlu1 %v5626_v21  ;;  %988 = vmatpush.msrb.mxu3 %v955_v43  ;;  %v5643_v40 = vpop.f32.mrf.mxu0 }
 0x183   :  { %989 = vmatpush.msrb.mxu3 %v954_v14  ;;  %489 = vmatmul.f32.gmra.mxu0 %v5634_v19 }
 0x184   :  { %990 = vmatmul.f32.vlgmr.msrb.gmra.mxu3 %v5408_v41  ;;  %v315_v41 = vld [vmem:[#allocation2 + $0x90] sm:$0xff] }
 0x185   :  { %2016 = vmatpush.msra.mxu3 %v5486_v61  ;;  %v347_v61 = vld [vmem:[#allocation5 + $0x90] sm:$0xff] }
 0x186   :  { %v942_v51 = vpop.f32.mrf.mxu2  ;;  %v5658_v58 = vadd.f32 %v347_v61, %v315_v41 }
 0x187   :  { %v5637_v57 = vadd.f32 %v5583_v30, %v942_v51  ;;  %2017 = vmatpush.msra.mxu3 %v5488_v62  ;;  %v5708_v51 = vadd.f32 %v5415_v44, %v5460_v38 }
 0x189   :  { %1984 = vmax.xlane.f32.xlu0 %v5637_v57  ;;  %2018 = vmatpush.msra.mxu3 %v5493_v0  ;;  %v5656_v13 = vpop.f32.mrf.mxu0  ;;  %v348_v0 = vld [vmem:[#allocation5 + $0x98] sm:$0xff] }
 0x18b   :  { %492 = vmatmul.f32.gmra.mxu0 %v5645_v23  ;;  %2019 = vmatpush.msra.mxu3 %v5499_v2 }
 0x18c   :  { %993 = vmatmul.f32.gmra.mxu3 %v5417_v46  ;;  %v316_v46 = vld [vmem:[#allocation2 + $0x98] sm:$0xff] }
 0x18d   :  { %2020 = vmatpush.msra.mxu3 %v5503_v6  ;;  %v5670_v34 = vadd.f32 %v348_v0, %v316_v46  ;;  %v320_v46 = vld [vmem:[#allocation2 + $0xb8] sm:$0xff] }
 0x18e   :  { %v945_v53 = vpop.f32.mrf.mxu2  ;;  %v352_v0 = vld [vmem:[#allocation5 + $0xb8] sm:$0xff] }
 0x18f   :  { %v5649_v4 = vadd.f32 %v5583_v30, %v945_v53  ;;  %2021 = vmatpush.msra.mxu3 %v5508_v45  ;;  %v349_v45 = vld [vmem:[#allocation5 + $0xa0] sm:$0xff] }
 0x191   :  { %1986 = vmax.xlane.f32.xlu1 %v5649_v4  ;;  %2022 = vmatpush.msra.mxu3 %v5511_v7  ;;  %v5668_v2 = vpop.f32.mrf.mxu0 }
 0x193   :  { %495 = vmatmul.f32.gmra.mxu0 %v5658_v58  ;;  %2023 = vmatpush.msra.mxu3 %v5517_v12 }
 0x194   :  { %996 = vmatmul.f32.gmra.mxu3 %v5425_v54  ;;  %v317_v54 = vld [vmem:[#allocation2 + $0xa0] sm:$0xff] }
 0x195   :  { %2024 = vmatpush.msra.mxu3 %v5521_v15  ;;  %v5683_v12 = vadd.f32 %v349_v45, %v317_v54  ;;  %v1015_v15 = vmax.f32 %v5632_v48, %v5643_v40  ;;  %v5729_v54 = vadd.f32 %v352_v0, %v320_v46  ;;  %v5733_v45 = vadd.f32 %v5415_v44, %v5476_v55 }
 0x196   :  { %v5661_v62 = vpop.f32.mrf.mxu2  ;;  %v5744_v55 = vadd.f32 %v5415_v44, %v5482_v60  ;;  %v322_v60 = vld [vmem:[#allocation2 + $0xc8] sm:$0xff] }
 0x197   :  { %2025 = vmatpush.msra.mxu3 %v5526_v16  ;;  %v5690_v16 = vadd.f32 %v5415_v44, %v5451_v28 }
 0x199   :  { %2026 = vmatpush.msra.mxu3 %v5530_v17  ;;  %v5681_v7 = vpop.f32.mrf.mxu0  ;;  %v1016_v17 = vmax.f32 %v1015_v15, %v5656_v13 }
 0x19b   :  { %498 = vmatmul.f32.gmra.mxu0 %v5670_v34  ;;  %2027 = vmatpush.msra.mxu3 %v5535_v26  ;;  %v318_v26 = vld [vmem:[#allocation2 + $0xa8] sm:$0xff] }
 0x19c   :  { %999 = vmatmul.f32.gmra.mxu3 %v5433_v63  ;;  %v5695_v63 = vpop.f32.mrf.mxu3 }
 0x19d   :  { %2028 = vmatpush.msra.mxu3 %v5542_v29  ;;  %8218 = vst [vmem:[#allocation48_spill] sm:$0xff] %v5695_v63  ;;  %v1017_v29 = vmax.f32 %v1016_v17, %v5668_v2  ;;  %v358_v63 = vld [vmem:[#allocation5 + $0xe8] sm:$0xff] }
 0x19e   :  { %v951_v6 = vpop.f32.mrf.mxu2 }
 0x19f   :  { %v5674_v43 = vadd.f32 %v5583_v30, %v951_v6  ;;  %v350_v30 = vld [vmem:[#allocation5 + $0xa8] sm:$0xff]  ;;  %2029 = vmatpush.msra.mxu3 %v5545_v33  ;;  %v1018_v33 = vmax.f32 %v1017_v29, %v5681_v7 }
 0x1a0   :  { %v5702_v28 = vadd.f32 %v350_v30, %v318_v26  ;;  %v321_v26 = vld [vmem:[#allocation2 + $0xc0] sm:$0xff] }
 0x1a1   :  { %1990 = vmax.xlane.f32.xlu0 %v5674_v43  ;;  %v5700_v14 = vpop.f32.mrf.mxu0  ;;  %2030 = vmatpush.msra.mxu3 %v5548_v35  ;;  %v351_v35 = vld [vmem:[#allocation5 + $0xb0] sm:$0xff]  ;;  %v353_v30 = vld [vmem:[#allocation5 + $0xc0] sm:$0xff] }
 0x1a2   :  { %v5717_v53 = vadd.f32 %v351_v35, %v319_v52  ;;  %v1019_v38 = vmax.f32 %v1018_v33, %v5700_v14  ;;  %v5740_v33 = vadd.f32 %v353_v30, %v321_v26 }
 0x1a3   :  { %501 = vmatmul.f32.gmra.mxu0 %v5683_v12  ;;  %2031 = vmatpush.msra.mxu3 %v5553_v3  ;;  %v5722_v3 = vadd.f32 %v5415_v44, %v5469_v49 }
 0x1a4   :  { %1002 = vmatmul.f32.gmra.mxu3 %v5441_v8  ;;  %v5713_v8 = vpop.f32.mrf.mxu3 }
 0x1a5   :  { %8219 = vst [vmem:[#allocation49_spill] sm:$0xff] %v5713_v8 }
 0x1a9   :  { %1599 = vmax.xlane.f32.xlu0 %v5690_v16  ;;  %v460_v42 = vpop.f32.mrf.mxu0 }
 0x1aa   :  { %v1020_v61 = vmax.f32 %v1019_v38, %v460_v42 }
 0x1ab   :  { %504 = vmatmul.f32.gmra.mxu0 %v5702_v28 }
 0x1ac   :  { %1005 = vmatmul.f32.gmra.mxu3 %v5449_v18  ;;  %v5726_v41 = vpop.f32.mrf.mxu3 }
 0x1ad   :  { %8220 = vst [vmem:[#allocation50_spill] sm:$0xff] %v5726_v41 }
 0x1b1   :  { %1601 = vmax.xlane.f32.xlu0 %v5708_v51  ;;  %v463_v18 = vpop.f32.mrf.mxu0 }
 0x1b2   :  { %v1021_v6 = vmax.f32 %v1020_v61, %v463_v18 }
 0x1b3   :  { %507 = vmatmul.f32.gmra.mxu0 %v5717_v53 }
 0x1b4   :  { %1008 = vmatmul.f32.gmra.mxu3 %v5458_v32  ;;  %v1022_v49 = vrot.slane %v1021_v6, 4  ;;  %v5738_v17 = vpop.f32.mrf.mxu3 }
 0x1b5   :  { %8221 = vst [vmem:[#allocation51_spill] sm:$0xff] %v5738_v17 }
 0x1b6   :  { %v1023_v15 = vmax.f32 %v1021_v6, %v1022_v49  ;;  %v354_v49 = vld [vmem:[#allocation5 + $0xc8] sm:$0xff] }
 0x1b7   :  { %v5755_v30 = vadd.f32 %v354_v49, %v322_v60 }
 0x1b8   :  { %v1024_v32 = vrot.slane %v1023_v15, 2 }
 0x1b9   :  { %1603 = vmax.xlane.f32.xlu0 %v5722_v3 }
 0x1ba   :  { %v1025_v29 = vmax.f32 %v1023_v15, %v1024_v32 }
 0x1bb   :  { %510 = vmatmul.f32.gmra.mxu0 %v5729_v54 }
 0x1bc   :  { %1011 = vmatmul.f32.gmra.mxu3 %v5467_v31  ;;  %v1026_v52 = vrot.slane %v1025_v29, 1  ;;  %v5748_v38 = vpop.f32.mrf.mxu3 }
 0x1bd   :  { %8222 = vst [vmem:[#allocation52_spill] sm:$0xff] %v5748_v38 }
 0x1be   :  { %v1027_v35 = vmax.f32 %v1025_v29, %v1026_v52  ;;  %v5759_v29 = vadd.f32 %v5415_v44, %v5497_v1  ;;  %v323_v1 = vld [vmem:[#allocation2 + $0xd0] sm:$0xff] }
 0x1c0   :  { %v1119_v31 = vsub.f32 %v5632_v48, %v1027_v35  ;;  %v1121_v61 = vsub.f32 %v5643_v40, %v1027_v35  ;;  %v1123_v46 = vsub.f32 %v5656_v13, %v1027_v35  ;;  %v1125_v0 = vsub.f32 %v5668_v2, %v1027_v35 }
 0x1c1   :  { %1605 = vmax.xlane.f32.xlu0 %v5733_v45  ;;  %v1127_v6 = vsub.f32 %v5681_v7, %v1027_v35  ;;  %v1129_v48 = vsub.f32 %v5700_v14, %v1027_v35  ;;  %v1131_v13 = vsub.f32 %v460_v42, %v1027_v35  ;;  %v1133_v7 = vsub.f32 %v463_v18, %v1027_v35 }
 0x1c2   :  { %v1183_v15 = vmul.f32 1.442695, %v1119_v31  ;;  %v1187_v32 = vmul.f32 1.442695, %v1121_v61  ;;  %v1191_v26 = vmul.f32 1.442695, %v1123_v46  ;;  %v5774_v42 = vadd.f32 %v5415_v44, %v5515_v10 }
 0x1c3   :  { %513 = vmatmul.f32.gmra.mxu0 %v5740_v33  ;;  %v1195_v40 = vmul.f32 1.442695, %v1125_v0  ;;  %v1199_v2 = vmul.f32 1.442695, %v1127_v6  ;;  %v1203_v52 = vmul.f32 1.442695, %v1129_v48 }
 0x1c4   :  { %4461 = vpow2.f32 %v1183_v15  ;;  %v1207_v31 = vmul.f32 1.442695, %v1131_v13  ;;  %v5764_v61 = vpop.f32.mrf.mxu3  ;;  %v355_v46 = vld [vmem:[#allocation5 + $0xd0] sm:$0xff]  ;;  %v1211_v18 = vmul.f32 1.442695, %v1133_v7  ;;  %v356_v7 = vld [vmem:[#allocation5 + $0xd8] sm:$0xff] }
 0x1c5   :  { %4463 = vpow2.f32 %v1187_v32  ;;  %8223 = vst [vmem:[#allocation53_spill] sm:$0xff] %v5764_v61  ;;  %v5768_v0 = vadd.f32 %v355_v46, %v323_v1  ;;  %v5796_v1 = vadd.f32 %v5415_v44, %v5533_v24 }
 0x1c6   :  { %4465 = vpow2.f32 %v1191_v26 }
 0x1c7   :  { %4467 = vpow2.f32 %v1195_v40 }
 0x1c8   :  { %4469 = vpow2.f32 %v1199_v2  ;;  %v324_v2 = vld [vmem:[#allocation2 + $0xd8] sm:$0xff] }
 0x1c9   :  { %1607 = vmax.xlane.f32.xlu0 %v5744_v55  ;;  %4471 = vpow2.f32 %v1203_v52 }
 0x1ca   :  { %v5766_v14 = vpop.eup %4461  ;;  %4473 = vpow2.f32 %v1207_v31 }
 0x1cb   :  { %516 = vmatmul.f32.gmra.mxu0 %v5755_v30  ;;  %8224 = vst [vmem:[#allocation54_spill] sm:$0xff] %v5766_v14  ;;  %v5770_v60 = vpop.eup %4463  ;;  %4475 = vpow2.f32 %v1211_v18  ;;  %v5800_v18 = vadd.f32 %v356_v7, %v324_v2  ;;  %v357_v2 = vld [vmem:[#allocation5 + $0xe0] sm:$0xff] }
 0x1cc   :  { %8225 = vst [vmem:[#allocation55_spill] sm:$0xff] %v5770_v60  ;;  %v5776_v35 = vpop.eup %4465  ;;  %v1311_v6 = vadd.f32 %v5770_v60, %v5766_v14  ;;  %v5798_v46 = vpop.f32.mrf.mxu3 }
 0x1cd   :  { %8226 = vst [vmem:[#allocation56_spill] sm:$0xff] %v5776_v35  ;;  %v5780_v49 = vpop.eup %4467 }
 0x1ce   :  { %v1312_v15 = vadd.f32 %v5776_v35, %v1311_v6  ;;  %v5785_v32 = vpop.eup %4469  ;;  %8228 = vst [vmem:[#allocation58_spill] sm:$0xff] %v5798_v46  ;;  %v326_v46 = vld [vmem:[#allocation2 + $0xe8] sm:$0xff]  ;;  %v359_v35 = vld [vmem:[#allocation5 + $0xf0] sm:$0xff] }
 0x1cf   :  { %v5788_v48 = vpop.eup %4471 }
 0x1d0   :  { %v1313_v26 = vadd.f32 %v5780_v49, %v1312_v15  ;;  %v5792_v52 = vpop.eup %4473 }
 0x1d1   :  { %1609 = vmax.xlane.f32.xlu0 %v5759_v29  ;;  %8227 = vst [vmem:[#allocation57_spill] sm:$0xff] %v5792_v52  ;;  %v5803_v15 = vpop.eup %4475 }
 0x1d2   :  { %v1314_v13 = vadd.f32 %v5785_v32, %v1313_v26  ;;  %8229 = vst [vmem:[#allocation59_spill] sm:$0xff] %v5803_v15 }
 0x1d3   :  { %519 = vmatmul.f32.gmra.mxu0 %v5768_v0 }
 0x1d4   :  { %v1315_v6 = vadd.f32 %v5788_v48, %v1314_v13 }
 0x1d9   :  { %1611 = vmax.xlane.f32.xlu0 %v5774_v42 }
 0x1db   :  { %522 = vmatmul.f32.gmra.mxu0 %v5800_v18 }
 0x1dc   :  { %v1977_v10 = vpop.xlane.xlu0 %1976 }
 0x1dd   :  { %v1992_v40 = vsub.f32 %v5591_v36, %v1977_v10  ;;  %v1316_v36 = vadd.f32 %v5792_v52, %v1315_v6 }
 0x1df   :  { %v2000_v31 = vmul.f32 1.442695, %v1992_v40  ;;  %v1317_v10 = vadd.f32 %v5803_v15, %v1316_v36  ;;  %v325_v40 = vld [vmem:[#allocation2 + $0xe0] sm:$0xff] }
 0x1e0   :  { %v5812_v38 = vadd.f32 %v357_v2, %v325_v40  ;;  %v5821_v40 = vadd.f32 %v358_v63, %v326_v46  ;;  %v327_v46 = vld [vmem:[#allocation2 + $0xf0] sm:$0xff] }
 0x1e1   :  { %4477 = vpow2.f32 %v2000_v31  ;;  %1613 = vmax.xlane.f32.xlu0 %v5796_v1  ;;  %v1318_v24 = vrot.slane %v1317_v10, 4  ;;  %v5815_v31 = vpop.f32.mrf.mxu3 }
 0x1e2   :  { %8230 = vst [vmem:[#allocation60_spill] sm:$0xff] %v5815_v31 }
 0x1e3   :  { %525 = vmatmul.f32.gmra.mxu0 %v5812_v38  ;;  %v1319_v6 = vadd.f32 %v1318_v24, %v1317_v10 }
 0x1e4   :  { %v1979_v26 = vpop.xlane.xlu1 %1978 }
 0x1e5   :  { %v1993_v44 = vsub.f32 %v5602_v11, %v1979_v26  ;;  %v1320_v26 = vrot.slane %v1319_v6, 2 }
 0x1e7   :  { %v5810_v7 = vpop.eup %4477  ;;  %v2002_v13 = vmul.f32 1.442695, %v1993_v44  ;;  %v1321_v10 = vadd.f32 %v1320_v26, %v1319_v6  ;;  %v5830_v6 = vadd.f32 %v359_v35, %v327_v46 }
 0x1e8   :  { %2032 = vmatmul.f32.vlgmr.msra.gmra.mxu3 %v5810_v7 }
 0x1e9   :  { %4479 = vpow2.f32 %v2002_v13  ;;  %v5825_v31 = vpop.f32.mrf.mxu3  ;;  %v1322_v17 = vrot.slane %v1321_v10, 1  ;;  %8232 = vst [vmem:[#allocation62_spill] sm:$0xff] %v5830_v6 }
 0x1ea   :  { %8231 = vst [vmem:[#allocation61_spill] sm:$0xff] %v5825_v31 }
 0x1eb   :  { %v1688_v36 = vpop.f32.mrf.mxu2  ;;  %528 = vmatmul.f32.gmra.mxu0 %v5821_v40 }
 0x1ec   :  { %4481 = vrcp.f32 %v1688_v36  ;;  %v1981_v61 = vpop.xlane.xlu0 %1980  ;;  %v1747_v63 = vand.u32 2147483648, %v1688_v36  ;;  %vm1741_vm1 = vweird.f32 %v1688_v36 }
 0x1ed   :  { %v1994_v11 = vsub.f32 %v5613_v47, %v1981_v61 }
 0x1ef   :  { %v5819_v8 = vpop.eup %4479  ;;  %v2004_v44 = vmul.f32 1.442695, %v1994_v11  ;;  %v1745_v11 = vand.u32 2147483647, %v1688_v36 }
 0x1f0   :  { %2035 = vmatmul.f32.gmra.mxu3 %v5819_v8 }
 0x1f1   :  { %4483 = vpow2.f32 %v2004_v44  ;;  %vm1746_vm3 = vcmp.eq.f32.partialorder %v1745_v11, 8.507059e+37 }
 0x1f2   :  { %v4482_v2 = vpop.eup %4481 }
 0x1f3   :  { %v1737_v24 = vmul.f32 %v4482_v2, %v1688_v36  ;;  %v1691_v13 = vpop.f32.mrf.mxu2  ;;  %vm1742_vm0 = vweird.f32 %v4482_v2  ;;  %531 = vmatmul.f32.gmra.mxu0 %v5830_v6  ;;  %v5838_v36 = vpop.f32.mrf.mxu3 }
 0x1f4   :  { %4485 = vrcp.f32 %v1691_v13  ;;  %v1983_v47 = vpop.xlane.xlu1 %1982  ;;  %vm1743_vm2 = vmor %vm1741_vm1, %vm1742_vm0  ;;  %8233 = vst [vmem:[#allocation63_spill] sm:$0xff] %v5838_v36  ;;  %v1759_v11 = vand.u32 2147483647, %v1691_v13  ;;  %vm1755_vm5 = vweird.f32 %v1691_v13 }
 0x1f5   :  { %v1995_v61 = vsub.f32 %v5626_v21, %v1983_v47  ;;  %v1738_v41 = vsub.f32 1.0, %v1737_v24  ;;  %v5834_v24 = vadd.f32 %v1322_v17, %v1321_v10  ;;  %v1748_v47 = vor.u32 1.1754944e-38, %v1747_v63  ;;  %v328_v10 = vld [vmem:[#allocation2 + $0xf8] sm:$0xff] }
 0x1f6   :  { %v1761_v17 = vand.u32 2147483648, %v1691_v13  ;;  %vm1760_vm7 = vcmp.eq.f32.partialorder %v1759_v11, 8.507059e+37 }
 0x1f7   :  { %v5828_v15 = vpop.eup %4483  ;;  %v2006_v44 = vmul.f32 1.442695, %v1995_v61  ;;  %v1739_v60 = vmul.f32 %v4482_v2, %v1738_v41  ;;  %vm1420_vm15 = vweird.f32 %v5834_v24 }
 0x1f8   :  { %2038 = vmatmul.f32.gmra.mxu3 %v5828_v15 }
 0x1f9   :  { %4487 = vpow2.f32 %v2006_v44  ;;  %v1740_v26 = vadd.f32 %v4482_v2, %v1739_v60  ;;  %v360_v44 = vld [vmem:[#allocation5 + $0xf8] sm:$0xff] }
 0x1fa   :  { %v4486_v21 = vpop.eup %4485 }
 0x1fb   :  { %v1751_v31 = vmul.f32 %v4486_v21, %v1691_v13  ;;  %v1694_v52 = vpop.f32.mrf.mxu2  ;;  %v1744_v14 = vsel %vm1743_vm2, %v4482_v2, %v1740_v26  ;;  %vm1756_vm4 = vweird.f32 %v4486_v21 }
 0x1fc   :  { %4489 = vrcp.f32 %v1694_v52  ;;  %v1985_v41 = vpop.xlane.xlu0 %1984  ;;  %v1749_v35 = vsel %vm1746_vm3, %v1748_v47, %v1744_v14  ;;  %v5844_v14 = vadd.f32 %v360_v44, %v328_v10  ;;  %vm1757_vm6 = vmor %vm1755_vm5, %vm1756_vm4  ;;  %v1775_v44 = vand.u32 2147483648, %v1694_v52 }
 0x1fd   :  { %v1752_v61 = vsub.f32 1.0, %v1751_v31  ;;  %v1996_v46 = vsub.f32 %v5637_v57, %v1985_v41  ;;  %v1960_v60 = vmul.f32 %v5588_v9, %v1749_v35  ;;  %4491 = vrcp.f32 %v5834_v24 }
 0x1fe   :  { %8234 = vst [vmem:[#allocation64_spill] sm:$0xff] %v5844_v14  ;;  %v1762_v31 = vor.u32 1.1754944e-38, %v1761_v17  ;;  %534 = vmatmul.f32.gmra.mxu0 %v5844_v14  ;;  %v1773_v36 = vand.u32 2147483647, %v1694_v52  ;;  %v5851_v14 = vpop.f32.mrf.mxu3  ;;  %vm1769_vm9 = vweird.f32 %v1694_v52 }
 0x1ff   :  { %v5841_v63 = vpop.eup %4487  ;;  %v2008_v6 = vmul.f32 1.442695, %v1996_v46  ;;  %2210 = vxpose.xlu2.b32.start [1/4] (short) %v1960_v60, 128  ;;  %v1753_v2 = vmul.f32 %v4486_v21, %v1752_v61  ;;  %8235 = vst [vmem:[#allocation65_spill] sm:$0xff] %v5851_v14 }
 0x200   :  { %2041 = vmatmul.f32.gmra.mxu3 %v5841_v63  ;;  %vm1774_vm11 = vcmp.eq.f32.partialorder %v1773_v36, 8.507059e+37 }
 0x201   :  { %4493 = vpow2.f32 %v2008_v6  ;;  %v1754_v9 = vadd.f32 %v4486_v21, %v1753_v2 }
 0x202   :  { %v4490_v57 = vpop.eup %4489 }
 0x203   :  { %v1765_v26 = vmul.f32 %v4490_v57, %v1694_v52  ;;  %v1697_v47 = vpop.f32.mrf.mxu2  ;;  %v1758_v41 = vsel %vm1757_vm6, %v4486_v21, %v1754_v9  ;;  %v4492_v35 = vpop.eup %4491  ;;  %vm1770_vm8 = vweird.f32 %v4490_v57 }
 0x204   :  { %4495 = vrcp.f32 %v1697_v47  ;;  %v1987_v61 = vpop.xlane.xlu1 %1986  ;;  %v1763_v46 = vsel %vm1760_vm7, %v1762_v31, %v1758_v41  ;;  %v1416_v21 = vmul.f32 %v4492_v35, %v5834_v24  ;;  %vm1771_vm10 = vmor %vm1769_vm9, %vm1770_vm8  ;;  %vm1783_vm13 = vweird.f32 %v1697_v47 }
 0x205   :  { %v1766_v60 = vsub.f32 1.0, %v1765_v26  ;;  %v1997_v10 = vsub.f32 %v5649_v4, %v1987_v61  ;;  %v1961_v6 = vmul.f32 %v5599_v20, %v1763_v46  ;;  %v1776_v20 = vor.u32 1.1754944e-38, %v1775_v44 }
 0x206   :  { %v1417_v26 = vsub.f32 1.0, %v1416_v21  ;;  %v5859_v44 = vpop.f32.mrf.mxu3  ;;  %vm1421_vm0 = vweird.f32 %v4492_v35 }
 0x207   :  { %v5849_v13 = vpop.eup %4493  ;;  %v2010_v2 = vmul.f32 1.442695, %v1997_v10  ;;  %2211 = vxpose.xlu2.b32.cont [2/4] (short) %v1961_v6, 128  ;;  %v1767_v17 = vmul.f32 %v4490_v57, %v1766_v60  ;;  %v1789_v60 = vand.u32 2147483648, %v1697_v47  ;;  %8236 = vst [vmem:[#allocation66_spill] sm:$0xff] %v5859_v44  ;;  %vm1422_vm2 = vmor %vm1420_vm15, %vm1421_vm0  ;;  %v418_v44 = vld [vmem:[#allocation13 + $0xc8] sm:$0xff] }
 0x208   :  { %2044 = vmatmul.f32.gmra.mxu3 %v5849_v13  ;;  %v1418_v52 = vmul.f32 %v4492_v35, %v1417_v26 }
 0x209   :  { %4497 = vpow2.f32 %v2010_v2  ;;  %v1768_v11 = vadd.f32 %v4490_v57, %v1767_v17  ;;  %v1787_v2 = vand.u32 2147483647, %v1697_v47  ;;  %v1790_v36 = vor.u32 1.1754944e-38, %v1789_v60 }
 0x20a   :  { %v4496_v4 = vpop.eup %4495 }
 0x20b   :  { %v1779_v9 = vmul.f32 %v4496_v4, %v1697_v47  ;;  %v1772_v31 = vsel %vm1771_vm10, %v4490_v57, %v1768_v11  ;;  %vm1784_vm12 = vweird.f32 %v4496_v4  ;;  %vm1788_vm1 = vcmp.eq.f32.partialorder %v1787_v2, 8.507059e+37 }
 0x20c   :  { %v1777_v41 = vsel %vm1774_vm11, %v1776_v20, %v1772_v31  ;;  %vm1785_vm14 = vmor %vm1783_vm13, %vm1784_vm12  ;;  %v1426_v57 = vand.u32 2147483648, %v5834_v24  ;;  %v1419_v20 = vadd.f32 %v4492_v35, %v1418_v52  ;;  %vm2242_vm12 = vcmask 261120  }
 0x20d   :  { %v1780_v61 = vsub.f32 1.0, %v1779_v9  ;;  %v1962_v46 = vmul.f32 %v5610_v25, %v1777_v41  ;;  %v1424_v9 = vand.u32 2147483647, %v5834_v24 }
 0x20e   :  { %v1427_v47 = vor.u32 1.1754944e-38, %v1426_v57  ;;  %v1423_v26 = vsel %vm1422_vm2, %v4492_v35, %v1419_v20  ;;  %v5867_v41 = vpop.f32.mrf.mxu3 }
 0x20f   :  { %v5856_v10 = vpop.eup %4497  ;;  %2212 = vxpose.xlu2.b32.cont [3/4] (short) %v1962_v46, 128  ;;  %v1781_v6 = vmul.f32 %v4496_v4, %v1780_v61  ;;  %vm1425_vm3 = vcmp.eq.f32.partialorder %v1424_v9, 8.507059e+37 }
 0x210   :  { %2047 = vmatmul.f32.gmra.mxu3 %v5856_v10  ;;  %v5869_v61 = vsel %vm1425_vm3, %v1427_v47, %v1423_v26 }
 0x211   :  { %v1782_v17 = vadd.f32 %v4496_v4, %v1781_v6  ;;  %v5873_v46 = vmul.f32 %v5780_v49, %v5869_v61  ;;  %v5878_v24 = vmul.f32 %v5785_v32, %v5869_v61 }
 0x213   :  { %v1786_v25 = vsel %vm1785_vm14, %v4496_v4, %v1782_v17  ;;  %8237 = vst [vmem:[#allocation67_spill] sm:$0xff] %v5873_v46  ;;  %v412_v46 = vld [vmem:[#allocation13 + $0x98] sm:$0xff] }
 0x214   :  { %v5863_v21 = vpop.xlane.xlu0 %1990  ;;  %v1791_v11 = vsel %vm1788_vm1, %v1790_v36, %v1786_v25  ;;  %8238 = vst [vmem:[#allocation68_spill] sm:$0xff] %v5878_v24  ;;  %v5889_v36 = vpop.f32.mrf.mxu0  ;;  %v414_v24 = vld [vmem:[#allocation13 + $0xa8] sm:$0xff] }
 0x215   :  { %v1963_v31 = vmul.f32 %v5623_v22, %v1791_v11  ;;  %v5882_v22 = vmul.f32 %v5788_v48, %v5869_v61  ;;  %8240 = vst [vmem:[#allocation70_spill] sm:$0xff] %v5889_v36  ;;  %v420_v36 = vld [vmem:[#allocation13 + $0xd8] sm:$0xff] }
 0x216   :  { %v5885_v52 = vpop.f32.mrf.mxu3 }
 0x217   :  { %2213 = vxpose.xlu2.b32.end [4/4] (short) %v1963_v31, 128  ;;  %8239 = vst [vmem:[#allocation69_spill] sm:$0xff] %v5882_v22 }
 0x21c   :  { %v1600_v4 = vpop.xlane.xlu0 %1599 }
 0x21d   :  { %v1627_v60 = vsub.f32 %v5690_v16, %v1600_v4 }
 0x21e   :  { %v5895_v57 = vpop.f32.mrf.mxu3 }
 0x21f   :  { %v1647_v35 = vmul.f32 1.442695, %v1627_v60 }
 0x221   :  { %4499 = vpow2.f32 %v1647_v35 }
 0x224   :  { %v1602_v6 = vpop.xlane.xlu0 %1601 }
 0x225   :  { %v1628_v2 = vsub.f32 %v5708_v51, %v1602_v6  ;;  %v5898_v51 = vpop.f32.mrf.mxu0 }
 0x226   :  { %8241 = vst [vmem:[#allocation71_spill] sm:$0xff] %v5898_v51 }
 0x227   :  { %v5887_v17 = vpop.eup %4499  ;;  %v1649_v49 = vmul.f32 1.442695, %v1628_v2 }
 0x228   :  { %1699 = vmatmul.f32.gmra.mxu2 %v5887_v17 }
 0x229   :  { %4501 = vpow2.f32 %v1649_v49 }
 0x22c   :  { %v1604_v16 = vpop.xlane.xlu0 %1603 }
 0x22d   :  { %v1629_v32 = vsub.f32 %v5722_v3, %v1604_v16  ;;  %v5904_v3 = vpop.f32.mrf.mxu3  ;;  %v5906_v47 = vpop.f32.mrf.mxu0 }
 0x22e   :  { %8242 = vst [vmem:[#allocation72_spill] sm:$0xff] %v5906_v47 }
 0x22f   :  { %v5893_v48 = vpop.eup %4501  ;;  %v1651_v25 = vmul.f32 1.442695, %v1629_v32 }
 0x230   :  { %1702 = vmatmul.f32.gmra.mxu2 %v5893_v48 }
 0x231   :  { %4503 = vpow2.f32 %v1651_v25 }
 0x234   :  { %v1606_v11 = vpop.xlane.xlu0 %1605 }
 0x235   :  { %v1630_v20 = vsub.f32 %v5733_v45, %v1606_v11  ;;  %v5912_v45 = vpop.f32.mrf.mxu3  ;;  %v5915_v49 = vpop.f32.mrf.mxu0 }
 0x236   :  { %8243 = vst [vmem:[#allocation73_spill] sm:$0xff] %v5915_v49 }
 0x237   :  { %v5901_v9 = vpop.eup %4503  ;;  %v1653_v31 = vmul.f32 1.442695, %v1630_v20 }
 0x238   :  { %1705 = vmatmul.f32.gmra.mxu2 %v5901_v9 }
 0x239   :  { %4505 = vpow2.f32 %v1653_v31 }
 0x23c   :  { %v1608_v26 = vpop.xlane.xlu0 %1607 }
 0x23d   :  { %v1631_v4 = vsub.f32 %v5744_v55, %v1608_v26  ;;  %v5921_v11 = vpop.f32.mrf.mxu3  ;;  %v5925_v26 = vpop.f32.mrf.mxu0 }
 0x23e   :  { %8244 = vst [vmem:[#allocation74_spill] sm:$0xff] %v5925_v26 }
 0x23f   :  { %v5909_v60 = vpop.eup %4505  ;;  %v1655_v35 = vmul.f32 1.442695, %v1631_v4 }
 0x240   :  { %1708 = vmatmul.f32.gmra.mxu2 %v5909_v60 }
 0x241   :  { %4507 = vpow2.f32 %v1655_v35 }
 0x244   :  { %v1610_v6 = vpop.xlane.xlu0 %1609 }
 0x245   :  { %v1632_v2 = vsub.f32 %v5759_v29, %v1610_v6 }
 0x247   :  { %v5917_v16 = vpop.eup %4507  ;;  %v1657_v32 = vmul.f32 1.442695, %v1632_v2  ;;  %v5931_v2 = vpop.f32.mrf.mxu3 }
 0x248   :  { %1711 = vmatmul.f32.gmra.mxu2 %v5917_v16  ;;  %8245 = vst [vmem:[#allocation75_spill] sm:$0xff] %v5931_v2 }
 0x249   :  { %4509 = vpow2.f32 %v1657_v32 }
 0x24c   :  { %v1612_v55 = vpop.xlane.xlu0 %1611 }
 0x24d   :  { %v1633_v25 = vsub.f32 %v5774_v42, %v1612_v55  ;;  %v5934_v42 = vpop.f32.mrf.mxu0 }
 0x24e   :  { %8246 = vst [vmem:[#allocation76_spill] sm:$0xff] %v5934_v42 }
 0x24f   :  { %v5923_v20 = vpop.eup %4509  ;;  %v1659_v31 = vmul.f32 1.442695, %v1633_v25  ;;  %v5939_v55 = vpop.f32.mrf.mxu3 }
 0x250   :  { %1714 = vmatmul.f32.gmra.mxu2 %v5923_v20  ;;  %8247 = vst [vmem:[#allocation77_spill] sm:$0xff] %v5939_v55  ;;  %v416_v55 = vld [vmem:[#allocation13 + $0xb8] sm:$0xff] }
 0x251   :  { %4511 = vpow2.f32 %v1659_v31 }
 0x254   :  { %v1614_v29 = vpop.xlane.xlu0 %1613 }
 0x255   :  { %v1634_v4 = vsub.f32 %v5796_v1, %v1614_v29  ;;  %v5941_v25 = vpop.f32.mrf.mxu0 }
 0x256   :  { %8248 = vst [vmem:[#allocation78_spill] sm:$0xff] %v5941_v25 }
 0x257   :  { %v5929_v35 = vpop.eup %4511  ;;  %v1661_v6 = vmul.f32 1.442695, %v1634_v4  ;;  %v424_v4 = vld [vmem:[#allocation13 + $0xf8] sm:$0xff] }
 0x258   :  { %1717 = vmatmul.f32.gmra.mxu2 %v5929_v35  ;;  %538 = vmatpush.msra.mxu1 %v424_v4 }
 0x259   :  { %4513 = vpow2.f32 %v1661_v6  ;;  %v422_v6 = vld [vmem:[#allocation13 + $0xe8] sm:$0xff] }
 0x25a   :  { %539 = vmatpush.msra.mxu1 %v422_v6 }
 0x25c   :  { %540 = vmatpush.msra.mxu1 %v420_v36 }
 0x25d   :  { %v5943_v1 = vpop.f32.mrf.mxu0 }
 0x25e   :  { %8249 = vst [vmem:[#allocation79_spill] sm:$0xff] %v5943_v1  ;;  %541 = vmatpush.msra.mxu1 %v418_v44 }
 0x25f   :  { %v5936_v32 = vpop.eup %4513 }
 0x260   :  { %1720 = vmatmul.f32.gmra.mxu2 %v5936_v32  ;;  %542 = vmatpush.msra.mxu1 %v416_v55 }
 0x262   :  { %543 = vmatpush.msra.mxu1 %v414_v24  ;;  %v406_v24 = vld [vmem:[#allocation13 + $0x68] sm:$0xff] }
 0x264   :  { %544 = vmatpush.msra.mxu1 %v412_v46 }
 0x265   :  { %v5945_v25 = vpop.f32.mrf.mxu0 }
 0x266   :  { %8250 = vst [vmem:[#allocation80_spill] sm:$0xff] %v5945_v25 }
 0x26b   :  { %v2033_v31 = vpop.f32.mrf.mxu3 }
 0x26c   :  { %4515 = vrcp.f32 %v2033_v31  ;;  %v2068_v42 = vand.u32 2147483648, %v2033_v31  ;;  %v2066_v14 = vand.u32 2147483647, %v2033_v31  ;;  %vm2062_vm5 = vweird.f32 %v2033_v31 }
 0x26e   :  { %v2069_v1 = vor.u32 1.1754944e-38, %v2068_v42  ;;  %vm2067_vm7 = vcmp.eq.f32.partialorder %v2066_v14, 8.507059e+37  ;;  %v410_v42 = vld [vmem:[#allocation13 + $0x88] sm:$0xff] }
 0x26f   :  { %545 = vmatpush.msra.mxu1 %v410_v42 }
 0x272   :  { %v4516_v29 = vpop.eup %4515 }
 0x273   :  { %v2058_v26 = vmul.f32 %v4516_v29, %v2033_v31  ;;  %v2036_v49 = vpop.f32.mrf.mxu3  ;;  %vm2063_vm4 = vweird.f32 %v4516_v29  ;;  %v5948_v31 = vpop.f32.mrf.mxu0 }
 0x274   :  { %4517 = vrcp.f32 %v2036_v49  ;;  %vm2064_vm6 = vmor %vm2062_vm5, %vm2063_vm4  ;;  %v2082_v25 = vand.u32 2147483648, %v2036_v49  ;;  %v2080_v44 = vand.u32 2147483647, %v2036_v49  ;;  %8251 = vst [vmem:[#allocation81_spill] sm:$0xff] %v5948_v31  ;;  %vm2076_vm9 = vweird.f32 %v2036_v49 }
 0x275   :  { %v2059_v47 = vsub.f32 1.0, %v2058_v26 }
 0x276   :  { %vm2081_vm11 = vcmp.eq.f32.partialorder %v2080_v44, 8.507059e+37 }
 0x277   :  { %v2060_v51 = vmul.f32 %v4516_v29, %v2059_v47 }
 0x279   :  { %v2061_v2 = vadd.f32 %v4516_v29, %v2060_v51 }
 0x27a   :  { %v4518_v4 = vpop.eup %4517 }
 0x27b   :  { %v2065_v22 = vsel %vm2064_vm6, %v4516_v29, %v2061_v2  ;;  %v2072_v26 = vmul.f32 %v4518_v4, %v2036_v49  ;;  %vm2077_vm8 = vweird.f32 %v4518_v4  ;;  %v408_v2 = vld [vmem:[#allocation13 + $0x78] sm:$0xff]  ;;  %v402_v29 = vld [vmem:[#allocation13 + $0x48] sm:$0xff] }
 0x27c   :  { %v2070_v6 = vsel %vm2067_vm7, %v2069_v1, %v2065_v22  ;;  %vm2078_vm10 = vmor %vm2076_vm9, %vm2077_vm8  ;;  %v2083_v22 = vor.u32 1.1754944e-38, %v2082_v25  ;;  %546 = vmatpush.msra.mxu1 %v408_v2  ;;  %v404_v1 = vld [vmem:[#allocation13 + $0x58] sm:$0xff]  ;;  %v398_v49 = vld [vmem:[#allocation13 + $0x28] sm:$0xff] }
 0x27d   :  { %v2169_v47 = vmul.f32 %v5810_v7, %v2070_v6  ;;  %v2073_v36 = vsub.f32 1.0, %v2072_v26  ;;  %v400_v26 = vld [vmem:[#allocation13 + $0x38] sm:$0xff]  ;;  %v5951_v6 = vpop.f32.mrf.mxu0 }
 0x27e   :  { %547 = vmatpush.msra.mxu1 %v406_v24  ;;  %8252 = vst [vmem:[#allocation82_spill] sm:$0xff] %v5951_v6  ;;  %v396_v25 = vld [vmem:[#allocation13 + $0x18] sm:$0xff] }
 0x27f   :  { %2413 = vxpose.xlu1.b32.start [1/2] (short) %v2169_v47, 128  ;;  %v2074_v51 = vmul.f32 %v4518_v4, %v2073_v36 }
 0x280   :  { %548 = vmatpush.msra.mxu1 %v404_v1 }
 0x281   :  { %v2075_v14 = vadd.f32 %v4518_v4, %v2074_v51 }
 0x282   :  { %549 = vmatpush.msra.mxu1 %v402_v29 }
 0x283   :  { %v2079_v7 = vsel %vm2078_vm10, %v4518_v4, %v2075_v14  ;;  %v394_v4 = vld [vmem:[#allocation13 + $0x8] sm:$0xff] }
 0x284   :  { %v2084_v55 = vsel %vm2081_vm11, %v2083_v22, %v2079_v7  ;;  %550 = vmatpush.msra.mxu1 %v400_v26 }
 0x285   :  { %v2170_v46 = vmul.f32 %v5819_v8, %v2084_v55  ;;  %v5954_v47 = vpop.f32.mrf.mxu0 }
 0x286   :  { %551 = vmatpush.msra.mxu1 %v398_v49  ;;  %8253 = vst [vmem:[#allocation83_spill] sm:$0xff] %v5954_v47  ;;  %v8287_v47 = vld [vmem:[#allocation62_spill] sm:$0xff] }
 0x287   :  { %2414 = vxpose.xlu1.b32.end [2/2] (short) %v2170_v46, 128 }
 0x288   :  { %552 = vmatpush.msra.mxu1 %v396_v25 }
 0x28a   :  { %553 = vmatpush.msra.mxu1 %v394_v4 }
 0x28b   :  { %554 = vmatmul.f32.vlgmr.msra.gmra.mxu1 %v5453_v27 }
 0x28d   :  { %v5958_v36 = vpop.f32.mrf.mxu0 }
 0x28e   :  { %8254 = vst [vmem:[#allocation84_spill] sm:$0xff] %v5958_v36 }
 0x293   :  { %557 = vmatmul.f32.gmra.mxu1 %v5462_v39 }
 0x295   :  { %v5963_v42 = vpop.f32.mrf.mxu0 }
 0x296   :  { %8255 = vst [vmem:[#allocation85_spill] sm:$0xff] %v5963_v42 }
 0x298   :  { %v2226_v8 = vpop.trf.xlu2 }
 0x299   :  { %4252 = vmatmul.msk.f32.vlgmr.msrb.gmra.mxu0 %vm2242_vm12, %v2226_v8 }
 0x29b   :  { %560 = vmatmul.f32.gmra.mxu1 %v5471_v50 }
 0x29d   :  { %v5967_v7 = vpop.f32.mrf.mxu0 }
 0x29e   :  { %8256 = vst [vmem:[#allocation86_spill] sm:$0xff] %v5967_v7 }
 0x2a0   :  { %v2227_v51 = vpop.trf.xlu2 }
 0x2a1   :  { %4253 = vmatmul.msk.f32.gmra.mxu0 %vm2242_vm12, %v2227_v51 }
 0x2a3   :  { %563 = vmatmul.f32.gmra.mxu1 %v5478_v56 }
 0x2a5   :  { %v5973_v51 = vpop.f32.mrf.mxu0 }
 0x2a6   :  { %8257 = vst [vmem:[#allocation87_spill] sm:$0xff] %v5973_v51 }
 0x2a8   :  { %v2228_v44 = vpop.trf.xlu2 }
 0x2a9   :  { %4254 = vmatmul.msk.f32.gmra.mxu0 %vm2242_vm12, %v2228_v44 }
 0x2ab   :  { %v1700_v27 = vpop.f32.mrf.mxu2  ;;  %566 = vmatmul.f32.gmra.mxu1 %v5484_v37 }
 0x2ac   :  { %4519 = vrcp.f32 %v1700_v27  ;;  %v1803_v24 = vand.u32 2147483648, %v1700_v27  ;;  %v1801_v46 = vand.u32 2147483647, %v1700_v27  ;;  %vm1797_vm14 = vweird.f32 %v1700_v27 }
 0x2ae   :  { %v1804_v29 = vor.u32 1.1754944e-38, %v1803_v24  ;;  %vm1802_vm0 = vcmp.eq.f32.partialorder %v1801_v46, 8.507059e+37 }
 0x2b0   :  { %v2229_v14 = vpop.trf.xlu2 }
 0x2b1   :  { %4255 = vmatmul.msk.f32.gmra.mxu0 %vm2242_vm12, %v2229_v14 }
 0x2b2   :  { %v4520_v39 = vpop.eup %4519 }
 0x2b3   :  { %v1793_v2 = vmul.f32 %v4520_v39, %v1700_v27  ;;  %v1703_v22 = vpop.f32.mrf.mxu2  ;;  %vm1798_vm13 = vweird.f32 %v4520_v39  ;;  %569 = vmatmul.f32.gmra.mxu1 %v5501_v5 }
 0x2b4   :  { %4521 = vrcp.f32 %v1703_v22  ;;  %vm1799_vm15 = vmor %vm1797_vm14, %vm1798_vm13  ;;  %v1817_v14 = vand.u32 2147483648, %v1703_v22  ;;  %vm1811_vm2 = vweird.f32 %v1703_v22 }
 0x2b5   :  { %v1794_v50 = vsub.f32 1.0, %v1793_v2 }
 0x2b6   :  { %v1818_v5 = vor.u32 1.1754944e-38, %v1817_v14 }
 0x2b7   :  { %v1795_v55 = vmul.f32 %v4520_v39, %v1794_v50  ;;  %v1815_v50 = vand.u32 2147483647, %v1703_v22 }
 0x2b8   :  { %v2230_v1 = vpop.trf.xlu2 }
 0x2b9   :  { %4256 = vmatmul.msk.f32.gmra.mxu0 %vm2242_vm12, %v2230_v1  ;;  %v1796_v56 = vadd.f32 %v4520_v39, %v1795_v55  ;;  %vm1816_vm4 = vcmp.eq.f32.partialorder %v1815_v50, 8.507059e+37  ;;  %v8258_v1 = vld [vmem:[#allocation35_spill] sm:$0xff] }
 0x2ba   :  { %v4522_v26 = vpop.eup %4521 }
 0x2bb   :  { %v1706_v49 = vpop.f32.mrf.mxu2  ;;  %v1800_v25 = vsel %vm1799_vm15, %v4520_v39, %v1796_v56  ;;  %v1807_v4 = vmul.f32 %v4522_v26, %v1703_v22  ;;  %vm1812_vm1 = vweird.f32 %v4522_v26  ;;  %572 = vmatmul.f32.gmra.mxu1 %v8258_v1 }
 0x2bc   :  { %4523 = vrcp.f32 %v1706_v49  ;;  %v1805_v37 = vsel %vm1802_vm0, %v1804_v29, %v1800_v25  ;;  %vm1813_vm3 = vmor %vm1811_vm2, %vm1812_vm1  ;;  %vm1825_vm6 = vweird.f32 %v1706_v49 }
 0x2bd   :  { %v1964_v8 = vmul.f32 %v5887_v17, %v1805_v37  ;;  %v1808_v44 = vsub.f32 1.0, %v1807_v4  ;;  %v1831_v4 = vand.u32 2147483648, %v1706_v49 }
 0x2bf   :  { %2717 = vxpose.xlu0.b32.start [1/4] (short) %v1964_v8, 128  ;;  %v1809_v27 = vmul.f32 %v4522_v26, %v1808_v44  ;;  %v1829_v8 = vand.u32 2147483647, %v1706_v49  ;;  %v5978_v44 = vpop.f32.mrf.mxu0 }
 0x2c0   :  { %v2231_v2 = vpop.trf.xlu2  ;;  %8259 = vst [vmem:[#allocation35_spill] sm:$0xff] %v5978_v44 }
 0x2c1   :  { %4257 = vmatmul.msk.f32.gmra.mxu0 %vm2242_vm12, %v2231_v2  ;;  %v1810_v24 = vadd.f32 %v4522_v26, %v1809_v27  ;;  %v1832_v2 = vor.u32 1.1754944e-38, %v1831_v4  ;;  %vm1830_vm8 = vcmp.eq.f32.partialorder %v1829_v8, 8.507059e+37  ;;  %v8262_v8 = vld [vmem:[#allocation38_spill] sm:$0xff] }
 0x2c2   :  { %v4524_v39 = vpop.eup %4523 }
 0x2c3   :  { %v1821_v55 = vmul.f32 %v4524_v39, %v1706_v49  ;;  %v1709_v46 = vpop.f32.mrf.mxu2  ;;  %v1814_v17 = vsel %vm1813_vm3, %v4522_v26, %v1810_v24  ;;  %vm1826_vm5 = vweird.f32 %v4524_v39 }
 0x2c4   :  { %4525 = vrcp.f32 %v1709_v46  ;;  %v1819_v29 = vsel %vm1816_vm4, %v1818_v5, %v1814_v17  ;;  %vm1827_vm7 = vmor %vm1825_vm6, %vm1826_vm5  ;;  %v1845_v17 = vand.u32 2147483648, %v1709_v46  ;;  %vm1839_vm10 = vweird.f32 %v1709_v46 }
 0x2c5   :  { %v1822_v56 = vsub.f32 1.0, %v1821_v55  ;;  %v1965_v25 = vmul.f32 %v5893_v48, %v1819_v29  ;;  %v8260_v48 = vld [vmem:[#allocation36_spill] sm:$0xff] }
 0x2c6   :  { %575 = vmatmul.f32.gmra.mxu1 %v8260_v48 }
 0x2c7   :  { %v1823_v37 = vmul.f32 %v4524_v39, %v1822_v56  ;;  %2718 = vxpose.xlu0.b32.cont [2/4] (short) %v1965_v25, 128  ;;  %v1843_v56 = vand.u32 2147483647, %v1709_v46  ;;  %v5984_v25 = vpop.f32.mrf.mxu0 }
 0x2c8   :  { %v2232_v22 = vpop.trf.xlu2  ;;  %8261 = vst [vmem:[#allocation36_spill] sm:$0xff] %v5984_v25 }
 0x2c9   :  { %4258 = vmatmul.msk.f32.gmra.mxu0 %vm2242_vm12, %v2232_v22  ;;  %v1824_v14 = vadd.f32 %v4524_v39, %v1823_v37  ;;  %vm1844_vm13 = vcmp.eq.f32.partialorder %v1843_v56, 8.507059e+37  ;;  %v8267_v56 = vld [vmem:[#allocation44_spill] sm:$0xff] }
 0x2ca   :  { %v4526_v26 = vpop.eup %4525 }
 0x2cb   :  { %v1835_v27 = vmul.f32 %v4526_v26, %v1709_v46  ;;  %v1828_v50 = vsel %vm1827_vm7, %v4524_v39, %v1824_v14  ;;  %vm1840_vm9 = vweird.f32 %v4526_v26  ;;  %v1846_v39 = vor.u32 1.1754944e-38, %v1845_v17  ;;  %v2039_v14 = vpop.f32.mrf.mxu3 }
 0x2cc   :  { %v1833_v24 = vsel %vm1830_vm8, %v1832_v2, %v1828_v50  ;;  %vm1841_vm11 = vmor %vm1839_vm10, %vm1840_vm9  ;;  %4527 = vrcp.f32 %v2039_v14  ;;  %v8265_v50 = vld [vmem:[#allocation42_spill] sm:$0xff]  ;;  %vm2090_vm15 = vweird.f32 %v2039_v14 }
 0x2cd   :  { %v1836_v55 = vsub.f32 1.0, %v1835_v27  ;;  %v1966_v5 = vmul.f32 %v5901_v9, %v1833_v24  ;;  %v8264_v27 = vld [vmem:[#allocation40_spill] sm:$0xff] }
 0x2ce   :  { %578 = vmatmul.f32.gmra.mxu1 %v8262_v8 }
 0x2cf   :  { %v1837_v1 = vmul.f32 %v4526_v26, %v1836_v55  ;;  %2719 = vxpose.xlu0.b32.cont [3/4] (short) %v1966_v5, 128  ;;  %v5989_v2 = vpop.f32.mrf.mxu0 }
 0x2d0   :  { %v2233_v29 = vpop.trf.xlu2  ;;  %8263 = vst [vmem:[#allocation38_spill] sm:$0xff] %v5989_v2 }
 0x2d1   :  { %4259 = vmatmul.msk.f32.gmra.mxu0 %vm2242_vm12, %v2233_v29  ;;  %v1838_v49 = vadd.f32 %v4526_v26, %v1837_v1 }
 0x2d2   :  { %v4528_v24 = vpop.eup %4527 }
 0x2d3   :  { %v1842_v4 = vsel %vm1841_vm11, %v4526_v26, %v1838_v49  ;;  %v2042_v26 = vpop.f32.mrf.mxu3  ;;  %v2086_v5 = vmul.f32 %v4528_v24, %v2039_v14  ;;  %v6008_v49 = vld [vmem:[%s8026_s8] ss:$0 sm:$0xff]  ;;  %vm2091_vm14 = vweird.f32 %v4528_v24 }
 0x2d4   :  { %v1847_v37 = vsel %vm1844_vm13, %v1846_v39, %v1842_v4  ;;  %4529 = vrcp.f32 %v2042_v26  ;;  %v8268_v39 = vld [vmem:[#allocation41_spill] sm:$0xff]  ;;  %vm2092_vm0 = vmor %vm2090_vm15, %vm2091_vm14  ;;  %vm2104_vm3 = vweird.f32 %v2042_v26  ;;  %v2108_v2 = vand.u32 2147483647, %v2042_v26 }
 0x2d5   :  { %v1967_v9 = vmul.f32 %v5909_v60, %v1847_v37  ;;  %v4693_v60 = vld [vmem:[%s8030_s12] ss:$0 sm:$0xff]  ;;  %v2087_v1 = vsub.f32 1.0, %v2086_v5 }
 0x2d6   :  { %581 = vmatmul.f32.gmra.mxu1 %v8264_v27  ;;  %v6000_v55 = vadd.f32 %v4693_v60, %v5661_v62  ;;  %v6012_v62 = vadd.f32 %v6008_v49, %v8268_v39  ;;  %v8272_v60 = vld [vmem:[#allocation43_spill] sm:$0xff]  ;;  %vm2109_vm5 = vcmp.eq.f32.partialorder %v2108_v2, 8.507059e+37 }
 0x2d7   :  { %2720 = vxpose.xlu0.b32.end [4/4] (short) %v1967_v9, 128  ;;  %v5994_v48 = vpop.f32.mrf.mxu0  ;;  %v2088_v9 = vmul.f32 %v4528_v24, %v2087_v1  ;;  %v6021_v5 = vadd.f32 %v6008_v49, %v8272_v60  ;;  %v8275_v60 = vld [vmem:[#allocation46_spill] sm:$0xff] }
 0x2d8   :  { %v2234_v22 = vpop.trf.xlu2  ;;  %8266 = vst [vmem:[#allocation40_spill] sm:$0xff] %v5994_v48 }
 0x2d9   :  { %4260 = vmatmul.msk.f32.gmra.mxu0 %vm2242_vm12, %v2234_v22  ;;  %8269 = vst [vmem:[#allocation42_spill] sm:$0xff] %v6012_v62  ;;  %v2089_v27 = vadd.f32 %v4528_v24, %v2088_v9 }
 0x2da   :  { %v4530_v29 = vpop.eup %4529  ;;  %8273 = vst [vmem:[#allocation41_spill] sm:$0xff] %v6021_v5 }
 0x2db   :  { %v2100_v4 = vmul.f32 %v4530_v29, %v2042_v26  ;;  %v2093_v39 = vsel %vm2092_vm0, %v4528_v24, %v2089_v27  ;;  %vm2105_vm2 = vweird.f32 %v4530_v29  ;;  %v6163_v51 = vpop.f32.mrf.mxu3 }
 0x2dc   :  { %vm2106_vm4 = vmor %vm2104_vm3, %vm2105_vm2 }
 0x2dd   :  { %v2101_v22 = vsub.f32 1.0, %v2100_v4 }
 0x2de   :  { %584 = vmatmul.f32.gmra.mxu1 %v8265_v50  ;;  %v2096_v50 = vand.u32 2147483648, %v2039_v14 }
 0x2df   :  { %v6014_v37 = vpop.f32.mrf.mxu0 }
 0x2e0   :  { %v2235_v46 = vpop.trf.xlu2  ;;  %8270 = vst [vmem:[#allocation44_spill] sm:$0xff] %v6014_v37  ;;  %v2097_v4 = vor.u32 1.1754944e-38, %v2096_v50 }
 0x2e1   :  { %4261 = vmatmul.msk.f32.gmra.mxu0 %vm2242_vm12, %v2235_v46  ;;  %v8271_v46 = vld [vmem:[#allocation45_spill] sm:$0xff] }
 0x2e3   :  { %v6177_v6 = vpop.f32.mrf.mxu3 }
 0x2e6   :  { %587 = vmatmul.f32.gmra.mxu1 %v8267_v56  ;;  %v6023_v56 = vpop.f32.mrf.mxu2 }
 0x2e7   :  { %v6027_v9 = vpop.f32.mrf.mxu0  ;;  %4531 = vrcp.f32 %v6023_v56  ;;  %vm1853_vm7 = vweird.f32 %v6023_v56 }
 0x2e8   :  { %1988 = vmax.xlane.f32.xlu2 %v6000_v55  ;;  %v2236_v17 = vpop.trf.xlu2  ;;  %8274 = vst [vmem:[#allocation45_spill] sm:$0xff] %v6027_v9 }
 0x2e9   :  { %4262 = vmatmul.msk.f32.gmra.mxu0 %vm2242_vm12, %v2236_v17  ;;  %v2094_v17 = vand.u32 2147483647, %v2039_v14  ;;  %v2110_v14 = vand.u32 2147483648, %v2042_v26 }
 0x2eb   :  { %vm2095_vm1 = vcmp.eq.f32.partialorder %v2094_v17, 8.507059e+37  ;;  %v2111_v50 = vor.u32 1.1754944e-38, %v2110_v14 }
 0x2ee   :  { %590 = vmatmul.f32.gmra.mxu1 %v8271_v46  ;;  %v2098_v46 = vsel %vm2095_vm1, %v2097_v4, %v2093_v39  ;;  %v1715_v27 = vpop.f32.mrf.mxu2  ;;  %v8277_v39 = vld [vmem:[#allocation47_spill] sm:$0xff] }
 0x2ef   :  { %v2171_v48 = vmul.f32 %v5828_v15, %v2098_v46  ;;  %4533 = vrcp.f32 %v1715_v27  ;;  %v1873_v9 = vand.u32 2147483648, %v1715_v27  ;;  %vm1867_vm11 = vweird.f32 %v1715_v27 }
 0x2f0   :  { %1619 = vmax.xlane.f32.xlu2 %v6012_v62  ;;  %v2237_v8 = vpop.trf.xlu2  ;;  %v1871_v44 = vand.u32 2147483647, %v1715_v27 }
 0x2f1   :  { %4263 = vmatmul.msk.f32.gmra.mxu0 %vm2242_vm12, %v2237_v8  ;;  %v2102_v8 = vmul.f32 %v4530_v29, %v2101_v22 }
 0x2f2   :  { %vm1872_vm14 = vcmp.eq.f32.partialorder %v1871_v44, 8.507059e+37 }
 0x2f3   :  { %v2103_v37 = vadd.f32 %v4530_v29, %v2102_v8  ;;  %v4532_v8 = vpop.eup %4531 }
 0x2f4   :  { %vm1854_vm6 = vweird.f32 %v4532_v8 }
 0x2f5   :  { %v2107_v22 = vsel %vm2106_vm4, %v4530_v29, %v2103_v37  ;;  %v4534_v37 = vpop.eup %4533  ;;  %vm1855_vm8 = vmor %vm1853_vm7, %vm1854_vm6 }
 0x2f6   :  { %593 = vmatmul.f32.gmra.mxu1 %v8275_v60  ;;  %v2112_v17 = vsel %vm2109_vm5, %v2111_v50, %v2107_v22  ;;  %v6039_v29 = vpop.f32.mrf.mxu2  ;;  %v1863_v60 = vmul.f32 %v4534_v37, %v1715_v27  ;;  %vm1868_vm10 = vweird.f32 %v4534_v37 }
 0x2f7   :  { %v2172_v15 = vmul.f32 %v5841_v63, %v2112_v17  ;;  %4535 = vrcp.f32 %v6039_v29  ;;  %vm1869_vm13 = vmor %vm1867_vm11, %vm1868_vm10  ;;  %vm1881_vm0 = vweird.f32 %v6039_v29 }
 0x2f8   :  { %1621 = vmax.xlane.f32.xlu2 %v6021_v5  ;;  %v2238_v1 = vpop.trf.xlu2 }
 0x2f9   :  { %4264 = vmatmul.msk.f32.gmra.mxu0 %vm2242_vm12, %v2238_v1  ;;  %v6033_v1 = vpop.f32.mrf.mxu0 }
 0x2fa   :  { %8276 = vst [vmem:[#allocation43_spill] sm:$0xff] %v6033_v1 }
 0x2fe   :  { %596 = vmatmul.f32.gmra.mxu1 %v8277_v39  ;;  %v6049_v22 = vpop.f32.mrf.mxu2  ;;  %v1859_v39 = vand.u32 2147483648, %v6023_v56 }
 0x2ff   :  { %2919 = vxpose.xlu1.b32.start [1/2] (short) %v2171_v48, 128  ;;  %v1849_v48 = vmul.f32 %v4532_v8, %v6023_v56  ;;  %4537 = vrcp.f32 %v6049_v22  ;;  %vm1895_vm4 = vweird.f32 %v6049_v22 }
 0x300   :  { %v2239_v24 = vpop.trf.xlu2 }
 0x301   :  { %4265 = vmatmul.msk.f32.gmra.mxu0 %vm2242_vm12, %v2239_v24  ;;  %v1850_v2 = vsub.f32 1.0, %v1849_v48  ;;  %v6042_v4 = vpop.f32.mrf.mxu0  ;;  %v1864_v24 = vsub.f32 1.0, %v1863_v60 }
 0x302   :  { %8278 = vst [vmem:[#allocation46_spill] sm:$0xff] %v6042_v4 }
 0x303   :  { %v1851_v63 = vmul.f32 %v4532_v8, %v1850_v2 }
 0x305   :  { %v1852_v50 = vadd.f32 %v4532_v8, %v1851_v63 }
 0x306   :  { %599 = vmatmul.f32.gmra.mxu1 %v5621_v59  ;;  %v4536_v59 = vpop.eup %4535 }
 0x307   :  { %2920 = vxpose.xlu1.b32.end [2/2] (short) %v2172_v15, 128  ;;  %v1857_v15 = vand.u32 2147483647, %v6023_v56  ;;  %v1856_v48 = vsel %vm1855_vm8, %v4532_v8, %v1852_v50  ;;  %v4538_v1 = vpop.eup %4537  ;;  %vm1882_vm15 = vweird.f32 %v4536_v59  ;;  %vm2118_vm8 = vweird.f32 %v6163_v51 }
 0x308   :  { %v2240_v26 = vpop.trf.xlu2  ;;  %v6046_v14 = vpop.f32.mrf.mxu1  ;;  %v1891_v50 = vmul.f32 %v4538_v1, %v6049_v22  ;;  %vm1883_vm1 = vmor %vm1881_vm0, %vm1882_vm15  ;;  %vm1896_vm3 = vweird.f32 %v4538_v1  ;;  %vm2445_vm0 = vcmask 130048  }
 0x309   :  { %4266 = vmatmul.msk.f32.gmra.mxu0 %vm2242_vm12, %v2240_v26  ;;  %v1865_v26 = vmul.f32 %v4534_v37, %v1864_v24  ;;  %vm1858_vm9 = vcmp.eq.f32.partialorder %v1857_v15, 8.507059e+37  ;;  %vm1897_vm5 = vmor %vm1895_vm4, %vm1896_vm3 }
 0x30b   :  { %v1866_v4 = vadd.f32 %v4534_v37, %v1865_v26  ;;  %v1892_v26 = vsub.f32 1.0, %v1891_v50 }
 0x30d   :  { %v1893_v44 = vmul.f32 %v4538_v1, %v1892_v26 }
 0x30e   :  { %602 = vmatmul.f32.gmra.mxu1 %v5634_v19  ;;  %v1877_v19 = vmul.f32 %v4536_v59, %v6039_v29 }
 0x310   :  { %v2241_v46 = vpop.trf.xlu2  ;;  %v6058_v2 = vpop.f32.mrf.mxu1  ;;  %v1878_v63 = vsub.f32 1.0, %v1877_v19 }
 0x311   :  { %4267 = vmatmul.msk.f32.gmra.mxu0 %vm2242_vm12, %v2241_v46  ;;  %v1860_v46 = vor.u32 1.1754944e-38, %v1859_v39  ;;  %v1870_v39 = vsel %vm1869_vm13, %v4534_v37, %v1866_v4  ;;  %v1885_v4 = vand.u32 2147483647, %v6039_v29  ;;  %vm2132_vm13 = vweird.f32 %v6177_v6 }
 0x312   :  { %v1879_v8 = vmul.f32 %v4536_v59, %v1878_v63 }
 0x313   :  { %v1861_v60 = vsel %vm1858_vm9, %v1860_v46, %v1856_v48  ;;  %v1887_v46 = vand.u32 2147483648, %v6039_v29  ;;  %vm1886_vm2 = vcmp.eq.f32.partialorder %v1885_v4, 8.507059e+37 }
 0x314   :  { %v1968_v24 = vmul.f32 %v5917_v16, %v1861_v60  ;;  %v1880_v48 = vadd.f32 %v4536_v59, %v1879_v8  ;;  %v1901_v8 = vand.u32 2147483648, %v6049_v22 }
 0x315   :  { %v1888_v60 = vor.u32 1.1754944e-38, %v1887_v46 }
 0x316   :  { %v6051_v17 = vpop.f32.mrf.mxu0  ;;  %605 = vmatmul.f32.gmra.mxu1 %v5645_v23  ;;  %v1874_v23 = vor.u32 1.1754944e-38, %v1873_v9  ;;  %v1884_v9 = vsel %vm1883_vm1, %v4536_v59, %v1880_v48  ;;  %v1899_v59 = vand.u32 2147483647, %v6049_v22 }
 0x317   :  { %v1889_v63 = vsel %vm1886_vm2, %v1888_v60, %v1884_v9 }
 0x318   :  { %v6065_v15 = vpop.f32.mrf.mxu1  ;;  %v1875_v19 = vsel %vm1872_vm14, %v1874_v23, %v1870_v39  ;;  %v1970_v29 = vmul.f32 %v5929_v35, %v1889_v63  ;;  %vm1900_vm6 = vcmp.eq.f32.partialorder %v1899_v59, 8.507059e+37  ;;  %v1999_v59 = vsub.f32 %v5674_v43, %v5863_v21 }
 0x319   :  { %v1969_v37 = vmul.f32 %v5923_v20, %v1875_v19  ;;  %v1028_v43 = vmax.f32 %v6046_v14, %v6058_v2 }
 0x31e   :  { %v6061_v56 = vpop.f32.mrf.mxu0  ;;  %608 = vmatmul.f32.gmra.mxu1 %v5658_v58 }
 0x320   :  { %v6076_v58 = vpop.f32.mrf.mxu1 }
 0x321   :  { %3220 = vxpose.xlu2.b32.start [1/4] (short) %v1968_v24, 128  ;;  %v1894_v24 = vadd.f32 %v4538_v1, %v1893_v44 }
 0x323   :  { %v6071_v27 = vpop.trf.xlu1  ;;  %v1898_v39 = vsel %vm1897_vm5, %v4538_v1, %v1894_v24 }
 0x326   :  { %v6069_v16 = vpop.f32.mrf.mxu0  ;;  %611 = vmatmul.f32.gmra.mxu1 %v5670_v34  ;;  %v1902_v34 = vor.u32 1.1754944e-38, %v1901_v8 }
 0x328   :  { %v6087_v23 = vpop.f32.mrf.mxu1  ;;  %v1903_v19 = vsel %vm1900_vm6, %v1902_v34, %v1898_v39  ;;  %v2014_v39 = vmul.f32 1.442695, %v1999_v59 }
 0x329   :  { %3221 = vxpose.xlu2.b32.cont [2/4] (short) %v1969_v37, 128  ;;  %v1971_v48 = vmul.f32 %v5936_v32, %v1903_v19 }
 0x32b   :  { %v6082_v20 = vpop.trf.xlu1 }
 0x32e   :  { %v6080_v50 = vpop.f32.mrf.mxu0  ;;  %614 = vmatmul.f32.gmra.mxu1 %v5683_v12 }
 0x330   :  { %v6095_v35 = vpop.f32.mrf.mxu1 }
 0x331   :  { %3222 = vxpose.xlu2.b32.cont [3/4] (short) %v1970_v29, 128 }
 0x333   :  { %v6093_v46 = vpop.trf.xlu1 }
 0x336   :  { %v6090_v26 = vpop.f32.mrf.mxu0  ;;  %617 = vmatmul.f32.gmra.mxu1 %v5702_v28 }
 0x338   :  { %v6100_v1 = vpop.f32.mrf.mxu1 }
 0x339   :  { %3223 = vxpose.xlu2.b32.end [4/4] (short) %v1971_v48, 128 }
 0x33b   :  { %v6102_v37 = vpop.trf.xlu1 }
 0x33e   :  { %v6098_v22 = vpop.f32.mrf.mxu0  ;;  %620 = vmatmul.f32.gmra.mxu1 %v5717_v53 }
 0x343   :  { %v6107_v4 = vpop.f32.mrf.mxu1  ;;  %v6110_v32 = vpop.trf.xlu1 }
 0x346   :  { %v6105_v12 = vpop.f32.mrf.mxu0  ;;  %623 = vmatmul.f32.gmra.mxu1 %v5729_v54 }
 0x34b   :  { %v6114_v9 = vpop.f32.mrf.mxu1  ;;  %v6117_v28 = vpop.trf.xlu1 }
 0x34c   :  { %8279 = vst [vmem:[#allocation47_spill] sm:$0xff] %v6114_v9 }
 0x34e   :  { %v6112_v44 = vpop.f32.mrf.mxu0  ;;  %626 = vmatmul.f32.gmra.mxu1 %v5740_v33 }
 0x353   :  { %v6121_v63 = vpop.f32.mrf.mxu1  ;;  %v6125_v54 = vpop.trf.xlu1 }
 0x354   :  { %8280 = vst [vmem:[#allocation88_spill] sm:$0xff] %v6121_v63  ;;  %v6193_v63 = vld [vmem:[#allocation23 + $0x78] sm:$0xff] }
 0x356   :  { %v6119_v60 = vpop.f32.mrf.mxu0  ;;  %629 = vmatmul.f32.gmra.mxu1 %v5755_v30 }
 0x35b   :  { %v1989_v53 = vpop.xlane.xlu2 %1988  ;;  %v6131_v33 = vpop.f32.mrf.mxu1 }
 0x35c   :  { %v1998_v24 = vsub.f32 %v6000_v55, %v1989_v53  ;;  %8281 = vst [vmem:[#allocation89_spill] sm:$0xff] %v6131_v33  ;;  %v6134_v34 = vpop.trf.xlu1  ;;  %v1029_v53 = vmax.f32 %v1028_v43, %v6065_v15 }
 0x35e   :  { %v2012_v8 = vmul.f32 1.442695, %v1998_v24  ;;  %v6127_v29 = vpop.f32.mrf.mxu0  ;;  %632 = vmatmul.f32.gmra.mxu1 %v5768_v0 }
 0x360   :  { %4539 = vpow2.f32 %v2012_v8  ;;  %v1030_v8 = vmax.f32 %v1029_v53, %v6076_v58 }
 0x361   :  { %4541 = vpow2.f32 %v2014_v39 }
 0x362   :  { %4543 = vrcp.f32 %v6163_v51 }
 0x363   :  { %v6141_v30 = vpop.f32.mrf.mxu1  ;;  %v6169_v42 = vpop.trf.xlu0  ;;  %4545 = vrcp.f32 %v6177_v6 }
 0x364   :  { %8282 = vst [vmem:[#allocation90_spill] sm:$0xff] %v6141_v30  ;;  %v6146_v21 = vpop.trf.xlu1 }
 0x365   :  { %8285 = vst [vmem:[#allocation93_spill] sm:$0xff] %v6169_v42 }
 0x366   :  { %v6136_v19 = vpop.eup %4539  ;;  %v6138_v55 = vpop.f32.mrf.mxu0  ;;  %635 = vmatmul.f32.gmra.mxu1 %v5800_v18  ;;  %v1031_v18 = vmax.f32 %v1030_v8, %v6087_v23 }
 0x367   :  { %2050 = vmatmul.f32.gmra.mxu3 %v6136_v19  ;;  %v6148_v48 = vpop.eup %4541 }
 0x368   :  { %v1032_v7 = vmax.f32 %v1031_v18, %v6095_v35 }
 0x36b   :  { %v6154_v24 = vpop.f32.mrf.mxu1  ;;  %v6183_v42 = vpop.trf.xlu0 }
 0x36c   :  { %8283 = vst [vmem:[#allocation91_spill] sm:$0xff] %v6154_v24  ;;  %v6158_v59 = vpop.trf.xlu1  ;;  %v8291_v24 = vld [vmem:[#allocation64_spill] sm:$0xff] }
 0x36d   :  { %8289 = vst [vmem:[#allocation95_spill] sm:$0xff] %v6183_v42 }
 0x36e   :  { %v6150_v0 = vpop.f32.mrf.mxu0  ;;  %638 = vmatmul.f32.gmra.mxu1 %v5812_v38  ;;  %v1033_v38 = vmax.f32 %v1032_v7, %v6100_v1  ;;  %8292 = vst [vmem:[#allocation64_spill] sm:$0xff] %v6193_v63 }
 0x36f   :  { %2053 = vmatmul.f32.gmra.mxu3 %v6148_v48 }
 0x370   :  { %v1034_v8 = vmax.f32 %v1033_v38, %v6107_v4 }
 0x373   :  { %v6161_v25 = vpop.f32.mrf.mxu1 }
 0x374   :  { %8284 = vst [vmem:[#allocation92_spill] sm:$0xff] %v6161_v25  ;;  %v6167_v43 = vpop.trf.xlu1  ;;  %v1035_v25 = vrot.slane %v1034_v8, 4 }
 0x376   :  { %v2344_v39 = vpop.f32.mrf.mxu0  ;;  %641 = vmatmul.f32.gmra.mxu1 %v5821_v40  ;;  %v6181_v40 = vpop.eup %4543  ;;  %v1036_v38 = vmax.f32 %v1034_v8, %v1035_v25 }
 0x377   :  { %v6191_v33 = vpop.eup %4545  ;;  %v6201_v25 = vpop.trf.xlu0  ;;  %vm2119_vm7 = vweird.f32 %v6181_v40 }
 0x378   :  { %v1037_v9 = vrot.slane %v1036_v38, 2  ;;  %8294 = vst [vmem:[#allocation98_spill] sm:$0xff] %v6201_v25  ;;  %vm6229_vm9 = vmor %vm2118_vm8, %vm2119_vm7  ;;  %vm2133_vm11 = vweird.f32 %v6191_v33 }
 0x379   :  { %vm6273_vm14 = vmor %vm2132_vm13, %vm2133_vm11 }
 0x37a   :  { %v1038_v8 = vmax.f32 %v1036_v38, %v1037_v9  ;;  %v2124_v38 = vand.u32 2147483648, %v6163_v51 }
 0x37b   :  { %v6173_v36 = vpop.f32.mrf.mxu1 }
 0x37c   :  { %8286 = vst [vmem:[#allocation94_spill] sm:$0xff] %v6173_v36  ;;  %v6179_v31 = vpop.trf.xlu1  ;;  %v2114_v36 = vmul.f32 %v6181_v40, %v6163_v51  ;;  %v1039_v9 = vrot.slane %v1038_v8, 1 }
 0x37d   :  { %8288 = vst [vmem:[#allocation62_spill] sm:$0xff] %v6179_v31  ;;  %v6206_v31 = vld [vmem:[#allocation23 + $0x68] sm:$0xff] }
 0x37e   :  { %v2347_v53 = vpop.f32.mrf.mxu0  ;;  %644 = vmatmul.f32.gmra.mxu1 %v8287_v47  ;;  %v2115_v47 = vsub.f32 1.0, %v2114_v36  ;;  %v2128_v36 = vmul.f32 %v6191_v33, %v6177_v6 }
 0x380   :  { %v2129_v25 = vsub.f32 1.0, %v2128_v36  ;;  %v6225_v36 = vld [vmem:[#allocation23 + $0x50] sm:$0xff] }
 0x381   :  { %8297 = vst [vmem:[#allocation101_spill] sm:$0xff] %v6225_v36 }
 0x383   :  { %v6186_v7 = vpop.f32.mrf.mxu1 }
 0x384   :  { %8290 = vst [vmem:[#allocation96_spill] sm:$0xff] %v6186_v7  ;;  %v6196_v42 = vpop.trf.xlu1  ;;  %v6198_v7 = vld [vmem:[#allocation23 + $0x70] sm:$0xff] }
 0x385   :  { %8293 = vst [vmem:[#allocation97_spill] sm:$0xff] %v6198_v7 }
 0x386   :  { %v2350_v18 = vpop.f32.mrf.mxu0  ;;  %647 = vmatmul.f32.gmra.mxu1 %v8291_v24  ;;  %v2116_v24 = vmul.f32 %v6181_v40, %v2115_v47  ;;  %v2122_v47 = vand.u32 2147483647, %v6163_v51  ;;  %v6237_v51 = vpop.trf.xlu0 }
 0x387   :  { %v2370_v62 = vmul.f32 %v6198_v7, %v2350_v18  ;;  %8300 = vst [vmem:[#allocation102_spill] sm:$0xff] %v6237_v51 }
 0x388   :  { %v2117_v7 = vadd.f32 %v6181_v40, %v2116_v24  ;;  %v2366_v24 = vmul.f32 %v6225_v36, %v6138_v55  ;;  %v2125_v36 = vor.u32 1.1754944e-38, %v2124_v38  ;;  %vm2123_vm10 = vcmp.eq.f32.partialorder %v2122_v47, 8.507059e+37 }
 0x389   :  { %v2138_v47 = vand.u32 2147483648, %v6177_v6 }
 0x38e   :  { %v2353_v30 = vpop.f32.mrf.mxu0 }
 0x38f   :  { %v2371_v5 = vmul.f32 %v6193_v63, %v2353_v30  ;;  %v2369_v30 = vmul.f32 %v6206_v31, %v2347_v53  ;;  %v6209_v63 = vpop.f32.mrf.mxu1 }
 0x390   :  { %8295 = vst [vmem:[#allocation99_spill] sm:$0xff] %v6209_v63  ;;  %v6239_v63 = vmax.f32 %v1038_v8, %v1039_v9 }
 0x391   :  { %2372 = vmatpush.msrb.mxu1 %v2371_v5  ;;  %4380 = vmatpush.msrb.mxu3 %v2371_v5  ;;  %v6211_v5 = vld [vmem:[#allocation23 + $0x60] sm:$0xff] }
 0x392   :  { %v2368_v18 = vmul.f32 %v6211_v5, %v2344_v39  ;;  %v6223_v39 = vpop.trf.xlu1  ;;  %v1120_v9 = vsub.f32 %v6046_v14, %v6239_v63  ;;  %v6267_v14 = vld [vmem:[#allocation23 + $0x30] sm:$0xff] }
 0x393   :  { %2373 = vmatpush.msrb.mxu1 %v2370_v62  ;;  %4381 = vmatpush.msrb.mxu3 %v2370_v62  ;;  %v6216_v62 = vld [vmem:[#allocation23 + $0x58] sm:$0xff] }
 0x394   :  { %8296 = vst [vmem:[#allocation100_spill] sm:$0xff] %v6216_v62  ;;  %v2367_v53 = vmul.f32 %v6216_v62, %v6150_v0  ;;  %v2121_v0 = vsel %vm6229_vm9, %v6181_v40, %v2117_v7  ;;  %v6247_v40 = vld [vmem:[#allocation23 + $0x40] sm:$0xff] }
 0x395   :  { %2374 = vmatpush.msrb.mxu1 %v2369_v30  ;;  %4382 = vmatpush.msrb.mxu3 %v2369_v30  ;;  %v2364_v7 = vmul.f32 %v6247_v40, %v6119_v60  ;;  %v1122_v60 = vsub.f32 %v6058_v2, %v6239_v63  ;;  %v6280_v2 = vld [vmem:[#allocation23 + $0x28] sm:$0xff] }
 0x397   :  { %2375 = vmatpush.msrb.mxu1 %v2368_v18  ;;  %4383 = vmatpush.msrb.mxu3 %v2368_v18  ;;  %v2130_v18 = vmul.f32 %v6191_v33, %v2129_v25  ;;  %v6245_v62 = vpop.f32.mrf.mxu1  ;;  %v2126_v25 = vsel %vm2123_vm10, %v2125_v36, %v2121_v0  ;;  %v6308_v0 = vld [vmem:[#allocation23 + $0x10] sm:$0xff] }
 0x398   :  { %8301 = vst [vmem:[#allocation103_spill] sm:$0xff] %v6245_v62  ;;  %v2173_v36 = vmul.f32 %v5849_v13, %v2126_v25  ;;  %v1189_v25 = vmul.f32 1.442695, %v1122_v60  ;;  %v6462_v62 = vld [vmem:[#allocation20 + $0x60] sm:$0xff] }
 0x399   :  { %2376 = vmatpush.msrb.mxu1 %v2367_v53  ;;  %4384 = vmatpush.msrb.mxu3 %v2367_v53  ;;  %v6241_v53 = vld [vmem:[#allocation23 + $0x48] sm:$0xff]  ;;  %v2131_v8 = vadd.f32 %v6191_v33, %v2130_v18  ;;  %v2361_v18 = vmul.f32 %v6280_v2, %v6098_v22  ;;  %v8306_v22 = vld [vmem:[#allocation37_spill] sm:$0xff] }
 0x39a   :  { %v2365_v55 = vmul.f32 %v6241_v53, %v6127_v29  ;;  %v6255_v29 = vld [vmem:[#allocation23 + $0x38] sm:$0xff]  ;;  %v6265_v30 = vpop.trf.xlu1 }
 0x39b   :  { %2377 = vmatpush.msrb.mxu1 %v2366_v24  ;;  %4385 = vmatpush.msrb.mxu3 %v2366_v24  ;;  %v2363_v38 = vmul.f32 %v6255_v29, %v6112_v44  ;;  %v2136_v24 = vand.u32 2147483647, %v6177_v6  ;;  %v2362_v44 = vmul.f32 %v6267_v14, %v6105_v12  ;;  %v2135_v13 = vsel %vm6273_vm14, %v6191_v33, %v2131_v8  ;;  %v6290_v33 = vld [vmem:[#allocation23 + $0x20] sm:$0xff] }
 0x39c   :  { %v1185_v6 = vmul.f32 1.442695, %v1120_v9  ;;  %v2139_v12 = vor.u32 1.1754944e-38, %v2138_v47  ;;  %v2360_v8 = vmul.f32 %v6290_v33, %v6090_v26  ;;  %v6296_v47 = vadd.f32 %v6008_v49, %v8306_v22  ;;  %v8310_v22 = vld [vmem:[#allocation57_spill] sm:$0xff] }
 0x39d   :  { %2378 = vmatpush.msrb.mxu1 %v2365_v55  ;;  %4386 = vmatpush.msrb.mxu3 %v2365_v55  ;;  %vm2137_vm15 = vcmp.eq.f32.partialorder %v2136_v24, 8.507059e+37 }
 0x39e   :  { %v2140_v9 = vsel %vm2137_vm15, %v2139_v12, %v2135_v13  ;;  %4547 = vpow2.f32 %v1185_v6  ;;  %v2358_v13 = vmul.f32 %v6308_v0, %v6069_v16  ;;  %v6322_v16 = vld [vmem:[#allocation23] sm:$0xff] }
 0x39f   :  { %2379 = vmatpush.msrb.mxu1 %v2364_v7  ;;  %4387 = vmatpush.msrb.mxu3 %v2364_v7  ;;  %v6284_v55 = vpop.f32.mrf.mxu1  ;;  %v1124_v7 = vsub.f32 %v6065_v15, %v6239_v63  ;;  %v6298_v15 = vld [vmem:[#allocation23 + $0x18] sm:$0xff]  ;;  %4549 = vpow2.f32 %v1189_v25  ;;  %v2174_v26 = vmul.f32 %v5856_v10, %v2140_v9  ;;  %v1128_v10 = vsub.f32 %v6087_v23, %v6239_v63 }
 0x3a0   :  { %8304 = vst [vmem:[#allocation104_spill] sm:$0xff] %v6284_v55  ;;  %v2359_v60 = vmul.f32 %v6298_v15, %v6080_v50  ;;  %v6312_v50 = vld [vmem:[#allocation23 + $0x8] sm:$0xff]  ;;  %v8308_v23 = vld [vmem:[#allocation54_spill] sm:$0xff] }
 0x3a1   :  { %2380 = vmatpush.msrb.mxu1 %v2363_v38  ;;  %4388 = vmatpush.msrb.mxu3 %v2363_v38  ;;  %v6288_v38 = vpop.trf.xlu0  ;;  %v1193_v24 = vmul.f32 1.442695, %v1124_v7  ;;  %v2356_v7 = vmul.f32 %v6322_v16, %v6051_v17 }
 0x3a2   :  { %3422 = vxpose.xlu2.b32.start [1/2] (short) %v2173_v36, 128  ;;  %8305 = vst [vmem:[#allocation105_spill] sm:$0xff] %v6288_v38  ;;  %v1126_v36 = vsub.f32 %v6076_v58, %v6239_v63  ;;  %v2357_v58 = vmul.f32 %v6312_v50, %v6061_v56  ;;  %v6331_v56 = vld [vmem:[%s8032_s14] ss:$0 sm:$0xff] }
 0x3a3   :  { %2381 = vmatpush.msrb.mxu1 %v2362_v44  ;;  %4389 = vmatpush.msrb.mxu3 %v2362_v44  ;;  %v6305_v44 = vpop.trf.xlu1  ;;  %4551 = vpow2.f32 %v1193_v24  ;;  %v995_v17 = vadd.f32 %v6331_v56, %v5885_v52  ;;  %v1201_v24 = vmul.f32 1.442695, %v1128_v10  ;;  %v1001_v52 = vadd.f32 %v6331_v56, %v5904_v3  ;;  %v8313_v3 = vld [vmem:[#allocation59_spill] sm:$0xff] }
 0x3a4   :  { %v6320_v12 = vpop.eup %4547 }
 0x3a5   :  { %2382 = vmatpush.msrb.mxu1 %v2361_v18  ;;  %4390 = vmatpush.msrb.mxu3 %v2361_v18  ;;  %v1197_v18 = vmul.f32 1.442695, %v1126_v36  ;;  %v6326_v25 = vpop.eup %4549  ;;  %v1130_v36 = vsub.f32 %v6095_v35, %v6239_v63  ;;  %v1132_v35 = vsub.f32 %v6100_v1, %v6239_v63  ;;  %v1541_v1 = vmul.f32 %v8313_v3, %v5869_v61 }
 0x3a7   :  { %2383 = vmatpush.msrb.mxu1 %v2360_v8  ;;  %4391 = vmatpush.msrb.mxu3 %v2360_v8  ;;  %v6316_v6 = vpop.f32.mrf.mxu1  ;;  %v1527_v8 = vmul.f32 %v8308_v23, %v5869_v61  ;;  %4553 = vpow2.f32 %v1197_v18  ;;  %v992_v23 = vadd.f32 %v6331_v56, %v5867_v41  ;;  %v1205_v10 = vmul.f32 1.442695, %v1130_v36  ;;  %v8312_v41 = vld [vmem:[#allocation55_spill] sm:$0xff] }
 0x3a8   :  { %1615 = vmax.xlane.f32.xlu0 %v6296_v47  ;;  %8307 = vst [vmem:[#allocation37_spill] sm:$0xff] %v6316_v6  ;;  %4555 = vpow2.f32 %v1201_v24  ;;  %v998_v18 = vadd.f32 %v6331_v56, %v5895_v57  ;;  %v1209_v36 = vmul.f32 1.442695, %v1132_v35 }
 0x3a9   :  { %2384 = vmatpush.msrb.mxu1 %v2359_v60  ;;  %4392 = vmatpush.msrb.mxu3 %v2359_v60  ;;  %v6335_v9 = vpop.trf.xlu0  ;;  %v1539_v60 = vmul.f32 %v8310_v22, %v5869_v61  ;;  %4557 = vpow2.f32 %v1205_v10  ;;  %v1007_v10 = vadd.f32 %v6331_v56, %v5921_v11 }
 0x3aa   :  { %3423 = vxpose.xlu2.b32.end [2/2] (short) %v2174_v26, 128  ;;  %8309 = vst [vmem:[#allocation54_spill] sm:$0xff] %v6335_v9  ;;  %4559 = vpow2.f32 %v1209_v36  ;;  %v8322_v36 = vld [vmem:[#allocation67_spill] sm:$0xff]  ;;  %v6480_v9 = vld [vmem:[#allocation20 + $0x48] sm:$0xff] }
 0x3ab   :  { %2385 = vmatpush.msrb.mxu1 %v2358_v13  ;;  %4393 = vmatpush.msrb.mxu3 %v2358_v13  ;;  %v6343_v26 = vpop.trf.xlu1  ;;  %v1324_v13 = vadd.f32 %v6326_v25, %v6320_v12 }
 0x3ad   :  { %2386 = vmatpush.msrb.mxu1 %v2357_v58  ;;  %4394 = vmatpush.msrb.mxu3 %v2357_v58  ;;  %v6347_v58 = vpop.eup %4551 }
 0x3ae   :  { %v6360_v22 = vpop.eup %4553 }
 0x3af   :  { %2387 = vmatpush.msrb.mxu1 %v2356_v7  ;;  %4395 = vmatpush.msrb.mxu3 %v2356_v7  ;;  %v1325_v7 = vadd.f32 %v6347_v58, %v1324_v13 }
 0x3b0   :  { %2388 = vmatmul.f32.vlgmr.msrb.gmra.mxu1 %v1527_v8  ;;  %2406 = vmatmul.f32.vlgmr.msrb.gmra.mxu3 %v1539_v60  ;;  %v6358_v8 = vpop.f32.mrf.mxu1  ;;  %v1529_v60 = vmul.f32 %v8312_v41, %v5869_v61 }
 0x3b1   :  { %2508 = vmatpush.msra.mxu3 %v995_v17  ;;  %8311 = vst [vmem:[#allocation57_spill] sm:$0xff] %v6358_v8  ;;  %v1134_v17 = vsub.f32 %v6107_v4, %v6239_v63  ;;  %v6368_v57 = vpop.trf.xlu0  ;;  %v1326_v13 = vadd.f32 %v6360_v22, %v1325_v7  ;;  %v8317_v4 = vld [vmem:[#allocation56_spill] sm:$0xff] }
 0x3b2   :  { %8314 = vst [vmem:[#allocation55_spill] sm:$0xff] %v6368_v57  ;;  %v1531_v63 = vmul.f32 %v8317_v4, %v5869_v61  ;;  %v1004_v61 = vadd.f32 %v6331_v56, %v5912_v45  ;;  %v8325_v4 = vld [vmem:[#allocation68_spill] sm:$0xff] }
 0x3b3   :  { %2509 = vmatpush.msra.mxu3 %v992_v23  ;;  %v6370_v24 = vpop.trf.xlu1  ;;  %v6373_v23 = vpop.eup %4555 }
 0x3b4   :  { %8315 = vst [vmem:[#allocation59_spill] sm:$0xff] %v6373_v23  ;;  %v6376_v41 = vpop.eup %4557 }
 0x3b5   :  { %3013 = vmatpush.msrb.mxu3 %v1001_v52  ;;  %v1213_v52 = vmul.f32 1.442695, %v1134_v17  ;;  %8316 = vst [vmem:[#allocation106_spill] sm:$0xff] %v6376_v41  ;;  %v6389_v3 = vpop.eup %4559 }
 0x3b6   :  { %8319 = vst [vmem:[#allocation107_spill] sm:$0xff] %v6389_v3 }
 0x3b7   :  { %3014 = vmatpush.msrb.mxu3 %v998_v18  ;;  %v1327_v18 = vadd.f32 %v6373_v23, %v1326_v13  ;;  %4561 = vpow2.f32 %v1213_v52 }
 0x3b8   :  { %2391 = vmatmul.f32.gmra.mxu1 %v1529_v60  ;;  %2409 = vmatmul.f32.gmra.mxu3 %v1541_v1  ;;  %v6380_v35 = vpop.f32.mrf.mxu1 }
 0x3b9   :  { %8318 = vst [vmem:[#allocation56_spill] sm:$0xff] %v6380_v35  ;;  %v1328_v60 = vadd.f32 %v6376_v41, %v1327_v18  ;;  %v6393_v1 = vpop.trf.xlu0 }
 0x3ba   :  { %8320 = vst [vmem:[#allocation108_spill] sm:$0xff] %v6393_v1 }
 0x3bb   :  { %v6384_v7 = vpop.trf.xlu1  ;;  %v1329_v11 = vadd.f32 %v6389_v3, %v1328_v60 }
 0x3bd   :  { %v6396_v17 = vpop.eup %4561 }
 0x3be   :  { %8321 = vst [vmem:[#allocation109_spill] sm:$0xff] %v6396_v17  ;;  %v1330_v13 = vadd.f32 %v6396_v17, %v1329_v11  ;;  %v8327_v11 = vld [vmem:[#allocation39_spill] sm:$0xff] }
 0x3c0   :  { %2394 = vmatmul.f32.gmra.mxu1 %v1531_v63  ;;  %4268 = vmatmul.msk.f32.vlgmr.msra.gmra.mxu3 %vm2445_vm0, %v6071_v27  ;;  %v6402_v27 = vpop.f32.mrf.mxu1  ;;  %v1331_v18 = vrot.slane %v1330_v13, 4 }
 0x3c1   :  { %3516 = vmatpush.msra.mxu3 %v1007_v10  ;;  %8323 = vst [vmem:[#allocation67_spill] sm:$0xff] %v6402_v27  ;;  %v6406_v45 = vpop.trf.xlu0  ;;  %v8329_v27 = vld [vmem:[#allocation69_spill] sm:$0xff] }
 0x3c2   :  { %8324 = vst [vmem:[#allocation110_spill] sm:$0xff] %v6406_v45  ;;  %v1332_v63 = vadd.f32 %v1331_v18, %v1330_v13 }
 0x3c3   :  { %3517 = vmatpush.msra.mxu3 %v1004_v61  ;;  %v6404_v52 = vpop.trf.xlu1 }
 0x3c4   :  { %v1333_v61 = vrot.slane %v1332_v63, 2 }
 0x3c8   :  { %2397 = vmatmul.f32.gmra.mxu1 %v8322_v36  ;;  %4269 = vmatmul.msk.f32.gmra.mxu3 %vm2445_vm0, %v6082_v20  ;;  %v6411_v10 = vpop.f32.mrf.mxu1  ;;  %v6417_v20 = vadd.f32 %v6008_v49, %v8327_v11  ;;  %v6446_v11 = vld [vmem:[#allocation20 + $0x78] sm:$0xff] }
 0x3c9   :  { %8326 = vst [vmem:[#allocation68_spill] sm:$0xff] %v6411_v10  ;;  %v6419_v36 = vpop.trf.xlu0  ;;  %2657 = vmatpush.msra.mxu0 %v6446_v11 }
 0x3ca   :  { %8328 = vst [vmem:[#allocation39_spill] sm:$0xff] %v6419_v36 }
 0x3cb   :  { %v6413_v60 = vpop.trf.xlu1 }
 0x3d0   :  { %2400 = vmatmul.f32.gmra.mxu1 %v8325_v4  ;;  %4270 = vmatmul.msk.f32.gmra.mxu3 %vm2445_vm0, %v6093_v46  ;;  %v1334_v4 = vadd.f32 %v1333_v61, %v1332_v63  ;;  %v6425_v13 = vpop.f32.mrf.mxu1 }
 0x3d1   :  { %8330 = vst [vmem:[#allocation69_spill] sm:$0xff] %v6425_v13  ;;  %v6429_v10 = vpop.trf.xlu0  ;;  %v6457_v13 = vld [vmem:[#allocation20 + $0x70] sm:$0xff] }
 0x3d2   :  { %v1335_v46 = vrot.slane %v1334_v4, 1  ;;  %8331 = vst [vmem:[#allocation111_spill] sm:$0xff] %v6429_v10  ;;  %2658 = vmatpush.msra.mxu0 %v6457_v13 }
 0x3d3   :  { %v6427_v18 = vpop.trf.xlu1 }
 0x3d4   :  { %v6431_v35 = vadd.f32 %v1335_v46, %v1334_v4 }
 0x3d6   :  { %4563 = vrcp.f32 %v6431_v35  ;;  %vm1434_vm2 = vweird.f32 %v6431_v35  ;;  %v1440_v57 = vand.u32 2147483648, %v6431_v35 }
 0x3d7   :  { %1617 = vmax.xlane.f32.xlu1 %v6417_v20 }
 0x3d8   :  { %2403 = vmatmul.f32.gmra.mxu1 %v8329_v27  ;;  %4271 = vmatmul.msk.f32.gmra.mxu3 %vm2445_vm0, %v6102_v37  ;;  %v6436_v49 = vpop.f32.mrf.mxu1 }
 0x3d9   :  { %8332 = vst [vmem:[#allocation112_spill] sm:$0xff] %v6436_v49  ;;  %v6442_v63 = vpop.trf.xlu0  ;;  %v6459_v49 = vld [vmem:[#allocation20 + $0x68] sm:$0xff] }
 0x3da   :  { %8333 = vst [vmem:[#allocation113_spill] sm:$0xff] %v6442_v63  ;;  %2659 = vmatpush.msra.mxu0 %v6459_v49 }
 0x3db   :  { %v6438_v27 = vpop.trf.xlu1 }
 0x3dc   :  { %v6444_v61 = vpop.eup %4563  ;;  %2660 = vmatpush.msra.mxu0 %v6462_v62 }
 0x3dd   :  { %vm1435_vm3 = vweird.f32 %v6444_v61 }
 0x3de   :  { %vm6488_vm7 = vmor %vm1434_vm2, %vm1435_vm3 }
 0x3e0   :  { %4272 = vmatmul.msk.f32.gmra.mxu3 %vm2445_vm0, %v6110_v32  ;;  %v1430_v32 = vmul.f32 %v6444_v61, %v6431_v35  ;;  %v6453_v46 = vpop.f32.mrf.mxu1 }
 0x3e1   :  { %8334 = vst [vmem:[#allocation114_spill] sm:$0xff] %v6453_v46  ;;  %v6464_v10 = vpop.trf.xlu0  ;;  %v6467_v46 = vld [vmem:[#allocation20 + $0x58] sm:$0xff] }
 0x3e2   :  { %v1431_v8 = vsub.f32 1.0, %v1430_v32  ;;  %8335 = vst [vmem:[#allocation115_spill] sm:$0xff] %v6464_v10  ;;  %2661 = vmatpush.msra.mxu0 %v6467_v46  ;;  %v1438_v10 = vand.u32 2147483647, %v6431_v35 }
 0x3e4   :  { %v1432_v36 = vmul.f32 %v6444_v61, %v1431_v8  ;;  %vm1439_vm8 = vcmp.eq.f32.partialorder %v1438_v10, 8.507059e+37 }
 0x3e6   :  { %v1433_v38 = vadd.f32 %v6444_v61, %v1432_v36 }
 0x3e8   :  { %4273 = vmatmul.msk.f32.gmra.mxu3 %vm2445_vm0, %v6117_v28  ;;  %v6455_v28 = vpop.trf.xlu1  ;;  %v1437_v35 = vsel %vm6488_vm7, %v6444_v61, %v1433_v38 }
 0x3e9   :  { %v6498_v41 = vpop.trf.xlu0 }
 0x3ea   :  { %v2051_v37 = vpop.f32.mrf.mxu3  ;;  %8339 = vst [vmem:[#allocation117_spill] sm:$0xff] %v6498_v41 }
 0x3eb   :  { %4565 = vrcp.f32 %v2051_v37  ;;  %v2150_v32 = vand.u32 2147483647, %v2051_v37  ;;  %vm2146_vm4 = vweird.f32 %v2051_v37 }
 0x3ed   :  { %vm2151_vm6 = vcmp.eq.f32.partialorder %v2150_v32, 8.507059e+37 }
 0x3f0   :  { %4274 = vmatmul.msk.f32.gmra.mxu3 %vm2445_vm0, %v6125_v54  ;;  %v2152_v54 = vand.u32 2147483648, %v2051_v37  ;;  %v6494_v17 = vpop.trf.xlu1 }
 0x3f1   :  { %v4566_v4 = vpop.eup %4565 }
 0x3f2   :  { %v2142_v6 = vmul.f32 %v4566_v4, %v2051_v37  ;;  %v2054_v55 = vpop.f32.mrf.mxu3  ;;  %vm2147_vm1 = vweird.f32 %v4566_v4  ;;  %v2153_v8 = vor.u32 1.1754944e-38, %v2152_v54  ;;  %v6492_v54 = vpop.f32.mrf.mxu1 }
 0x3f3   :  { %4567 = vrcp.f32 %v2054_v55  ;;  %vm2148_vm5 = vmor %vm2146_vm4, %vm2147_vm1  ;;  %8338 = vst [vmem:[#allocation116_spill] sm:$0xff] %v6492_v54  ;;  %v2166_v32 = vand.u32 2147483648, %v2054_v55  ;;  %vm2160_vm10 = vweird.f32 %v2054_v55 }
 0x3f4   :  { %v2143_v63 = vsub.f32 1.0, %v2142_v6 }
 0x3f6   :  { %v2144_v45 = vmul.f32 %v4566_v4, %v2143_v63  ;;  %v6478_v63 = vld [vmem:[#allocation20 + $0x50] sm:$0xff] }
 0x3f7   :  { %2662 = vmatpush.msra.mxu0 %v6478_v63 }
 0x3f8   :  { %v2145_v1 = vadd.f32 %v4566_v4, %v2144_v45  ;;  %4275 = vmatmul.msk.f32.gmra.mxu3 %vm2445_vm0, %v6134_v34 }
 0x3f9   :  { %v4568_v6 = vpop.eup %4567  ;;  %2663 = vmatpush.msra.mxu0 %v6480_v9 }
 0x3fa   :  { %v2156_v45 = vmul.f32 %v4568_v6, %v2054_v55  ;;  %v2149_v37 = vsel %vm2148_vm5, %v4566_v4, %v2145_v1  ;;  %v1441_v1 = vor.u32 1.1754944e-38, %v1440_v57  ;;  %vm2161_vm9 = vweird.f32 %v4568_v6  ;;  %v6507_v57 = vld [vmem:[#allocation20 + $0x38] sm:$0xff]  ;;  %v6520_v61 = vpop.f32.mrf.mxu1 }
 0x3fb   :  { %v2154_v34 = vsel %vm2151_vm6, %v2153_v8, %v2149_v37  ;;  %v2164_v8 = vand.u32 2147483647, %v2054_v55  ;;  %vm2162_vm11 = vmor %vm2160_vm10, %vm2161_vm9  ;;  %v2167_v37 = vor.u32 1.1754944e-38, %v2166_v32  ;;  %v6516_v55 = vld [vmem:[#allocation20 + $0x30] sm:$0xff]  ;;  %8340 = vst [vmem:[#allocation118_spill] sm:$0xff] %v6520_v61 }
 0x3fc   :  { %v2157_v3 = vsub.f32 1.0, %v2156_v45  ;;  %v2175_v36 = vmul.f32 %v6136_v19, %v2154_v34  ;;  %v6505_v45 = vld [vmem:[#allocation20 + $0x40] sm:$0xff]  ;;  %v6522_v34 = vpop.trf.xlu1 }
 0x3fd   :  { %2664 = vmatpush.msra.mxu0 %v6505_v45  ;;  %vm2165_vm13 = vcmp.eq.f32.partialorder %v2164_v8, 8.507059e+37  ;;  %v6552_v8 = vld [vmem:[#allocation20] sm:$0xff] }
 0x3fe   :  { %v2158_v4 = vmul.f32 %v4568_v6, %v2157_v3  ;;  %3925 = vxpose.xlu0.b32.start [1/2] (short) %v2175_v36, 128  ;;  %v6509_v3 = vsel %vm1439_vm8, %v1441_v1, %v1437_v35  ;;  %v6524_v36 = vld [vmem:[#allocation20 + $0x28] sm:$0xff]  ;;  %v6538_v1 = vld [vmem:[#allocation20 + $0x10] sm:$0xff]  ;;  %8347 = vst [vmem:[#allocation125_spill] sm:$0xff] %v6552_v8 }
 0x3ff   :  { %v6514_v51 = vmul.f32 %v6360_v22, %v6509_v3  ;;  %2665 = vmatpush.msra.mxu0 %v6507_v57  ;;  %v6527_v22 = vpop.trf.xlu0  ;;  %8343 = vst [vmem:[#allocation121_spill] sm:$0xff] %v6538_v1  ;;  %v6545_v35 = vld [vmem:[#allocation20 + $0x8] sm:$0xff] }
 0x400   :  { %4276 = vmatmul.msk.f32.gmra.mxu3 %vm2445_vm0, %v6146_v21  ;;  %v2159_v19 = vadd.f32 %v4568_v6, %v2158_v4  ;;  %8341 = vst [vmem:[#allocation119_spill] sm:$0xff] %v6527_v22 }
 0x401   :  { %2666 = vmatpush.msra.mxu0 %v6516_v55  ;;  %8345 = vst [vmem:[#allocation123_spill] sm:$0xff] %v6545_v35 }
 0x402   :  { %v2163_v38 = vsel %vm2162_vm11, %v4568_v6, %v2159_v19  ;;  %v6532_v6 = vld [vmem:[#allocation20 + $0x20] sm:$0xff]  ;;  %v6540_v4 = vpop.f32.mrf.mxu1  ;;  %v8348_v19 = vld [vmem:[#allocation62_spill] sm:$0xff] }
 0x403   :  { %v2168_v21 = vsel %vm2165_vm13, %v2167_v37, %v2163_v38  ;;  %2667 = vmatpush.msra.mxu0 %v6524_v36  ;;  %8344 = vst [vmem:[#allocation122_spill] sm:$0xff] %v6540_v4 }
 0x404   :  { %v2176_v10 = vmul.f32 %v6148_v48, %v2168_v21  ;;  %v6535_v48 = vld [vmem:[#allocation20 + $0x18] sm:$0xff]  ;;  %v6542_v32 = vpop.trf.xlu1 }
 0x405   :  { %2668 = vmatpush.msra.mxu0 %v6532_v6  ;;  %8342 = vst [vmem:[#allocation120_spill] sm:$0xff] %v6535_v48 }
 0x406   :  { %3926 = vxpose.xlu0.b32.end [2/2] (short) %v2176_v10, 128 }
 0x407   :  { %2669 = vmatpush.msra.mxu0 %v6535_v48  ;;  %v8359_v48 = vld [vmem:[#allocation97_spill] sm:$0xff] }
 0x408   :  { %4277 = vmatmul.msk.f32.gmra.mxu3 %vm2445_vm0, %v6158_v59  ;;  %v6550_v59 = vpop.trf.xlu0 }
 0x409   :  { %2670 = vmatpush.msra.mxu0 %v6538_v1  ;;  %8346 = vst [vmem:[#allocation124_spill] sm:$0xff] %v6550_v59 }
 0x40a   :  { %v6557_v37 = vpop.f32.mrf.mxu1 }
 0x40b   :  { %2671 = vmatpush.msra.mxu0 %v6545_v35  ;;  %8349 = vst [vmem:[#allocation62_spill] sm:$0xff] %v6557_v37  ;;  %v8358_v35 = vld [vmem:[#allocation64_spill] sm:$0xff] }
 0x40c   :  { %v6559_v38 = vpop.trf.xlu1 }
 0x40d   :  { %2672 = vmatpush.msra.mxu0 %v6552_v8 }
 0x410   :  { %4278 = vmatmul.msk.f32.gmra.mxu3 %vm2445_vm0, %v6167_v43 }
 0x412   :  { %v6564_v43 = vpop.f32.mrf.mxu1 }
 0x413   :  { %8350 = vst [vmem:[#allocation126_spill] sm:$0xff] %v6564_v43  ;;  %v8353_v43 = vld [vmem:[#allocation77_spill] sm:$0xff] }
 0x414   :  { %v6566_v61 = vpop.trf.xlu1 }
 0x418   :  { %4279 = vmatmul.msk.f32.gmra.mxu3 %vm2445_vm0, %v8348_v19 }
 0x41b   :  { %v1616_v21 = vpop.xlane.xlu0 %1615 }
 0x41c   :  { %v1635_v10 = vsub.f32 %v6296_v47, %v1616_v21  ;;  %v2948_v37 = vpop.trf.xlu1 }
 0x41e   :  { %v1663_v4 = vmul.f32 1.442695, %v1635_v10 }
 0x420   :  { %4569 = vpow2.f32 %v1663_v4  ;;  %4280 = vmatmul.msk.f32.gmra.mxu3 %vm2445_vm0, %v6196_v42 }
 0x424   :  { %v2949_v4 = vpop.trf.xlu1 }
 0x426   :  { %v6568_v54 = vpop.eup %4569 }
 0x427   :  { %1723 = vmatmul.f32.gmra.mxu2 %v6568_v54 }
 0x428   :  { %4281 = vmatmul.msk.f32.gmra.mxu3 %vm2445_vm0, %v6223_v39  ;;  %v1013_v39 = vadd.f32 %v6331_v56, %v8353_v43 }
 0x42d   :  { %v2389_v19 = vpop.f32.mrf.mxu1 }
 0x42e   :  { %2673 = vmatmul.f32.vlgmr.msra.gmra.mxu0 %v2389_v19  ;;  %v2950_v19 = vpop.trf.xlu1 }
 0x430   :  { %4282 = vmatmul.msk.f32.gmra.mxu3 %vm2445_vm0, %v6265_v30  ;;  %v8354_v30 = vld [vmem:[#allocation75_spill] sm:$0xff] }
 0x431   :  { %v1010_v59 = vadd.f32 %v6331_v56, %v8354_v30 }
 0x433   :  { %v6575_v47 = vpop.f32.mrf.mxu3 }
 0x434   :  { %8351 = vst [vmem:[#allocation127_spill] sm:$0xff] %v6575_v47 }
 0x435   :  { %v2392_v42 = vpop.f32.mrf.mxu1 }
 0x436   :  { %2676 = vmatmul.f32.gmra.mxu0 %v2392_v42 }
 0x438   :  { %4283 = vmatmul.msk.f32.gmra.mxu3 %vm2445_vm0, %v6305_v44  ;;  %v1620_v44 = vpop.xlane.xlu2 %1619 }
 0x43b   :  { %v6579_v21 = vpop.f32.mrf.mxu3 }
 0x43c   :  { %8352 = vst [vmem:[#allocation128_spill] sm:$0xff] %v6579_v21  ;;  %v8355_v21 = vld [vmem:[#allocation42_spill] sm:$0xff] }
 0x43d   :  { %v2395_v10 = vpop.f32.mrf.mxu1  ;;  %v1637_v47 = vsub.f32 %v8355_v21, %v1620_v44 }
 0x43e   :  { %2679 = vmatmul.f32.gmra.mxu0 %v2395_v10 }
 0x43f   :  { %v1667_v56 = vmul.f32 1.442695, %v1637_v47 }
 0x440   :  { %4300 = vmatmul.msk.f32.vlgmr.msrb.gmra.mxu3 %vm2445_vm0, %v6343_v26 }
 0x441   :  { %4019 = vmatpush.msrb.mxu3 %v1013_v39 }
 0x443   :  { %4020 = vmatpush.msrb.mxu3 %v1010_v59  ;;  %v6587_v42 = vpop.f32.mrf.mxu3 }
 0x445   :  { %v2398_v22 = vpop.f32.mrf.mxu1 }
 0x446   :  { %2682 = vmatmul.f32.gmra.mxu0 %v2398_v22  ;;  %v1622_v22 = vpop.xlane.xlu2 %1621 }
 0x448   :  { %4301 = vmatmul.msk.f32.gmra.mxu3 %vm2445_vm0, %v6370_v24  ;;  %v8356_v24 = vld [vmem:[#allocation41_spill] sm:$0xff] }
 0x44a   :  { %v1618_v10 = vpop.xlane.xlu1 %1617 }
 0x44b   :  { %v1636_v43 = vsub.f32 %v6417_v20, %v1618_v10  ;;  %v6592_v41 = vpop.f32.mrf.mxu3  ;;  %v1638_v20 = vsub.f32 %v8356_v24, %v1622_v22 }
 0x44d   :  { %v1665_v26 = vmul.f32 1.442695, %v1636_v43  ;;  %v1669_v30 = vmul.f32 1.442695, %v1638_v20 }
 0x44f   :  { %4571 = vpow2.f32 %v1665_v26 }
 0x450   :  { %4302 = vmatmul.msk.f32.gmra.mxu3 %vm2445_vm0, %v6384_v7  ;;  %4573 = vpow2.f32 %v1667_v56 }
 0x451   :  { %4575 = vpow2.f32 %v1669_v30 }
 0x453   :  { %v6597_v59 = vpop.f32.mrf.mxu3 }
 0x455   :  { %v6599_v39 = vpop.eup %4571 }
 0x456   :  { %1726 = vmatmul.f32.gmra.mxu2 %v6599_v39  ;;  %v6607_v44 = vpop.eup %4573 }
 0x457   :  { %v6614_v47 = vpop.eup %4575 }
 0x458   :  { %4303 = vmatmul.msk.f32.gmra.mxu3 %vm2445_vm0, %v6404_v52  ;;  %8357 = vst [vmem:[#allocation77_spill] sm:$0xff] %v6614_v47 }
 0x45b   :  { %v6605_v21 = vpop.f32.mrf.mxu3 }
 0x45e   :  { %1729 = vmatmul.f32.gmra.mxu2 %v6607_v44 }
 0x460   :  { %4304 = vmatmul.msk.f32.gmra.mxu3 %vm2445_vm0, %v6413_v60 }
 0x463   :  { %v6612_v7 = vpop.f32.mrf.mxu3 }
 0x466   :  { %1732 = vmatmul.f32.gmra.mxu2 %v6614_v47 }
 0x468   :  { %4305 = vmatmul.msk.f32.gmra.mxu3 %vm2445_vm0, %v6427_v18 }
 0x46b   :  { %v6619_v52 = vpop.f32.mrf.mxu3 }
 0x470   :  { %4306 = vmatmul.msk.f32.gmra.mxu3 %vm2445_vm0, %v6438_v27 }
 0x473   :  { %v2529_v10 = vpop.f32.mrf.mxu3 }
 0x478   :  { %4307 = vmatmul.msk.f32.gmra.mxu3 %vm2445_vm0, %v6455_v28 }
 0x47b   :  { %v2532_v43 = vpop.f32.mrf.mxu3 }
 0x480   :  { %4308 = vmatmul.msk.f32.gmra.mxu3 %vm2445_vm0, %v6494_v17 }
 0x483   :  { %v2535_v60 = vpop.f32.mrf.mxu3 }
 0x488   :  { %4309 = vmatmul.msk.f32.gmra.mxu3 %vm2445_vm0, %v6522_v34 }
 0x48b   :  { %v2538_v26 = vpop.f32.mrf.mxu3 }
 0x490   :  { %4310 = vmatmul.msk.f32.gmra.mxu3 %vm2445_vm0, %v6542_v32 }
 0x493   :  { %v2541_v18 = vpop.f32.mrf.mxu3 }
 0x498   :  { %4311 = vmatmul.msk.f32.gmra.mxu3 %vm2445_vm0, %v6559_v38 }
 0x49b   :  { %v2544_v27 = vpop.f32.mrf.mxu3 }
 0x4a0   :  { %4312 = vmatmul.msk.f32.gmra.mxu3 %vm2445_vm0, %v6566_v61 }
 0x4a3   :  { %v2547_v28 = vpop.f32.mrf.mxu3 }
 0x4a8   :  { %4313 = vmatmul.msk.f32.gmra.mxu3 %vm2445_vm0, %v2948_v37 }
 0x4aa   :  { %v1724_v17 = vpop.f32.mrf.mxu2 }
 0x4ab   :  { %4577 = vrcp.f32 %v1724_v17  ;;  %v2550_v56 = vpop.f32.mrf.mxu3  ;;  %v1915_v20 = vand.u32 2147483648, %v1724_v17  ;;  %v1913_v38 = vand.u32 2147483647, %v1724_v17  ;;  %vm1909_vm15 = vweird.f32 %v1724_v17 }
 0x4ad   :  { %v1916_v61 = vor.u32 1.1754944e-38, %v1915_v20  ;;  %vm1914_vm2 = vcmp.eq.f32.partialorder %v1913_v38, 8.507059e+37  ;;  %v2571_v20 = vmul.f32 %v6211_v5, %v2547_v28  ;;  %v2567_v5 = vmul.f32 %v6247_v40, %v2535_v60 }
 0x4ae   :  { %v2563_v40 = vmul.f32 %v6290_v33, %v6612_v7  ;;  %v8369_v33 = vld [vmem:[#allocation96_spill] sm:$0xff] }
 0x4b0   :  { %4314 = vmatmul.msk.f32.gmra.mxu3 %vm2445_vm0, %v2949_v4 }
 0x4b1   :  { %v4578_v34 = vpop.eup %4577 }
 0x4b2   :  { %v1905_v22 = vmul.f32 %v4578_v34, %v1724_v17  ;;  %vm1910_vm14 = vweird.f32 %v4578_v34 }
 0x4b3   :  { %v2553_v24 = vpop.f32.mrf.mxu3  ;;  %vm1911_vm1 = vmor %vm1909_vm15, %vm1910_vm14 }
 0x4b4   :  { %v1906_v32 = vsub.f32 1.0, %v1905_v22  ;;  %v2573_v22 = vmul.f32 %v8359_v48, %v2553_v24  ;;  %v8366_v24 = vld [vmem:[#allocation91_spill] sm:$0xff] }
 0x4b6   :  { %v1907_v30 = vmul.f32 %v4578_v34, %v1906_v32  ;;  %v2572_v32 = vmul.f32 %v6206_v31, %v2550_v56  ;;  %v6651_v31 = vpop.trf.xlu2 }
 0x4b8   :  { %4315 = vmatmul.msk.f32.gmra.mxu3 %vm2445_vm0, %v2950_v19  ;;  %v1908_v23 = vadd.f32 %v4578_v34, %v1907_v30  ;;  %v8360_v19 = vld [vmem:[#allocation88_spill] sm:$0xff]  ;;  %v8361_v30 = vld [vmem:[#allocation47_spill] sm:$0xff] }
 0x4b9   :  { %v1054_v17 = vmax.f32 %v8361_v30, %v8360_v19 }
 0x4ba   :  { %v1912_v37 = vsel %vm1911_vm1, %v4578_v34, %v1908_v23  ;;  %v8362_v34 = vld [vmem:[#allocation100_spill] sm:$0xff] }
 0x4bb   :  { %v2556_v8 = vpop.f32.mrf.mxu3  ;;  %v1917_v47 = vsel %vm1914_vm2, %v1916_v61, %v1912_v37  ;;  %v2570_v38 = vmul.f32 %v8362_v34, %v2544_v27  ;;  %v2566_v27 = vmul.f32 %v6255_v29, %v2532_v43  ;;  %v8367_v37 = vld [vmem:[#allocation92_spill] sm:$0xff]  ;;  %v2562_v29 = vmul.f32 %v6298_v15, %v6605_v21 }
 0x4bc   :  { %v2574_v4 = vmul.f32 %v8358_v35, %v2556_v8  ;;  %v1972_v1 = vmul.f32 %v6568_v54, %v1917_v47  ;;  %v8363_v35 = vld [vmem:[#allocation89_spill] sm:$0xff]  ;;  %v8365_v47 = vld [vmem:[#allocation90_spill] sm:$0xff] }
 0x4bd   :  { %v1055_v54 = vmax.f32 %v1054_v17, %v8363_v35  ;;  %v8364_v8 = vld [vmem:[#allocation101_spill] sm:$0xff] }
 0x4be   :  { %2575 = vmatpush.msra.mxu1 %v2574_v4  ;;  %3723 = vxpose.xlu2.b32.start [1/4] (short) %v1972_v1, 128  ;;  %v2569_v48 = vmul.f32 %v8364_v8, %v2541_v18  ;;  %v2568_v1 = vmul.f32 %v6241_v53, %v2538_v26  ;;  %v2565_v18 = vmul.f32 %v6267_v14, %v2529_v10  ;;  %v6662_v26 = vpop.trf.xlu2  ;;  %v8368_v14 = vld [vmem:[#allocation94_spill] sm:$0xff] }
 0x4bf   :  { %v1056_v56 = vmax.f32 %v1055_v54, %v8365_v47  ;;  %v2564_v53 = vmul.f32 %v6280_v2, %v6619_v52  ;;  %v2561_v2 = vmul.f32 %v6308_v0, %v6597_v59  ;;  %v2560_v52 = vmul.f32 %v6312_v50, %v6592_v41 }
 0x4c0   :  { %2576 = vmatpush.msra.mxu1 %v2573_v22  ;;  %v1528_v0 = vmul.f32 %v6320_v12, %v6509_v3  ;;  %v1530_v12 = vmul.f32 %v6326_v25, %v6509_v3 }
 0x4c1   :  { %v1057_v61 = vmax.f32 %v1056_v56, %v8366_v24 }
 0x4c2   :  { %2577 = vmatpush.msra.mxu1 %v2572_v32  ;;  %v2559_v32 = vmul.f32 %v6322_v16, %v6587_v42 }
 0x4c3   :  { %v6645_v23 = vpop.f32.mrf.mxu3  ;;  %v1058_v4 = vmax.f32 %v1057_v61, %v8367_v37  ;;  %v1532_v61 = vmul.f32 %v6347_v58, %v6509_v3 }
 0x4c4   :  { %2578 = vmatpush.msra.mxu1 %v2571_v20 }
 0x4c5   :  { %v1059_v10 = vmax.f32 %v1058_v4, %v8368_v14 }
 0x4c6   :  { %2579 = vmatpush.msra.mxu1 %v2570_v38  ;;  %v6676_v22 = vpop.trf.xlu2 }
 0x4c7   :  { %v1060_v7 = vmax.f32 %v1059_v10, %v8369_v33 }
 0x4c8   :  { %2580 = vmatpush.msra.mxu1 %v2569_v48 }
 0x4c9   :  { %v1061_v59 = vrot.slane %v1060_v7, 4 }
 0x4ca   :  { %2581 = vmatpush.msra.mxu1 %v2568_v1 }
 0x4cb   :  { %v6655_v28 = vpop.f32.mrf.mxu3  ;;  %v1062_v16 = vmax.f32 %v1060_v7, %v1061_v59 }
 0x4cc   :  { %2582 = vmatpush.msra.mxu1 %v2567_v5 }
 0x4cd   :  { %v1063_v38 = vrot.slane %v1062_v16, 2 }
 0x4ce   :  { %2583 = vmatpush.msra.mxu1 %v2566_v27  ;;  %v6687_v17 = vpop.trf.xlu2 }
 0x4cf   :  { %v1064_v56 = vmax.f32 %v1062_v16, %v1063_v38 }
 0x4d0   :  { %2584 = vmatpush.msra.mxu1 %v2565_v18 }
 0x4d2   :  { %2585 = vmatpush.msra.mxu1 %v2564_v53 }
 0x4d3   :  { %v6667_v60 = vpop.f32.mrf.mxu3 }
 0x4d4   :  { %2586 = vmatpush.msra.mxu1 %v2563_v40 }
 0x4d6   :  { %2587 = vmatpush.msra.mxu1 %v2562_v29  ;;  %v1065_v29 = vrot.slane %v1064_v56, 1 }
 0x4d8   :  { %2588 = vmatpush.msra.mxu1 %v2561_v2  ;;  %v6710_v7 = vmax.f32 %v1064_v56, %v1065_v29  ;;  %v8378_v29 = vld [vmem:[#allocation49_spill] sm:$0xff] }
 0x4d9   :  { %v1727_v43 = vpop.f32.mrf.mxu2 }
 0x4da   :  { %4579 = vrcp.f32 %v1727_v43  ;;  %2589 = vmatpush.msra.mxu1 %v2560_v52  ;;  %vm1923_vm4 = vweird.f32 %v1727_v43 }
 0x4db   :  { %v6681_v15 = vpop.f32.mrf.mxu3 }
 0x4dc   :  { %2590 = vmatpush.msra.mxu1 %v2559_v32 }
 0x4dd   :  { %2591 = vmatmul.f32.vlgmr.msra.gmra.mxu1 %v1528_v0 }
 0x4de   :  { %4396 = vmatpush.msrb.mxu1 %v6446_v11  ;;  %v1929_v11 = vand.u32 2147483648, %v1727_v43 }
 0x4e0   :  { %v4580_v50 = vpop.eup %4579  ;;  %4397 = vmatpush.msrb.mxu1 %v6457_v13  ;;  %v1927_v13 = vand.u32 2147483647, %v1727_v43 }
 0x4e1   :  { %v1919_v41 = vmul.f32 %v4580_v50, %v1727_v43  ;;  %v1730_v21 = vpop.f32.mrf.mxu2  ;;  %vm1924_vm3 = vweird.f32 %v4580_v50 }
 0x4e2   :  { %4581 = vrcp.f32 %v1730_v21  ;;  %4398 = vmatpush.msrb.mxu1 %v6459_v49  ;;  %vm1925_vm5 = vmor %vm1923_vm4, %vm1924_vm3  ;;  %v1930_v49 = vor.u32 1.1754944e-38, %v1929_v11  ;;  %vm1928_vm6 = vcmp.eq.f32.partialorder %v1927_v13, 8.507059e+37  ;;  %v1943_v53 = vand.u32 2147483648, %v1730_v21 }
 0x4e3   :  { %v1920_v42 = vsub.f32 1.0, %v1919_v41  ;;  %v6690_v20 = vpop.f32.mrf.mxu3  ;;  %v1941_v40 = vand.u32 2147483647, %v1730_v21  ;;  %vm1937_vm8 = vweird.f32 %v1730_v21  ;;  %v1138_v11 = vsub.f32 %v8360_v19, %v6710_v7  ;;  %v8373_v19 = vld [vmem:[#allocation51_spill] sm:$0xff] }
 0x4e4   :  { %4399 = vmatpush.msrb.mxu1 %v6462_v62  ;;  %v6697_v62 = vpop.trf.xlu2  ;;  %v1944_v58 = vor.u32 1.1754944e-38, %v1943_v53 }
 0x4e5   :  { %2594 = vmatmul.f32.gmra.mxu1 %v1530_v12  ;;  %v1921_v34 = vmul.f32 %v4580_v50, %v1920_v42  ;;  %vm1942_vm10 = vcmp.eq.f32.partialorder %v1941_v40, 8.507059e+37  ;;  %v1136_v42 = vsub.f32 %v8361_v30, %v6710_v7  ;;  %v8370_v12 = vld [vmem:[#allocation120_spill] sm:$0xff]  ;;  %v6730_v30 = vld [vmem:[%s8028_s10] ss:$0 sm:$0xff] }
 0x4e6   :  { %4400 = vmatpush.msrb.mxu1 %v6467_v46 }
 0x4e7   :  { %v1922_v54 = vadd.f32 %v4580_v50, %v1921_v34 }
 0x4e8   :  { %v4582_v8 = vpop.eup %4581  ;;  %4401 = vmatpush.msrb.mxu1 %v6478_v63 }
 0x4e9   :  { %v1933_v48 = vmul.f32 %v4582_v8, %v1730_v21  ;;  %v1733_v1 = vpop.f32.mrf.mxu2  ;;  %v1926_v25 = vsel %vm1925_vm5, %v4580_v50, %v1922_v54  ;;  %vm1938_vm7 = vweird.f32 %v4582_v8  ;;  %v1217_v54 = vmul.f32 1.442695, %v1136_v42 }
 0x4ea   :  { %4583 = vrcp.f32 %v1733_v1  ;;  %4402 = vmatpush.msrb.mxu1 %v6480_v9  ;;  %v1931_v5 = vsel %vm1928_vm6, %v1930_v49, %v1926_v25  ;;  %vm1939_vm9 = vmor %vm1937_vm8, %vm1938_vm7  ;;  %v1957_v41 = vand.u32 2147483648, %v1733_v1  ;;  %v1955_v16 = vand.u32 2147483647, %v1733_v1 }
 0x4eb   :  { %v1934_v27 = vsub.f32 1.0, %v1933_v48  ;;  %v6700_v46 = vpop.f32.mrf.mxu3  ;;  %v1973_v18 = vmul.f32 %v6599_v39, %v1931_v5  ;;  %vm1951_vm13 = vweird.f32 %v1733_v1  ;;  %v867_v48 = vadd.f32 %v6730_v30, %v8373_v19  ;;  %v8374_v5 = vld [vmem:[#allocation77_spill] sm:$0xff] }
 0x4ec   :  { %4403 = vmatpush.msrb.mxu1 %v6505_v45  ;;  %v6708_v43 = vpop.trf.xlu2  ;;  %v1958_v13 = vor.u32 1.1754944e-38, %v1957_v41  ;;  %vm1956_vm15 = vcmp.eq.f32.partialorder %v1955_v16, 8.507059e+37  ;;  %v1221_v25 = vmul.f32 1.442695, %v1138_v11  ;;  %4585 = vpow2.f32 %v1217_v54 }
 0x4ed   :  { %2597 = vmatmul.f32.gmra.mxu1 %v1532_v61  ;;  %3724 = vxpose.xlu2.b32.cont [2/4] (short) %v1973_v18, 128  ;;  %v1935_v4 = vmul.f32 %v4582_v8, %v1934_v27  ;;  %v8375_v61 = vld [vmem:[#allocation125_spill] sm:$0xff]  ;;  %v8376_v18 = vld [vmem:[#allocation59_spill] sm:$0xff]  ;;  %v1146_v42 = vsub.f32 %v8367_v37, %v6710_v7 }
 0x4ee   :  { %4404 = vmatpush.msrb.mxu1 %v6507_v57  ;;  %v1536_v53 = vmul.f32 %v8376_v18, %v6509_v3  ;;  %4587 = vpow2.f32 %v1221_v25  ;;  %v8381_v37 = vld [vmem:[#allocation107_spill] sm:$0xff]  ;;  %v1150_v25 = vsub.f32 %v8369_v33, %v6710_v7 }
 0x4ef   :  { %v1936_v10 = vadd.f32 %v4582_v8, %v1935_v4  ;;  %v8377_v4 = vld [vmem:[#allocation50_spill] sm:$0xff]  ;;  %v1237_v54 = vmul.f32 1.442695, %v1146_v42 }
 0x4f0   :  { %v4584_v2 = vpop.eup %4583  ;;  %4405 = vmatpush.msrb.mxu1 %v6516_v55  ;;  %v864_v40 = vadd.f32 %v6730_v30, %v8377_v4  ;;  %v8385_v42 = vld [vmem:[#allocation58_spill] sm:$0xff] }
 0x4f1   :  { %v1947_v52 = vmul.f32 %v4584_v2, %v1733_v1  ;;  %v1940_v39 = vsel %vm1939_vm9, %v4582_v8, %v1936_v10  ;;  %vm1952_vm11 = vweird.f32 %v4584_v2  ;;  %v8372_v8 = vld [vmem:[#allocation123_spill] sm:$0xff]  ;;  %v1140_v1 = vsub.f32 %v8363_v35, %v6710_v7 }
 0x4f2   :  { %4406 = vmatpush.msrb.mxu1 %v6524_v36  ;;  %v1945_v32 = vsel %vm1942_vm10, %v1944_v58, %v1940_v39  ;;  %vm1953_vm14 = vmor %vm1951_vm13, %vm1952_vm11  ;;  %v861_v35 = vadd.f32 %v6730_v30, %v8378_v29  ;;  %v1142_v10 = vsub.f32 %v8365_v47, %v6710_v7  ;;  %v8379_v58 = vld [vmem:[#allocation48_spill] sm:$0xff]  ;;  %v6756_v41 = vpop.eup %4585  ;;  %v8380_v47 = vld [vmem:[#allocation106_spill] sm:$0xff] }
 0x4f3   :  { %v1948_v0 = vsub.f32 1.0, %v1947_v52  ;;  %v6713_v59 = vpop.f32.mrf.mxu3  ;;  %v1974_v50 = vmul.f32 %v6607_v44, %v1945_v32  ;;  %v8371_v44 = vld [vmem:[#allocation121_spill] sm:$0xff]  ;;  %v858_v52 = vadd.f32 %v6730_v30, %v8379_v58  ;;  %v1144_v32 = vsub.f32 %v8366_v24, %v6710_v7  ;;  %v2401_v58 = vpop.f32.mrf.mxu1 }
 0x4f4   :  { %4407 = vmatpush.msrb.mxu1 %v6532_v6  ;;  %v6760_v16 = vpop.eup %4587  ;;  %v8382_v29 = vld [vmem:[#allocation109_spill] sm:$0xff] }
 0x4f5   :  { %2600 = vmatmul.f32.gmra.mxu1 %v6514_v51  ;;  %3725 = vxpose.xlu2.b32.cont [3/4] (short) %v1974_v50, 128  ;;  %v1949_v21 = vmul.f32 %v4584_v2, %v1948_v0  ;;  %v6724_v51 = vpop.trf.xlu2  ;;  %v1229_v0 = vmul.f32 1.442695, %v1142_v10  ;;  %v1233_v11 = vmul.f32 1.442695, %v1144_v32  ;;  %v1350_v24 = vadd.f32 %v6760_v16, %v6756_v41 }
 0x4f6   :  { %4408 = vmatpush.msrb.mxu1 %v8370_v12 }
 0x4f7   :  { %v1950_v34 = vadd.f32 %v4584_v2, %v1949_v21  ;;  %v1538_v21 = vmul.f32 %v8380_v47, %v6509_v3 }
 0x4f8   :  { %4409 = vmatpush.msrb.mxu1 %v8371_v44 }
 0x4f9   :  { %v1954_v38 = vsel %vm1953_vm14, %v4584_v2, %v1950_v34  ;;  %v1225_v2 = vmul.f32 1.442695, %v1140_v1 }
 0x4fa   :  { %4410 = vmatpush.msrb.mxu1 %v8372_v8  ;;  %v1959_v49 = vsel %vm1956_vm15, %v1958_v13, %v1954_v38  ;;  %v1148_v38 = vsub.f32 %v8368_v14, %v6710_v7 }
 0x4fb   :  { %v6736_v56 = vpop.f32.mrf.mxu3  ;;  %v1975_v27 = vmul.f32 %v8374_v5, %v1959_v49  ;;  %4589 = vpow2.f32 %v1225_v2 }
 0x4fc   :  { %4411 = vmatpush.msrb.mxu1 %v8375_v61  ;;  %4591 = vpow2.f32 %v1229_v0  ;;  %v1241_v5 = vmul.f32 1.442695, %v1148_v38  ;;  %v6801_v0 = vld [vmem:[#allocation22 + $0x78] sm:$0xff] }
 0x4fd   :  { %3726 = vxpose.xlu2.b32.end [4/4] (short) %v1975_v27, 128  ;;  %2603 = vmatmul.f32.gmra.mxu1 %v1536_v53  ;;  %v6750_v39 = vpop.trf.xlu2  ;;  %4593 = vpow2.f32 %v1233_v11  ;;  %v1245_v53 = vmul.f32 1.442695, %v1150_v25  ;;  %8383 = vst [vmem:[#allocation75_spill] sm:$0xff] %v6801_v0  ;;  %v876_v11 = vadd.f32 %v6730_v30, %v8385_v42  ;;  %v8389_v25 = vld [vmem:[#allocation52_spill] sm:$0xff] }
 0x4fe   :  { %2809 = vmatpush.msra.mxu1 %v867_v48  ;;  %v1540_v48 = vmul.f32 %v8381_v37, %v6509_v3  ;;  %4595 = vpow2.f32 %v1237_v54  ;;  %2616 = vmatpush.msrb.mxu2 %v6801_v0  ;;  %v8387_v54 = vld [vmem:[#allocation53_spill] sm:$0xff]  ;;  %v6888_v0 = vld [vmem:[#allocation23 + $0x60] sm:$0xff] }
 0x4ff   :  { %4597 = vpow2.f32 %v1241_v5  ;;  %v870_v5 = vadd.f32 %v6730_v30, %v8389_v25  ;;  %v6844_v25 = vld [vmem:[#allocation22 + $0x30] sm:$0xff] }
 0x500   :  { %2810 = vmatpush.msra.mxu1 %v864_v40  ;;  %4599 = vpow2.f32 %v1245_v53  ;;  %v6823_v53 = vld [vmem:[#allocation22 + $0x60] sm:$0xff]  ;;  %8397 = vst [vmem:[#allocation101_spill] sm:$0xff] %v6844_v25 }
 0x501   :  { %v6766_v34 = vpop.eup %4589  ;;  %8390 = vst [vmem:[#allocation64_spill] sm:$0xff] %v6823_v53 }
 0x502   :  { %2811 = vmatpush.msra.mxu1 %v861_v35  ;;  %v1351_v19 = vadd.f32 %v6766_v34, %v1350_v24  ;;  %v6777_v1 = vpop.eup %4591  ;;  %v1542_v35 = vmul.f32 %v8382_v29, %v6509_v3  ;;  %v8384_v3 = vld [vmem:[#allocation60_spill] sm:$0xff]  ;;  %v6810_v24 = vld [vmem:[#allocation22 + $0x70] sm:$0xff]  ;;  %v2404_v29 = vpop.f32.mrf.mxu1 }
 0x503   :  { %v6754_v50 = vpop.f32.mrf.mxu3  ;;  %v6782_v14 = vpop.eup %4593  ;;  %8386 = vst [vmem:[#allocation42_spill] sm:$0xff] %v6810_v24  ;;  %2617 = vmatpush.msrb.mxu2 %v6810_v24  ;;  %v8409_v24 = vld [vmem:[#allocation65_spill] sm:$0xff] }
 0x504   :  { %2812 = vmatpush.msra.mxu1 %v858_v52  ;;  %v1352_v27 = vadd.f32 %v6777_v1, %v1351_v19  ;;  %v6791_v10 = vpop.eup %4595  ;;  %v873_v19 = vadd.f32 %v6730_v30, %v8387_v54 }
 0x505   :  { %2606 = vmatmul.f32.gmra.mxu1 %v1538_v21  ;;  %v6768_v13 = vpop.trf.xlu2  ;;  %v6794_v7 = vpop.eup %4597  ;;  %v879_v21 = vadd.f32 %v6730_v30, %v8384_v3 }
 0x506   :  { %v1353_v40 = vadd.f32 %v6782_v14, %v1352_v27  ;;  %v6803_v47 = vpop.eup %4599 }
 0x508   :  { %v1354_v33 = vadd.f32 %v6791_v10, %v1353_v40 }
 0x50a   :  { %v1355_v32 = vadd.f32 %v6794_v7, %v1354_v33  ;;  %v6829_v33 = vld [vmem:[#allocation22 + $0x50] sm:$0xff] }
 0x50b   :  { %v6772_v49 = vpop.f32.mrf.mxu3  ;;  %8392 = vst [vmem:[#allocation88_spill] sm:$0xff] %v6829_v33 }
 0x50c   :  { %v1356_v38 = vadd.f32 %v6803_v47, %v1355_v32 }
 0x50d   :  { %2609 = vmatmul.f32.gmra.mxu1 %v1540_v48  ;;  %v6784_v18 = vpop.trf.xlu2  ;;  %v6818_v48 = vld [vmem:[#allocation22 + $0x68] sm:$0xff] }
 0x50e   :  { %8388 = vst [vmem:[#allocation41_spill] sm:$0xff] %v6818_v48  ;;  %2618 = vmatpush.msrb.mxu2 %v6818_v48  ;;  %v1357_v40 = vrot.slane %v1356_v38, 4  ;;  %v8408_v48 = vld [vmem:[#allocation93_spill] sm:$0xff] }
 0x510   :  { %2619 = vmatpush.msrb.mxu2 %v6823_v53  ;;  %v1358_v32 = vadd.f32 %v1357_v40, %v1356_v38  ;;  %v6846_v38 = vld [vmem:[#allocation22 + $0x28] sm:$0xff] }
 0x511   :  { %8398 = vst [vmem:[#allocation90_spill] sm:$0xff] %v6846_v38  ;;  %v6881_v53 = vld [vmem:[#allocation23 + $0x68] sm:$0xff] }
 0x512   :  { %v1359_v54 = vrot.slane %v1358_v32, 2  ;;  %8407 = vst [vmem:[#allocation123_spill] sm:$0xff] %v6881_v53 }
 0x513   :  { %v6786_v4 = vpop.f32.mrf.mxu3 }
 0x515   :  { %2612 = vmatmul.f32.gmra.mxu1 %v1542_v35  ;;  %v6796_v2 = vpop.trf.xlu2  ;;  %v6826_v35 = vld [vmem:[#allocation22 + $0x58] sm:$0xff] }
 0x516   :  { %8391 = vst [vmem:[#allocation97_spill] sm:$0xff] %v6826_v35  ;;  %2620 = vmatpush.msrb.mxu2 %v6826_v35 }
 0x518   :  { %2621 = vmatpush.msrb.mxu2 %v6829_v33  ;;  %v6854_v33 = vld [vmem:[#allocation22 + $0x18] sm:$0xff] }
 0x519   :  { %8400 = vst [vmem:[#allocation92_spill] sm:$0xff] %v6854_v33 }
 0x51b   :  { %v6798_v52 = vpop.f32.mrf.mxu3 }
 0x51d   :  { %2685 = vmatmul.f32.vlgmr.msrb.gmra.mxu1 %v2401_v58  ;;  %v6816_v37 = vpop.trf.xlu2  ;;  %v6831_v58 = vld [vmem:[#allocation22 + $0x48] sm:$0xff] }
 0x51e   :  { %3312 = vmatpush.msrb.mxu1 %v879_v21  ;;  %8393 = vst [vmem:[#allocation47_spill] sm:$0xff] %v6831_v58  ;;  %v6836_v21 = vld [vmem:[#allocation22 + $0x40] sm:$0xff]  ;;  %2622 = vmatpush.msrb.mxu2 %v6831_v58 }
 0x51f   :  { %8394 = vst [vmem:[#allocation100_spill] sm:$0xff] %v6836_v21 }
 0x520   :  { %3313 = vmatpush.msrb.mxu1 %v876_v11  ;;  %v6839_v11 = vld [vmem:[#allocation22 + $0x38] sm:$0xff]  ;;  %2623 = vmatpush.msrb.mxu2 %v6836_v21 }
 0x521   :  { %8395 = vst [vmem:[#allocation89_spill] sm:$0xff] %v6839_v11 }
 0x522   :  { %3314 = vmatpush.msrb.mxu1 %v873_v19  ;;  %v8396_v19 = vld [vmem:[#allocation127_spill] sm:$0xff]  ;;  %2624 = vmatpush.msrb.mxu2 %v6839_v11  ;;  %v6859_v11 = vld [vmem:[#allocation22 + $0x10] sm:$0xff] }
 0x523   :  { %v3052_v27 = vpop.f32.mrf.mxu3  ;;  %8402 = vst [vmem:[#allocation94_spill] sm:$0xff] %v6859_v11 }
 0x524   :  { %3315 = vmatpush.msrb.mxu1 %v870_v5  ;;  %v1360_v5 = vadd.f32 %v1359_v54, %v1358_v32  ;;  %2625 = vmatpush.msrb.mxu2 %v6844_v25  ;;  %v6861_v32 = vld [vmem:[#allocation22 + $0x8] sm:$0xff] }
 0x525   :  { %2688 = vmatmul.f32.gmra.mxu1 %v2404_v29  ;;  %v6834_v3 = vpop.trf.xlu2  ;;  %v6851_v29 = vld [vmem:[#allocation22 + $0x20] sm:$0xff]  ;;  %8403 = vst [vmem:[#allocation96_spill] sm:$0xff] %v6861_v32 }
 0x526   :  { %8399 = vst [vmem:[#allocation91_spill] sm:$0xff] %v6851_v29  ;;  %2626 = vmatpush.msrb.mxu2 %v6846_v38  ;;  %v1361_v21 = vrot.slane %v1360_v5, 1  ;;  %v6869_v38 = vld [vmem:[#allocation22] sm:$0xff] }
 0x527   :  { %8404 = vst [vmem:[#allocation120_spill] sm:$0xff] %v6869_v38 }
 0x528   :  { %2627 = vmatpush.msrb.mxu2 %v6851_v29  ;;  %v6863_v54 = vadd.f32 %v1361_v21, %v1360_v5  ;;  %v6875_v29 = vld [vmem:[#allocation23 + $0x78] sm:$0xff] }
 0x529   :  { %v8406_v5 = vld [vmem:[#allocation66_spill] sm:$0xff] }
 0x52a   :  { %2628 = vmatpush.msrb.mxu2 %v6854_v33  ;;  %4601 = vrcp.f32 %v6863_v54  ;;  %vm1462_vm1 = vweird.f32 %v6863_v54 }
 0x52b   :  { %v3055_v42 = vpop.f32.mrf.mxu3 }
 0x52c   :  { %2629 = vmatpush.msrb.mxu2 %v6859_v11  ;;  %v891_v11 = vadd.f32 %v6730_v30, %v8406_v5 }
 0x52d   :  { %2691 = vmatmul.f32.gmra.mxu1 %v8396_v19  ;;  %v6849_v40 = vpop.trf.xlu2  ;;  %v8401_v19 = vld [vmem:[#allocation128_spill] sm:$0xff] }
 0x52e   :  { %2630 = vmatpush.msrb.mxu2 %v6861_v32  ;;  %v3077_v32 = vmul.f32 %v6881_v53, %v3055_v42  ;;  %v6895_v53 = vld [vmem:[#allocation23 + $0x58] sm:$0xff] }
 0x530   :  { %2631 = vmatpush.msrb.mxu2 %v6869_v38  ;;  %v8410_v38 = vld [vmem:[#allocation63_spill] sm:$0xff]  ;;  %v4602_v42 = vpop.eup %4601 }
 0x531   :  { %v885_v5 = vadd.f32 %v6730_v30, %v8410_v38  ;;  %v6906_v38 = vld [vmem:[#allocation23 + $0x48] sm:$0xff]  ;;  %vm1463_vm2 = vweird.f32 %v4602_v42 }
 0x532   :  { %vm6938_vm3 = vmor %vm1462_vm1, %vm1463_vm2 }
 0x533   :  { %v3058_v58 = vpop.f32.mrf.mxu3 }
 0x535   :  { %2694 = vmatmul.f32.gmra.mxu1 %v8401_v19  ;;  %v6866_v25 = vpop.trf.xlu2  ;;  %v6872_v19 = vld [vmem:[#allocation23 + $0x70] sm:$0xff] }
 0x536   :  { %8405 = vst [vmem:[#allocation121_spill] sm:$0xff] %v6872_v19  ;;  %v3078_v33 = vmul.f32 %v6872_v19, %v3058_v58  ;;  %v888_v58 = vadd.f32 %v6730_v30, %v8409_v24  ;;  %v8411_v24 = vld [vmem:[#allocation61_spill] sm:$0xff] }
 0x53b   :  { %v3061_v35 = vpop.f32.mrf.mxu3 }
 0x53c   :  { %v3079_v21 = vmul.f32 %v6875_v29, %v3061_v35  ;;  %v3076_v35 = vmul.f32 %v6888_v0, %v3052_v27 }
 0x53d   :  { %4284 = vmatmul.msk.f32.vlgmr.msra.gmra.mxu1 %vm2242_vm12, %v8408_v48  ;;  %v6893_v19 = vpop.trf.xlu2  ;;  %v3075_v48 = vmul.f32 %v6895_v53, %v6798_v52  ;;  %v8412_v52 = vld [vmem:[#allocation95_spill] sm:$0xff] }
 0x53e   :  { %3080 = vmatpush.msrb.mxu0 %v3079_v21  ;;  %3815 = vmatpush.msra.mxu1 %v891_v11  ;;  %v882_v11 = vadd.f32 %v6730_v30, %v8411_v24  ;;  %v6901_v21 = vld [vmem:[#allocation23 + $0x50] sm:$0xff]  ;;  %v6912_v30 = vld [vmem:[#allocation23 + $0x40] sm:$0xff] }
 0x53f   :  { %v3074_v27 = vmul.f32 %v6901_v21, %v6786_v4 }
 0x540   :  { %3081 = vmatpush.msrb.mxu0 %v3078_v33  ;;  %3816 = vmatpush.msra.mxu1 %v888_v58  ;;  %v1458_v33 = vmul.f32 %v4602_v42, %v6863_v54  ;;  %v3073_v58 = vmul.f32 %v6906_v38, %v6772_v49  ;;  %v6921_v49 = vld [vmem:[#allocation23 + $0x30] sm:$0xff] }
 0x542   :  { %3082 = vmatpush.msrb.mxu0 %v3077_v32  ;;  %3817 = vmatpush.msra.mxu1 %v885_v5  ;;  %v3072_v32 = vmul.f32 %v6912_v30, %v6754_v50  ;;  %v1459_v4 = vsub.f32 1.0, %v1458_v33  ;;  %v6916_v5 = vld [vmem:[#allocation23 + $0x38] sm:$0xff]  ;;  %v6933_v33 = vld [vmem:[#allocation23 + $0x20] sm:$0xff] }
 0x543   :  { %v3071_v24 = vmul.f32 %v6916_v5, %v6736_v56  ;;  %v1468_v56 = vand.u32 2147483648, %v6863_v54 }
 0x544   :  { %3083 = vmatpush.msrb.mxu0 %v3076_v35  ;;  %3818 = vmatpush.msra.mxu1 %v882_v11  ;;  %v1460_v11 = vmul.f32 %v4602_v42, %v1459_v4 }
 0x545   :  { %4285 = vmatmul.msk.f32.gmra.mxu1 %vm2242_vm12, %v8412_v52  ;;  %v3438_v35 = vpop.trf.xlu2  ;;  %v6925_v52 = vld [vmem:[#allocation23 + $0x28] sm:$0xff] }
 0x546   :  { %3084 = vmatpush.msrb.mxu0 %v3075_v48  ;;  %4332 = vmatmul.msk.f32.vlgmr.msra.gmra.mxu3 %vm2445_vm0, %v3438_v35  ;;  %v3070_v48 = vmul.f32 %v6921_v49, %v6713_v59  ;;  %8413 = vst [vmem:[#allocation51_spill] sm:$0xff] %v6925_v52  ;;  %v3069_v50 = vmul.f32 %v6925_v52, %v6700_v46  ;;  %v6942_v35 = vld [vmem:[#allocation23 + $0x18] sm:$0xff]  ;;  %v6947_v52 = vld [vmem:[#allocation23 + $0x10] sm:$0xff] }
 0x547   :  { %v3068_v59 = vmul.f32 %v6933_v33, %v6690_v20  ;;  %v3066_v20 = vmul.f32 %v6947_v52, %v6667_v60 }
 0x548   :  { %3085 = vmatpush.msrb.mxu0 %v3074_v27  ;;  %v8414_v27 = vld [vmem:[#allocation98_spill] sm:$0xff] }
 0x54a   :  { %3086 = vmatpush.msrb.mxu0 %v3073_v58  ;;  %v1461_v58 = vadd.f32 %v4602_v42, %v1460_v11 }
 0x54c   :  { %3087 = vmatpush.msrb.mxu0 %v3072_v32  ;;  %v1466_v32 = vand.u32 2147483647, %v6863_v54  ;;  %v1465_v54 = vsel %vm6938_vm3, %v4602_v42, %v1461_v58  ;;  %v8418_v58 = vld [vmem:[#allocation105_spill] sm:$0xff] }
 0x54d   :  { %4286 = vmatmul.msk.f32.gmra.mxu1 %vm2242_vm12, %v8414_v27  ;;  %v3439_v4 = vpop.trf.xlu2  ;;  %v1469_v27 = vor.u32 1.1754944e-38, %v1468_v56 }
 0x54e   :  { %3088 = vmatpush.msrb.mxu0 %v3071_v24  ;;  %v3067_v24 = vmul.f32 %v6942_v35, %v6681_v15  ;;  %4333 = vmatmul.msk.f32.gmra.mxu3 %vm2445_vm0, %v3439_v4  ;;  %vm1467_vm4 = vcmp.eq.f32.partialorder %v1466_v32, 8.507059e+37  ;;  %v8417_v15 = vld [vmem:[#allocation102_spill] sm:$0xff] }
 0x54f   :  { %v6963_v60 = vsel %vm1467_vm4, %v1469_v27, %v1465_v54  ;;  %v4728_v32 = vld [vmem:[#allocation20 + $0x78] sm:$0xff] }
 0x550   :  { %3089 = vmatpush.msrb.mxu0 %v3070_v48  ;;  %v6953_v48 = vld [vmem:[#allocation23 + $0x8] sm:$0xff]  ;;  %v1546_v27 = vmul.f32 %v6760_v16, %v6963_v60  ;;  %v4732_v54 = vld [vmem:[#allocation20 + $0x58] sm:$0xff]  ;;  %v1548_v16 = vmul.f32 %v6766_v34, %v6963_v60 }
 0x551   :  { %v3065_v11 = vmul.f32 %v6953_v48, %v6655_v28  ;;  %v1544_v28 = vmul.f32 %v6756_v41, %v6963_v60  ;;  %v4731_v41 = vld [vmem:[#allocation20 + $0x60] sm:$0xff] }
 0x552   :  { %3090 = vmatpush.msrb.mxu0 %v3069_v50  ;;  %v6959_v50 = vld [vmem:[#allocation23] sm:$0xff] }
 0x553   :  { %v3064_v56 = vmul.f32 %v6959_v50, %v6645_v23  ;;  %v4729_v23 = vld [vmem:[#allocation20 + $0x70] sm:$0xff] }
 0x554   :  { %3091 = vmatpush.msrb.mxu0 %v3068_v59 }
 0x555   :  { %4287 = vmatmul.msk.f32.gmra.mxu1 %vm2242_vm12, %v8417_v15  ;;  %v3440_v59 = vpop.trf.xlu2 }
 0x556   :  { %3092 = vmatpush.msrb.mxu0 %v3067_v24  ;;  %4334 = vmatmul.msk.f32.gmra.mxu3 %vm2445_vm0, %v3440_v59  ;;  %v4730_v24 = vld [vmem:[#allocation20 + $0x68] sm:$0xff] }
 0x558   :  { %3093 = vmatpush.msrb.mxu0 %v3066_v20  ;;  %v8419_v20 = vld [vmem:[#allocation54_spill] sm:$0xff] }
 0x55a   :  { %v2592_v42 = vpop.f32.mrf.mxu1  ;;  %3094 = vmatpush.msrb.mxu0 %v3065_v11 }
 0x55b   :  { %2632 = vmatmul.f32.vlgmr.msrb.gmra.mxu2 %v2592_v42  ;;  %v8424_v42 = vld [vmem:[#allocation111_spill] sm:$0xff] }
 0x55c   :  { %3095 = vmatpush.msrb.mxu0 %v3064_v56  ;;  %v8420_v56 = vld [vmem:[#allocation55_spill] sm:$0xff] }
 0x55d   :  { %3096 = vmatmul.f32.vlgmr.msrb.gmra.mxu0 %v1544_v28  ;;  %4288 = vmatmul.msk.f32.gmra.mxu1 %vm2242_vm12, %v8418_v58  ;;  %v3441_v4 = vpop.trf.xlu2  ;;  %v1558_v58 = vmul.f32 %v6803_v47, %v6963_v60 }
 0x55e   :  { %3162 = vmatpush.msra.mxu0 %v4728_v32  ;;  %4335 = vmatmul.msk.f32.gmra.mxu3 %vm2445_vm0, %v3441_v4  ;;  %v8425_v32 = vld [vmem:[#allocation113_spill] sm:$0xff]  ;;  %v8426_v4 = vld [vmem:[#allocation115_spill] sm:$0xff] }
 0x560   :  { %3163 = vmatpush.msra.mxu0 %v4729_v23 }
 0x562   :  { %v2595_v46 = vpop.f32.mrf.mxu1  ;;  %3164 = vmatpush.msra.mxu0 %v4730_v24 }
 0x563   :  { %2635 = vmatmul.f32.gmra.mxu2 %v2595_v46 }
 0x564   :  { %3165 = vmatpush.msra.mxu0 %v4731_v41  ;;  %v8428_v41 = vld [vmem:[#allocation119_spill] sm:$0xff] }
 0x565   :  { %3099 = vmatmul.f32.gmra.mxu0 %v1546_v27  ;;  %4289 = vmatmul.msk.f32.gmra.mxu1 %vm2242_vm12, %v8419_v20  ;;  %v3442_v11 = vpop.trf.xlu2  ;;  %v8427_v27 = vld [vmem:[#allocation117_spill] sm:$0xff] }
 0x566   :  { %3166 = vmatpush.msra.mxu0 %v4732_v54  ;;  %4336 = vmatmul.msk.f32.gmra.mxu3 %vm2445_vm0, %v3442_v11  ;;  %v8429_v11 = vld [vmem:[#allocation124_spill] sm:$0xff] }
 0x568   :  { %3167 = vmatpush.msra.mxu0 %v6478_v63 }
 0x56a   :  { %v2598_v15 = vpop.f32.mrf.mxu1  ;;  %3168 = vmatpush.msra.mxu0 %v6480_v9  ;;  %v1550_v9 = vmul.f32 %v6777_v1, %v6963_v60 }
 0x56b   :  { %2638 = vmatmul.f32.gmra.mxu2 %v2598_v15 }
 0x56c   :  { %3169 = vmatpush.msra.mxu0 %v6505_v45  ;;  %v8421_v45 = vld [vmem:[#allocation108_spill] sm:$0xff] }
 0x56d   :  { %3102 = vmatmul.f32.gmra.mxu0 %v1548_v16  ;;  %4290 = vmatmul.msk.f32.gmra.mxu1 %vm2242_vm12, %v8420_v56  ;;  %v3443_v63 = vpop.trf.xlu2  ;;  %v8430_v16 = vld [vmem:[#allocation71_spill] sm:$0xff]  ;;  %v8431_v56 = vld [vmem:[#allocation70_spill] sm:$0xff] }
 0x56e   :  { %3170 = vmatpush.msra.mxu0 %v6507_v57  ;;  %4337 = vmatmul.msk.f32.gmra.mxu3 %vm2445_vm0, %v3443_v63  ;;  %v1041_v63 = vmax.f32 %v8431_v56, %v8430_v16 }
 0x570   :  { %3171 = vmatpush.msra.mxu0 %v6516_v55 }
 0x572   :  { %v2601_v59 = vpop.f32.mrf.mxu1  ;;  %3172 = vmatpush.msra.mxu0 %v6524_v36  ;;  %v1552_v36 = vmul.f32 %v6782_v14, %v6963_v60  ;;  %v1556_v14 = vmul.f32 %v6794_v7, %v6963_v60 }
 0x573   :  { %2641 = vmatmul.f32.gmra.mxu2 %v2601_v59 }
 0x574   :  { %3173 = vmatpush.msra.mxu0 %v6532_v6  ;;  %v8422_v6 = vld [vmem:[#allocation110_spill] sm:$0xff] }
 0x575   :  { %3105 = vmatmul.f32.gmra.mxu0 %v1550_v9  ;;  %4291 = vmatmul.msk.f32.gmra.mxu1 %vm2242_vm12, %v8421_v45  ;;  %v3444_v57 = vpop.trf.xlu2  ;;  %v8432_v9 = vld [vmem:[#allocation72_spill] sm:$0xff] }
 0x576   :  { %3174 = vmatpush.msra.mxu0 %v8370_v12  ;;  %4338 = vmatmul.msk.f32.gmra.mxu3 %vm2445_vm0, %v3444_v57  ;;  %v1042_v45 = vmax.f32 %v1041_v63, %v8432_v9 }
 0x578   :  { %3175 = vmatpush.msra.mxu0 %v8371_v44  ;;  %v1554_v44 = vmul.f32 %v6791_v10, %v6963_v60 }
 0x57a   :  { %3176 = vmatpush.msra.mxu0 %v8372_v8  ;;  %v2604_v55 = vpop.f32.mrf.mxu1  ;;  %v8423_v8 = vld [vmem:[#allocation39_spill] sm:$0xff] }
 0x57b   :  { %2644 = vmatmul.f32.gmra.mxu2 %v2604_v55  ;;  %v8433_v55 = vld [vmem:[#allocation73_spill] sm:$0xff] }
 0x57c   :  { %3177 = vmatpush.msra.mxu0 %v8375_v61 }
 0x57d   :  { %3108 = vmatmul.f32.gmra.mxu0 %v1552_v36  ;;  %4292 = vmatmul.msk.f32.gmra.mxu1 %vm2242_vm12, %v8422_v6  ;;  %v3445_v34 = vpop.trf.xlu2  ;;  %v1043_v36 = vmax.f32 %v1042_v45, %v8433_v55 }
 0x57e   :  { %4339 = vmatmul.msk.f32.gmra.mxu3 %vm2445_vm0, %v3445_v34  ;;  %v8434_v34 = vld [vmem:[#allocation74_spill] sm:$0xff] }
 0x582   :  { %v2607_v12 = vpop.f32.mrf.mxu1 }
 0x583   :  { %2647 = vmatmul.f32.gmra.mxu2 %v2607_v12  ;;  %v1044_v12 = vmax.f32 %v1043_v36, %v8434_v34 }
 0x585   :  { %3111 = vmatmul.f32.gmra.mxu0 %v1554_v44  ;;  %4293 = vmatmul.msk.f32.gmra.mxu1 %vm2242_vm12, %v8423_v8  ;;  %v3446_v1 = vpop.trf.xlu2  ;;  %v8435_v44 = vld [vmem:[#allocation76_spill] sm:$0xff] }
 0x586   :  { %4340 = vmatmul.msk.f32.gmra.mxu3 %vm2445_vm0, %v3446_v1  ;;  %v1045_v8 = vmax.f32 %v1044_v12, %v8435_v44 }
 0x58a   :  { %v2610_v61 = vpop.f32.mrf.mxu1 }
 0x58b   :  { %2650 = vmatmul.f32.gmra.mxu2 %v2610_v61 }
 0x58d   :  { %3114 = vmatmul.f32.gmra.mxu0 %v1556_v14  ;;  %4294 = vmatmul.msk.f32.gmra.mxu1 %vm2242_vm12, %v8424_v42  ;;  %v3447_v28 = vpop.trf.xlu2  ;;  %v8436_v14 = vld [vmem:[#allocation78_spill] sm:$0xff]  ;;  %v8437_v42 = vld [vmem:[#allocation79_spill] sm:$0xff] }
 0x58e   :  { %4341 = vmatmul.msk.f32.gmra.mxu3 %vm2445_vm0, %v3447_v28 }
 0x592   :  { %v2613_v10 = vpop.f32.mrf.mxu1 }
 0x593   :  { %2653 = vmatmul.f32.gmra.mxu2 %v2613_v10 }
 0x595   :  { %3117 = vmatmul.f32.gmra.mxu0 %v1558_v58  ;;  %4295 = vmatmul.msk.f32.gmra.mxu1 %vm2242_vm12, %v8425_v32  ;;  %v3448_v23 = vpop.trf.xlu2 }
 0x596   :  { %4342 = vmatmul.msk.f32.gmra.mxu3 %vm2445_vm0, %v3448_v23 }
 0x59a   :  { %v7017_v7 = vpop.f32.mrf.mxu1 }
 0x59d   :  { %4296 = vmatmul.msk.f32.gmra.mxu1 %vm2242_vm12, %v8426_v4  ;;  %v3449_v46 = vpop.trf.xlu2 }
 0x59e   :  { %4343 = vmatmul.msk.f32.gmra.mxu3 %vm2445_vm0, %v3449_v46  ;;  %v7071_v46 = vld [vmem:[%s8035_s17] ss:$0 sm:$0xff] }
 0x5a2   :  { %v7022_v24 = vpop.f32.mrf.mxu1 }
 0x5a5   :  { %4297 = vmatmul.msk.f32.gmra.mxu1 %vm2242_vm12, %v8427_v27  ;;  %v3450_v47 = vpop.trf.xlu2 }
 0x5a6   :  { %4344 = vmatmul.msk.f32.gmra.mxu3 %vm2445_vm0, %v3450_v47 }
 0x5aa   :  { %v7027_v60 = vpop.f32.mrf.mxu1 }
 0x5ad   :  { %4298 = vmatmul.msk.f32.gmra.mxu1 %vm2242_vm12, %v8428_v41  ;;  %v3451_v20 = vpop.trf.xlu2 }
 0x5ae   :  { %4345 = vmatmul.msk.f32.gmra.mxu3 %vm2445_vm0, %v3451_v20 }
 0x5b2   :  { %v7032_v54 = vpop.f32.mrf.mxu1 }
 0x5b5   :  { %4299 = vmatmul.msk.f32.gmra.mxu1 %vm2242_vm12, %v8429_v11  ;;  %v3452_v15 = vpop.trf.xlu2 }
 0x5b6   :  { %4346 = vmatmul.msk.f32.gmra.mxu3 %vm2445_vm0, %v3452_v15 }
 0x5ba   :  { %v7039_v59 = vpop.f32.mrf.mxu1 }
 0x5bd   :  { %4316 = vmatmul.msk.f32.vlgmr.msrb.gmra.mxu1 %vm2242_vm12, %v6651_v31  ;;  %v3453_v57 = vpop.trf.xlu2  ;;  %v1046_v31 = vmax.f32 %v1045_v8, %v8436_v14 }
 0x5be   :  { %4347 = vmatmul.msk.f32.gmra.mxu3 %vm2445_vm0, %v3453_v57 }
 0x5bf   :  { %v1047_v28 = vmax.f32 %v1046_v31, %v8437_v42 }
 0x5c1   :  { %v1048_v32 = vrot.slane %v1047_v28, 4 }
 0x5c2   :  { %v7046_v6 = vpop.f32.mrf.mxu1 }
 0x5c3   :  { %v1049_v23 = vmax.f32 %v1047_v28, %v1048_v32 }
 0x5c5   :  { %4317 = vmatmul.msk.f32.gmra.mxu1 %vm2242_vm12, %v6662_v26  ;;  %v2674_v26 = vpop.f32.mrf.mxu0  ;;  %v1050_v27 = vrot.slane %v1049_v23, 2 }
 0x5c9   :  { %v7054_v61 = vpop.f32.mrf.mxu3 }
 0x5ca   :  { %v7052_v1 = vpop.f32.mrf.mxu1 }
 0x5cd   :  { %4318 = vmatmul.msk.f32.gmra.mxu1 %vm2242_vm12, %v6676_v22  ;;  %v2677_v11 = vpop.f32.mrf.mxu0 }
 0x5d1   :  { %v7062_v58 = vpop.f32.mrf.mxu3 }
 0x5d2   :  { %v7060_v10 = vpop.f32.mrf.mxu1 }
 0x5d5   :  { %4319 = vmatmul.msk.f32.gmra.mxu1 %vm2242_vm12, %v6687_v17  ;;  %v1051_v17 = vmax.f32 %v1049_v23, %v1050_v27  ;;  %v2680_v31 = vpop.f32.mrf.mxu0 }
 0x5d7   :  { %v1052_v45 = vrot.slane %v1051_v17, 1 }
 0x5d9   :  { %v7073_v22 = vpop.f32.mrf.mxu3 }
 0x5da   :  { %v7066_v4 = vpop.f32.mrf.mxu1 }
 0x5dd   :  { %4320 = vmatmul.msk.f32.gmra.mxu1 %vm2242_vm12, %v6697_v62  ;;  %v7085_v62 = vmax.f32 %v1051_v17, %v1052_v45 }
 0x5de   :  { %v2633_v47 = vpop.f32.mrf.mxu2 }
 0x5df   :  { %v2675_v41 = vadd.f32 %v2674_v26, %v2633_v47  ;;  %v1135_v32 = vsub.f32 %v8431_v56, %v7085_v62  ;;  %v2683_v56 = vpop.f32.mrf.mxu0 }
 0x5e1   :  { %v2701_v20 = vadd.f32 %v7071_v46, %v2675_v41  ;;  %v7080_v63 = vpop.f32.mrf.mxu3  ;;  %v1215_v47 = vmul.f32 1.442695, %v1135_v32  ;;  %v1139_v41 = vsub.f32 %v8432_v9, %v7085_v62 }
 0x5e2   :  { %v7078_v15 = vpop.f32.mrf.mxu1 }
 0x5e3   :  { %2709 = vst [vmem:[#allocation25] sm:$0xff] %v2701_v20  ;;  %4603 = vpow2.f32 %v1215_v47  ;;  %v1223_v45 = vmul.f32 1.442695, %v1139_v41 }
 0x5e5   :  { %4321 = vmatmul.msk.f32.gmra.mxu1 %vm2242_vm12, %v6708_v43  ;;  %v1137_v43 = vsub.f32 %v8430_v16, %v7085_v62  ;;  %v1141_v16 = vsub.f32 %v8433_v55, %v7085_v62  ;;  %v1145_v55 = vsub.f32 %v8435_v44, %v7085_v62 }
 0x5e6   :  { %v2636_v57 = vpop.f32.mrf.mxu2 }
 0x5e7   :  { %v2678_v36 = vadd.f32 %v2677_v11, %v2636_v57  ;;  %v1219_v20 = vmul.f32 1.442695, %v1137_v43 }
 0x5e9   :  { %v2702_v12 = vadd.f32 %v7071_v46, %v2678_v36  ;;  %v7089_v28 = vpop.f32.mrf.mxu3  ;;  %4605 = vpow2.f32 %v1219_v20  ;;  %v1143_v36 = vsub.f32 %v8434_v34, %v7085_v62  ;;  %v7113_v32 = vpop.eup %4603 }
 0x5ea   :  { %v7087_v8 = vpop.f32.mrf.mxu1  ;;  %4607 = vpow2.f32 %v1223_v45 }
 0x5eb   :  { %2710 = vst [vmem:[#allocation25 + $0x8] sm:$0xff] %v2702_v12  ;;  %v1227_v12 = vmul.f32 1.442695, %v1141_v16  ;;  %v1231_v34 = vmul.f32 1.442695, %v1143_v36 }
 0x5ed   :  { %4322 = vmatmul.msk.f32.gmra.mxu1 %vm2242_vm12, %v6724_v51  ;;  %4609 = vpow2.f32 %v1227_v12 }
 0x5ee   :  { %v2639_v26 = vpop.f32.mrf.mxu2  ;;  %4611 = vpow2.f32 %v1231_v34 }
 0x5ef   :  { %v2681_v23 = vadd.f32 %v2680_v31, %v2639_v26  ;;  %v7115_v26 = vpop.eup %4605 }
 0x5f0   :  { %v7127_v41 = vpop.eup %4607 }
 0x5f1   :  { %v2703_v27 = vadd.f32 %v7071_v46, %v2681_v23  ;;  %v7102_v11 = vpop.f32.mrf.mxu3 }
 0x5f2   :  { %v7100_v17 = vpop.f32.mrf.mxu1 }
 0x5f3   :  { %2711 = vst [vmem:[#allocation25 + $0x10] sm:$0xff] %v2703_v27  ;;  %v1337_v27 = vadd.f32 %v7115_v26, %v7113_v32  ;;  %v7135_v45 = vpop.eup %4609 }
 0x5f5   :  { %4323 = vmatmul.msk.f32.gmra.mxu1 %vm2242_vm12, %v6750_v39  ;;  %v3941_v39 = vpop.trf.xlu0  ;;  %v1338_v44 = vadd.f32 %v7127_v41, %v1337_v27 }
 0x5f6   :  { %v2642_v51 = vpop.f32.mrf.mxu2  ;;  %4364 = vmatmul.msk.f32.vlgmr.msrb.gmra.mxu3 %vm2445_vm0, %v3941_v39  ;;  %v7146_v39 = vpop.eup %4611 }
 0x5f7   :  { %v2684_v57 = vadd.f32 %v2683_v56, %v2642_v51  ;;  %v1147_v56 = vsub.f32 %v8436_v14, %v7085_v62  ;;  %v1339_v36 = vadd.f32 %v7135_v45, %v1338_v44  ;;  %8438 = vst [vmem:[#allocation77_spill] sm:$0xff] %v7146_v39 }
 0x5f9   :  { %v2704_v9 = vadd.f32 %v7071_v46, %v2684_v57  ;;  %v7117_v43 = vpop.f32.mrf.mxu3  ;;  %v1239_v14 = vmul.f32 1.442695, %v1147_v56 }
 0x5fa   :  { %v7111_v31 = vpop.f32.mrf.mxu1 }
 0x5fb   :  { %2712 = vst [vmem:[#allocation25 + $0x18] sm:$0xff] %v2704_v9 }
 0x5fd   :  { %4324 = vmatmul.msk.f32.gmra.mxu1 %vm2242_vm12, %v6768_v13  ;;  %v1235_v13 = vmul.f32 1.442695, %v1145_v55  ;;  %v3942_v16 = vpop.trf.xlu0 }
 0x5fe   :  { %v2645_v23 = vpop.f32.mrf.mxu2  ;;  %4365 = vmatmul.msk.f32.gmra.mxu3 %vm2445_vm0, %v3942_v16 }
 0x5ff   :  { %v2687_v47 = vadd.f32 %v7017_v7, %v2645_v23  ;;  %v1149_v7 = vsub.f32 %v8437_v42, %v7085_v62  ;;  %4613 = vpow2.f32 %v1235_v13 }
 0x600   :  { %4615 = vpow2.f32 %v1239_v14 }
 0x601   :  { %v2705_v20 = vadd.f32 %v7071_v46, %v2687_v47  ;;  %v7137_v57 = vpop.f32.mrf.mxu3  ;;  %v1243_v34 = vmul.f32 1.442695, %v1149_v7 }
 0x602   :  { %v7132_v51 = vpop.f32.mrf.mxu1 }
 0x603   :  { %2713 = vst [vmem:[#allocation25 + $0x20] sm:$0xff] %v2705_v20  ;;  %4617 = vpow2.f32 %v1243_v34 }
 0x605   :  { %4325 = vmatmul.msk.f32.gmra.mxu1 %vm2242_vm12, %v6784_v18  ;;  %v1340_v18 = vadd.f32 %v7146_v39, %v1339_v36  ;;  %v3943_v27 = vpop.trf.xlu0  ;;  %v7152_v42 = vpop.eup %4613 }
 0x606   :  { %v2648_v9 = vpop.f32.mrf.mxu2  ;;  %8439 = vst [vmem:[#allocation125_spill] sm:$0xff] %v7152_v42  ;;  %4366 = vmatmul.msk.f32.gmra.mxu3 %vm2445_vm0, %v3943_v27  ;;  %v7161_v56 = vpop.eup %4615 }
 0x607   :  { %v2690_v12 = vadd.f32 %v7022_v24, %v2648_v9  ;;  %v1341_v47 = vadd.f32 %v7152_v42, %v1340_v18  ;;  %8440 = vst [vmem:[#allocation59_spill] sm:$0xff] %v7161_v56 }
 0x609   :  { %v2706_v55 = vadd.f32 %v7071_v46, %v2690_v12  ;;  %v7154_v62 = vpop.f32.mrf.mxu3  ;;  %v1342_v16 = vadd.f32 %v7161_v56, %v1341_v47  ;;  %v7165_v14 = vpop.eup %4617 }
 0x60a   :  { %v7149_v23 = vpop.f32.mrf.mxu1  ;;  %8441 = vst [vmem:[#allocation50_spill] sm:$0xff] %v7165_v14 }
 0x60b   :  { %2714 = vst [vmem:[#allocation25 + $0x28] sm:$0xff] %v2706_v55 }
 0x60d   :  { %4326 = vmatmul.msk.f32.gmra.mxu1 %vm2242_vm12, %v6796_v2  ;;  %v3944_v7 = vpop.trf.xlu0 }
 0x60e   :  { %v2651_v24 = vpop.f32.mrf.mxu2  ;;  %4367 = vmatmul.msk.f32.gmra.mxu3 %vm2445_vm0, %v3944_v7 }
 0x60f   :  { %v2693_v20 = vadd.f32 %v7027_v60, %v2651_v24  ;;  %v1343_v60 = vadd.f32 %v7165_v14, %v1342_v16  ;;  %v3739_v24 = vpop.trf.xlu2 }
 0x611   :  { %v2707_v13 = vadd.f32 %v7071_v46, %v2693_v20  ;;  %v7167_v9 = vpop.f32.mrf.mxu3  ;;  %v1344_v34 = vrot.slane %v1343_v60, 4 }
 0x612   :  { %v2847_v44 = vpop.f32.mrf.mxu1 }
 0x613   :  { %2715 = vst [vmem:[#allocation25 + $0x30] sm:$0xff] %v2707_v13 }
 0x615   :  { %4327 = vmatmul.msk.f32.gmra.mxu1 %vm2242_vm12, %v6816_v37  ;;  %v3945_v18 = vpop.trf.xlu0  ;;  %v1345_v37 = vadd.f32 %v1344_v34, %v1343_v60 }
 0x616   :  { %v2654_v2 = vpop.f32.mrf.mxu2  ;;  %4368 = vmatmul.msk.f32.gmra.mxu3 %vm2445_vm0, %v3945_v18 }
 0x617   :  { %v2696_v36 = vadd.f32 %v7032_v54, %v2654_v2  ;;  %v1346_v20 = vrot.slane %v1345_v37, 2  ;;  %v3740_v54 = vpop.trf.xlu2 }
 0x619   :  { %v2708_v12 = vadd.f32 %v7071_v46, %v2696_v36  ;;  %v7175_v27 = vpop.f32.mrf.mxu3  ;;  %v1347_v46 = vadd.f32 %v1346_v20, %v1345_v37  ;;  %v8442_v20 = vld [vmem:[#allocation121_spill] sm:$0xff] }
 0x61a   :  { %v2850_v55 = vpop.f32.mrf.mxu1 }
 0x61b   :  { %2716 = vst [vmem:[#allocation25 + $0x38] sm:$0xff] %v2708_v12  ;;  %v1348_v2 = vrot.slane %v1347_v46, 1 }
 0x61d   :  { %4328 = vmatmul.msk.f32.gmra.mxu1 %vm2242_vm12, %v6834_v3  ;;  %v3946_v13 = vpop.trf.xlu0  ;;  %v7190_v3 = vadd.f32 %v1348_v2, %v1347_v46  ;;  %v8444_v2 = vld [vmem:[#allocation81_spill] sm:$0xff] }
 0x61e   :  { %4369 = vmatmul.msk.f32.gmra.mxu3 %vm2445_vm0, %v3946_v13 }
 0x61f   :  { %v7192_v60 = vpop.trf.xlu2  ;;  %4619 = vrcp.f32 %v7190_v3  ;;  %vm1448_vm5 = vweird.f32 %v7190_v3 }
 0x621   :  { %v7180_v16 = vpop.f32.mrf.mxu3 }
 0x622   :  { %v2853_v47 = vpop.f32.mrf.mxu1 }
 0x625   :  { %4329 = vmatmul.msk.f32.gmra.mxu1 %vm2242_vm12, %v6849_v40  ;;  %v3947_v36 = vpop.trf.xlu0  ;;  %v7203_v56 = vpop.eup %4619 }
 0x626   :  { %4370 = vmatmul.msk.f32.gmra.mxu3 %vm2445_vm0, %v3947_v36  ;;  %v8445_v36 = vld [vmem:[#allocation80_spill] sm:$0xff]  ;;  %vm1449_vm6 = vweird.f32 %v7203_v56 }
 0x627   :  { %v1067_v14 = vmax.f32 %v8445_v36, %v8444_v2  ;;  %v2870_v2 = vmul.f32 %v6912_v30, %v7111_v31  ;;  %v2868_v31 = vmul.f32 %v6921_v49, %v7087_v8  ;;  %vm7245_vm7 = vmor %vm1448_vm5, %vm1449_vm6 }
 0x629   :  { %v7185_v12 = vpop.f32.mrf.mxu3 }
 0x62a   :  { %v2856_v7 = vpop.f32.mrf.mxu1 }
 0x62b   :  { %v2876_v13 = vmul.f32 %v8442_v20, %v2856_v7  ;;  %v2873_v7 = vmul.f32 %v6895_v53, %v2847_v44 }
 0x62d   :  { %4330 = vmatmul.msk.f32.gmra.mxu1 %vm2242_vm12, %v6866_v25  ;;  %v3948_v18 = vpop.trf.xlu0  ;;  %v8443_v25 = vld [vmem:[#allocation123_spill] sm:$0xff] }
 0x62e   :  { %4371 = vmatmul.msk.f32.gmra.mxu3 %vm2445_vm0, %v3948_v18  ;;  %v2875_v46 = vmul.f32 %v8443_v25, %v2853_v47  ;;  %v7208_v18 = vpop.trf.xlu2  ;;  %v8447_v47 = vld [vmem:[#allocation82_spill] sm:$0xff] }
 0x631   :  { %v3558_v37 = vpop.f32.mrf.mxu3 }
 0x632   :  { %v2859_v34 = vpop.f32.mrf.mxu1 }
 0x633   :  { %v2877_v40 = vmul.f32 %v6875_v29, %v2859_v34  ;;  %v2874_v34 = vmul.f32 %v6888_v0, %v2850_v55  ;;  %v2872_v55 = vmul.f32 %v6901_v21, %v7149_v23 }
 0x635   :  { %2878 = vmatpush.msra.mxu2 %v2877_v40  ;;  %4331 = vmatmul.msk.f32.gmra.mxu1 %vm2242_vm12, %v6893_v19  ;;  %v3949_v40 = vpop.trf.xlu0  ;;  %v1444_v19 = vmul.f32 %v7203_v56, %v7190_v3 }
 0x636   :  { %4372 = vmatmul.msk.f32.gmra.mxu3 %vm2445_vm0, %v3949_v40  ;;  %v2869_v40 = vmul.f32 %v6916_v5, %v7100_v17 }
 0x637   :  { %2879 = vmatpush.msra.mxu2 %v2876_v13  ;;  %v1068_v13 = vmax.f32 %v1067_v14, %v8447_v47  ;;  %v1445_v44 = vsub.f32 1.0, %v1444_v19 }
 0x639   :  { %2880 = vmatpush.msra.mxu2 %v2875_v46  ;;  %v3561_v39 = vpop.f32.mrf.mxu3  ;;  %v2871_v46 = vmul.f32 %v6906_v38, %v7132_v51  ;;  %v7229_v51 = vpop.trf.xlu2 }
 0x63a   :  { %v7206_v42 = vpop.f32.mrf.mxu1 }
 0x63b   :  { %8446 = vst [vmem:[#allocation49_spill] sm:$0xff] %v7206_v42  ;;  %2881 = vmatpush.msra.mxu2 %v2874_v34  ;;  %v8448_v34 = vld [vmem:[#allocation83_spill] sm:$0xff] }
 0x63c   :  { %v1069_v42 = vmax.f32 %v1068_v13, %v8448_v34  ;;  %v3581_v13 = vmul.f32 %v8442_v20, %v3561_v39  ;;  %v8465_v39 = vld [vmem:[#allocation101_spill] sm:$0xff] }
 0x63d   :  { %2882 = vmatpush.msra.mxu2 %v2873_v7  ;;  %4348 = vmatmul.msk.f32.vlgmr.msra.gmra.mxu1 %vm2242_vm12, %v3739_v24  ;;  %v3950_v23 = vpop.trf.xlu0  ;;  %v1446_v24 = vmul.f32 %v7203_v56, %v1445_v44  ;;  %v8449_v7 = vld [vmem:[#allocation84_spill] sm:$0xff]  ;;  %v2866_v44 = vmul.f32 %v6933_v33, %v7066_v4 }
 0x63e   :  { %v1070_v47 = vmax.f32 %v1069_v42, %v8449_v7  ;;  %4373 = vmatmul.msk.f32.gmra.mxu3 %vm2445_vm0, %v3950_v23  ;;  %v1454_v42 = vand.u32 2147483648, %v7190_v3  ;;  %v2864_v23 = vmul.f32 %v6947_v52, %v7052_v1  ;;  %v8455_v1 = vld [vmem:[#allocation87_spill] sm:$0xff] }
 0x63f   :  { %2883 = vmatpush.msra.mxu2 %v2872_v55  ;;  %v1447_v8 = vadd.f32 %v7203_v56, %v1446_v24  ;;  %v3576_v24 = vmul.f32 %v6906_v38, %v7167_v9  ;;  %v3574_v38 = vmul.f32 %v6916_v5, %v7137_v57  ;;  %v8457_v5 = vld [vmem:[#allocation42_spill] sm:$0xff] }
 0x641   :  { %2884 = vmatpush.msra.mxu2 %v2871_v46  ;;  %v3564_v19 = vpop.f32.mrf.mxu3  ;;  %v3580_v46 = vmul.f32 %v8443_v25, %v3558_v37  ;;  %v1455_v25 = vor.u32 1.1754944e-38, %v1454_v42  ;;  %v1451_v4 = vsel %vm7245_vm7, %v7203_v56, %v1447_v8  ;;  %v2863_v56 = vmul.f32 %v6953_v48, %v7046_v6 }
 0x642   :  { %v7223_v14 = vpop.f32.mrf.mxu1  ;;  %v3582_v17 = vmul.f32 %v6875_v29, %v3564_v19  ;;  %v8453_v29 = vld [vmem:[#allocation85_spill] sm:$0xff] }
 0x643   :  { %2885 = vmatpush.msra.mxu2 %v2870_v2  ;;  %v8450_v2 = vld [vmem:[#allocation51_spill] sm:$0xff]  ;;  %v1071_v20 = vmax.f32 %v1070_v47, %v8453_v29  ;;  %v3578_v47 = vmul.f32 %v6895_v53, %v7180_v16  ;;  %v3744_v53 = vpop.trf.xlu2 }
 0x644   :  { %v2867_v55 = vmul.f32 %v8450_v2, %v7078_v15  ;;  %3583 = vmatpush.msrb.mxu0 %v3582_v17  ;;  %v3579_v15 = vmul.f32 %v6888_v0, %v7185_v12  ;;  %v8454_v0 = vld [vmem:[#allocation86_spill] sm:$0xff] }
 0x645   :  { %2886 = vmatpush.msra.mxu2 %v2869_v40  ;;  %4349 = vmatmul.msk.f32.gmra.mxu1 %vm2242_vm12, %v3740_v54  ;;  %v1452_v54 = vand.u32 2147483647, %v7190_v3  ;;  %v2865_v3 = vmul.f32 %v6942_v35, %v7060_v10  ;;  %v3951_v40 = vpop.trf.xlu0  ;;  %v1072_v12 = vmax.f32 %v1071_v20, %v8454_v0  ;;  %v3577_v10 = vmul.f32 %v6901_v21, %v7175_v27 }
 0x646   :  { %3584 = vmatpush.msrb.mxu0 %v3581_v13  ;;  %4374 = vmatmul.msk.f32.gmra.mxu3 %vm2445_vm0, %v3951_v40  ;;  %v3575_v21 = vmul.f32 %v6912_v30, %v7154_v62  ;;  %v3573_v30 = vmul.f32 %v6921_v49, %v7117_v43  ;;  %v3571_v13 = vmul.f32 %v6933_v33, %v7089_v28  ;;  %v8458_v49 = vld [vmem:[#allocation41_spill] sm:$0xff]  ;;  %v8459_v28 = vld [vmem:[#allocation64_spill] sm:$0xff] }
 0x647   :  { %2887 = vmatpush.msra.mxu2 %v2868_v31  ;;  %vm1453_vm8 = vcmp.eq.f32.partialorder %v1452_v54, 8.507059e+37  ;;  %v1073_v19 = vmax.f32 %v1072_v12, %v8455_v1  ;;  %v3569_v33 = vmul.f32 %v6947_v52, %v7073_v22  ;;  %v8461_v52 = vld [vmem:[#allocation88_spill] sm:$0xff]  ;;  %v8470_v12 = vld [vmem:[#allocation82_spill] sm:$0xff] }
 0x648   :  { %3585 = vmatpush.msrb.mxu0 %v3580_v46  ;;  %v7273_v16 = vsel %vm1453_vm8, %v1455_v25, %v1451_v4  ;;  %v8466_v25 = vld [vmem:[#allocation90_spill] sm:$0xff]  ;;  %v8469_v4 = vld [vmem:[#allocation92_spill] sm:$0xff] }
 0x649   :  { %2888 = vmatpush.msra.mxu2 %v2867_v55  ;;  %v1543_v6 = vmul.f32 %v7113_v32, %v7273_v16  ;;  %v1074_v9 = vrot.slane %v1073_v19, 4  ;;  %v3572_v32 = vmul.f32 %v8450_v2, %v7102_v11  ;;  %v1545_v17 = vmul.f32 %v7115_v26, %v7273_v16  ;;  %v8460_v2 = vld [vmem:[#allocation97_spill] sm:$0xff] }
 0x64a   :  { %v7254_v37 = vpop.f32.mrf.mxu1  ;;  %3586 = vmatpush.msrb.mxu0 %v3579_v15  ;;  %v3570_v11 = vmul.f32 %v6942_v35, %v7080_v63  ;;  %v3568_v26 = vmul.f32 %v6953_v48, %v7062_v58  ;;  %v3567_v63 = vmul.f32 %v6959_v50, %v7054_v61  ;;  %v8462_v58 = vld [vmem:[#allocation47_spill] sm:$0xff]  ;;  %v1549_v54 = vmul.f32 %v7135_v45, %v7273_v16 }
 0x64b   :  { %2889 = vmatpush.msra.mxu2 %v2866_v44  ;;  %v3745_v62 = vpop.trf.xlu2  ;;  %v1075_v57 = vmax.f32 %v1073_v19, %v1074_v9 }
 0x64c   :  { %3587 = vmatpush.msrb.mxu0 %v3578_v47  ;;  %v8468_v47 = vld [vmem:[#allocation91_spill] sm:$0xff] }
 0x64d   :  { %2890 = vmatpush.msra.mxu2 %v2865_v3  ;;  %4350 = vmatmul.msk.f32.gmra.mxu1 %vm2242_vm12, %v7192_v60  ;;  %v2862_v60 = vmul.f32 %v6959_v50, %v7039_v59  ;;  %v3952_v31 = vpop.trf.xlu0  ;;  %v8456_v59 = vld [vmem:[#allocation75_spill] sm:$0xff]  ;;  %v1076_v42 = vrot.slane %v1075_v57, 2  ;;  %v8463_v50 = vld [vmem:[#allocation100_spill] sm:$0xff]  ;;  %v8467_v3 = vld [vmem:[#allocation81_spill] sm:$0xff] }
 0x64e   :  { %3588 = vmatpush.msrb.mxu0 %v3577_v10  ;;  %4375 = vmatmul.msk.f32.gmra.mxu3 %vm2445_vm0, %v3952_v31 }
 0x64f   :  { %2891 = vmatpush.msra.mxu2 %v2864_v23  ;;  %v1077_v35 = vmax.f32 %v1075_v57, %v1076_v42  ;;  %v8476_v57 = vld [vmem:[#allocation103_spill] sm:$0xff] }
 0x650   :  { %3589 = vmatpush.msrb.mxu0 %v3576_v24  ;;  %v8472_v24 = vld [vmem:[#allocation94_spill] sm:$0xff] }
 0x651   :  { %2892 = vmatpush.msra.mxu2 %v2863_v56  ;;  %v1078_v48 = vrot.slane %v1077_v35, 1 }
 0x652   :  { %v7282_v27 = vpop.f32.mrf.mxu1  ;;  %3590 = vmatpush.msrb.mxu0 %v3575_v21 }
 0x653   :  { %2893 = vmatpush.msra.mxu2 %v2862_v60  ;;  %v3746_v46 = vpop.trf.xlu2  ;;  %v7326_v61 = vmax.f32 %v1077_v35, %v1078_v48  ;;  %v8473_v60 = vld [vmem:[#allocation96_spill] sm:$0xff] }
 0x654   :  { %2894 = vmatmul.f32.vlgmr.msra.gmra.mxu2 %v1543_v6  ;;  %3591 = vmatpush.msrb.mxu0 %v3574_v38  ;;  %v8474_v38 = vld [vmem:[#allocation120_spill] sm:$0xff] }
 0x655   :  { %4351 = vmatmul.msk.f32.gmra.mxu1 %vm2242_vm12, %v7208_v18  ;;  %3121 = vmatpush.msrb.mxu2 %v8456_v59  ;;  %v3953_v43 = vpop.trf.xlu0  ;;  %v1151_v15 = vsub.f32 %v8445_v36, %v7326_v61  ;;  %v1153_v40 = vsub.f32 %v8467_v3, %v7326_v61  ;;  %v1155_v23 = vsub.f32 %v8470_v12, %v7326_v61  ;;  %v8471_v36 = vld [vmem:[#allocation77_spill] sm:$0xff]  ;;  %v8482_v3 = vld [vmem:[#allocation50_spill] sm:$0xff] }
 0x656   :  { %3592 = vmatpush.msrb.mxu0 %v3573_v30  ;;  %4376 = vmatmul.msk.f32.gmra.mxu3 %vm2445_vm0, %v3953_v43  ;;  %v1551_v56 = vmul.f32 %v8471_v36, %v7273_v16  ;;  %v1157_v21 = vsub.f32 %v8448_v34, %v7326_v61  ;;  %v1159_v9 = vsub.f32 %v8449_v7, %v7326_v61 }
 0x657   :  { %3122 = vmatpush.msrb.mxu2 %v8457_v5  ;;  %v1247_v45 = vmul.f32 1.442695, %v1151_v15  ;;  %v1251_v10 = vmul.f32 1.442695, %v1153_v40  ;;  %v1255_v6 = vmul.f32 1.442695, %v1155_v23  ;;  %v1161_v7 = vsub.f32 %v8453_v29, %v7326_v61 }
 0x658   :  { %3593 = vmatpush.msrb.mxu0 %v3572_v32  ;;  %v1259_v30 = vmul.f32 1.442695, %v1157_v21  ;;  %v8475_v32 = vld [vmem:[#allocation125_spill] sm:$0xff]  ;;  %v8479_v29 = vld [vmem:[#allocation59_spill] sm:$0xff]  ;;  %v1557_v40 = vmul.f32 %v8482_v3, %v7273_v16 }
 0x659   :  { %3123 = vmatpush.msrb.mxu2 %v8458_v49  ;;  %4621 = vpow2.f32 %v1247_v45  ;;  %v1263_v49 = vmul.f32 1.442695, %v1159_v9  ;;  %v1267_v35 = vmul.f32 1.442695, %v1161_v7  ;;  %v8483_v45 = vld [vmem:[#allocation56_spill] sm:$0xff] }
 0x65a   :  { %v7299_v18 = vpop.f32.mrf.mxu1  ;;  %3594 = vmatpush.msrb.mxu0 %v3571_v13  ;;  %4623 = vpow2.f32 %v1251_v10  ;;  %v8477_v13 = vld [vmem:[#allocation99_spill] sm:$0xff] }
 0x65b   :  { %3124 = vmatpush.msrb.mxu2 %v8459_v28  ;;  %v3747_v44 = vpop.trf.xlu2  ;;  %4625 = vpow2.f32 %v1255_v6  ;;  %v8478_v28 = vld [vmem:[#allocation104_spill] sm:$0xff] }
 0x65c   :  { %2897 = vmatmul.f32.gmra.mxu2 %v1545_v17  ;;  %3595 = vmatpush.msrb.mxu0 %v3570_v11  ;;  %v1080_v17 = vmax.f32 %v8477_v13, %v8476_v57  ;;  %4627 = vpow2.f32 %v1259_v30  ;;  %v8485_v6 = vld [vmem:[#allocation68_spill] sm:$0xff] }
 0x65d   :  { %4352 = vmatmul.msk.f32.gmra.mxu1 %vm2242_vm12, %v7229_v51  ;;  %3125 = vmatpush.msrb.mxu2 %v8460_v2  ;;  %v1547_v51 = vmul.f32 %v7127_v41, %v7273_v16  ;;  %v3954_v22 = vpop.trf.xlu0  ;;  %v8464_v41 = vld [vmem:[#allocation89_spill] sm:$0xff]  ;;  %v1163_v2 = vsub.f32 %v8454_v0, %v7326_v61  ;;  %4629 = vpow2.f32 %v1263_v49  ;;  %v1165_v0 = vsub.f32 %v8455_v1, %v7326_v61 }
 0x65e   :  { %3596 = vmatpush.msrb.mxu0 %v3569_v33  ;;  %4377 = vmatmul.msk.f32.gmra.mxu3 %vm2445_vm0, %v3954_v22  ;;  %v8480_v22 = vld [vmem:[#allocation37_spill] sm:$0xff]  ;;  %4631 = vpow2.f32 %v1267_v35 }
 0x65f   :  { %3126 = vmatpush.msrb.mxu2 %v8461_v52  ;;  %v7362_v5 = vpop.eup %4621  ;;  %v1275_v15 = vmul.f32 1.442695, %v1165_v0 }
 0x660   :  { %3597 = vmatpush.msrb.mxu0 %v3568_v26  ;;  %v7364_v34 = vpop.eup %4623  ;;  %v1081_v26 = vmax.f32 %v1080_v17, %v8478_v28 }
 0x661   :  { %3127 = vmatpush.msrb.mxu2 %v8462_v58  ;;  %v1363_v43 = vadd.f32 %v7364_v34, %v7362_v5  ;;  %v7375_v42 = vpop.eup %4625  ;;  %v3097_v58 = vpop.f32.mrf.mxu0 }
 0x662   :  { %v7317_v55 = vpop.f32.mrf.mxu1  ;;  %3598 = vmatpush.msrb.mxu0 %v3567_v63  ;;  %v7385_v52 = vpop.eup %4627  ;;  %v1082_v48 = vmax.f32 %v1081_v26, %v8480_v22 }
 0x663   :  { %3128 = vmatpush.msrb.mxu2 %v8463_v50  ;;  %v3748_v31 = vpop.trf.xlu2  ;;  %v1271_v50 = vmul.f32 1.442695, %v1163_v2 }
 0x664   :  { %2900 = vmatmul.f32.gmra.mxu2 %v1547_v51  ;;  %v1555_v51 = vmul.f32 %v8479_v29, %v7273_v16 }
 0x665   :  { %4353 = vmatmul.msk.f32.gmra.mxu1 %vm2242_vm12, %v3744_v53  ;;  %3129 = vmatpush.msrb.mxu2 %v8464_v41  ;;  %v3955_v20 = vpop.trf.xlu0  ;;  %4633 = vpow2.f32 %v1271_v50 }
 0x666   :  { %4378 = vmatmul.msk.f32.gmra.mxu3 %vm2445_vm0, %v3955_v20  ;;  %v8481_v20 = vld [vmem:[#allocation57_spill] sm:$0xff]  ;;  %4635 = vpow2.f32 %v1275_v15 }
 0x667   :  { %3130 = vmatpush.msrb.mxu2 %v8465_v39  ;;  %v7394_v39 = vpop.eup %4629 }
 0x668   :  { %v7402_v61 = vpop.eup %4631 }
 0x669   :  { %3131 = vmatpush.msrb.mxu2 %v8466_v25  ;;  %v3100_v23 = vpop.f32.mrf.mxu0 }
 0x66a   :  { %v7329_v8 = vpop.f32.mrf.mxu1 }
 0x66b   :  { %3132 = vmatpush.msrb.mxu2 %v8468_v47  ;;  %v3749_v33 = vpop.trf.xlu2  ;;  %v7407_v10 = vpop.eup %4633 }
 0x66c   :  { %2903 = vmatmul.f32.gmra.mxu2 %v1549_v54 }
 0x66d   :  { %4354 = vmatmul.msk.f32.gmra.mxu1 %vm2242_vm12, %v3745_v62  ;;  %3133 = vmatpush.msrb.mxu2 %v8469_v4  ;;  %v3956_v19 = vpop.trf.xlu0  ;;  %v1553_v62 = vmul.f32 %v8475_v32, %v7273_v16 }
 0x66e   :  { %4379 = vmatmul.msk.f32.gmra.mxu3 %vm2445_vm0, %v3956_v19 }
 0x66f   :  { %3134 = vmatpush.msrb.mxu2 %v8472_v24 }
 0x671   :  { %3135 = vmatpush.msrb.mxu2 %v8473_v60  ;;  %v7415_v60 = vpop.eup %4635  ;;  %v3103_v30 = vpop.f32.mrf.mxu0 }
 0x672   :  { %v7345_v53 = vpop.f32.mrf.mxu1 }
 0x673   :  { %3136 = vmatpush.msrb.mxu2 %v8474_v38  ;;  %v3750_v47 = vpop.trf.xlu2 }
 0x674   :  { %2906 = vmatmul.f32.gmra.mxu2 %v1551_v56  ;;  %v8484_v56 = vld [vmem:[#allocation67_spill] sm:$0xff] }
 0x675   :  { %4355 = vmatmul.msk.f32.gmra.mxu1 %vm2242_vm12, %v3746_v46  ;;  %v1364_v46 = vadd.f32 %v7375_v42, %v1363_v43 }
 0x677   :  { %v1365_v41 = vadd.f32 %v7385_v52, %v1364_v46 }
 0x679   :  { %v7373_v11 = vpop.f32.mrf.mxu3  ;;  %v1366_v1 = vadd.f32 %v7394_v39, %v1365_v41  ;;  %v3106_v35 = vpop.f32.mrf.mxu0 }
 0x67a   :  { %v7358_v59 = vpop.f32.mrf.mxu1 }
 0x67b   :  { %v1367_v12 = vadd.f32 %v7402_v61, %v1366_v1  ;;  %v3751_v21 = vpop.trf.xlu2 }
 0x67c   :  { %2909 = vmatmul.f32.gmra.mxu2 %v1553_v62 }
 0x67d   :  { %4356 = vmatmul.msk.f32.gmra.mxu1 %vm2242_vm12, %v3747_v44  ;;  %v1083_v44 = vmax.f32 %v1082_v48, %v8481_v20  ;;  %v1368_v19 = vadd.f32 %v7407_v10, %v1367_v12  ;;  %v7438_v12 = vld [vmem:[#allocation23 + $0x78] sm:$0xff] }
 0x67f   :  { %v1084_v4 = vmax.f32 %v1083_v44, %v8483_v45  ;;  %v1369_v38 = vadd.f32 %v7415_v60, %v1368_v19  ;;  %v7441_v19 = vld [vmem:[#allocation23 + $0x70] sm:$0xff] }
 0x681   :  { %v7392_v54 = vpop.f32.mrf.mxu3  ;;  %v1085_v16 = vmax.f32 %v1084_v4, %v8484_v56  ;;  %v1370_v17 = vrot.slane %v1369_v38, 4  ;;  %v3109_v44 = vpop.f32.mrf.mxu0 }
 0x682   :  { %v7380_v63 = vpop.f32.mrf.mxu1 }
 0x683   :  { %v3752_v49 = vpop.trf.xlu2  ;;  %v1371_v43 = vadd.f32 %v1370_v17, %v1369_v38  ;;  %v7447_v38 = vld [vmem:[#allocation23 + $0x68] sm:$0xff] }
 0x684   :  { %2912 = vmatmul.f32.gmra.mxu2 %v1555_v51 }
 0x685   :  { %4357 = vmatmul.msk.f32.gmra.mxu1 %vm2242_vm12, %v3748_v31  ;;  %v1086_v31 = vmax.f32 %v1085_v16, %v8485_v6  ;;  %v1372_v2 = vrot.slane %v1371_v43, 2 }
 0x687   :  { %v1087_v9 = vrot.slane %v1086_v31, 4  ;;  %v1373_v46 = vadd.f32 %v1372_v2, %v1371_v43  ;;  %v7461_v2 = vld [vmem:[#allocation23 + $0x58] sm:$0xff] }
 0x689   :  { %v7409_v36 = vpop.f32.mrf.mxu3  ;;  %v1088_v7 = vmax.f32 %v1086_v31, %v1087_v9  ;;  %v1374_v50 = vrot.slane %v1373_v46, 1  ;;  %v3112_v31 = vpop.f32.mrf.mxu0 }
 0x68a   :  { %v7397_v25 = vpop.f32.mrf.mxu1 }
 0x68b   :  { %v3753_v48 = vpop.trf.xlu2  ;;  %v7431_v3 = vadd.f32 %v1374_v50, %v1373_v46 }
 0x68c   :  { %2915 = vmatmul.f32.gmra.mxu2 %v1557_v40 }
 0x68d   :  { %4358 = vmatmul.msk.f32.gmra.mxu1 %vm2242_vm12, %v3749_v33  ;;  %v1089_v33 = vrot.slane %v1088_v7, 2  ;;  %4637 = vrcp.f32 %v7431_v3 }
 0x68f   :  { %v1090_v51 = vmax.f32 %v1088_v7, %v1089_v33  ;;  %v7454_v7 = vld [vmem:[#allocation23 + $0x60] sm:$0xff] }
 0x691   :  { %v7420_v62 = vpop.f32.mrf.mxu3 }
 0x692   :  { %v7412_v24 = vpop.f32.mrf.mxu1 }
 0x693   :  { %v3754_v4 = vpop.trf.xlu2  ;;  %v7452_v17 = vpop.eup %4637 }
 0x694   :  { %3137 = vmatmul.f32.vlgmr.msrb.gmra.mxu2 %v3097_v58  ;;  %v1091_v58 = vrot.slane %v1090_v51, 1  ;;  %vm1477_vm0 = vweird.f32 %v7452_v17 }
 0x695   :  { %4359 = vmatmul.msk.f32.gmra.mxu1 %vm2242_vm12, %v3750_v47 }
 0x696   :  { %v7426_v41 = vmax.f32 %v1090_v51, %v1091_v58  ;;  %v7467_v51 = vld [vmem:[#allocation23 + $0x50] sm:$0xff]  ;;  %v7475_v58 = vld [vmem:[#allocation23 + $0x48] sm:$0xff] }
 0x698   :  { %v1152_v40 = vsub.f32 %v8477_v13, %v7426_v41  ;;  %v1154_v47 = vsub.f32 %v8476_v57, %v7426_v41  ;;  %v1156_v57 = vsub.f32 %v8478_v28, %v7426_v41  ;;  %v1158_v28 = vsub.f32 %v8480_v22, %v7426_v41 }
 0x699   :  { %v7423_v29 = vpop.f32.mrf.mxu3  ;;  %v1160_v22 = vsub.f32 %v8481_v20, %v7426_v41  ;;  %v1162_v20 = vsub.f32 %v8483_v45, %v7426_v41  ;;  %v7501_v45 = vld [vmem:[#allocation23 + $0x30] sm:$0xff] }
 0x69a   :  { %v3353_v32 = vpop.f32.mrf.mxu1  ;;  %v1249_v16 = vmul.f32 1.442695, %v1152_v40  ;;  %v1253_v13 = vmul.f32 1.442695, %v1154_v47  ;;  %v1257_v43 = vmul.f32 1.442695, %v1156_v57  ;;  %v3371_v57 = vmul.f32 %v7501_v45, %v7329_v8 }
 0x69b   :  { %v1261_v46 = vmul.f32 1.442695, %v1158_v28  ;;  %v7481_v40 = vld [vmem:[#allocation23 + $0x40] sm:$0xff]  ;;  %v1265_v47 = vmul.f32 1.442695, %v1160_v22 }
 0x69c   :  { %3140 = vmatmul.f32.gmra.mxu2 %v3100_v23  ;;  %4639 = vpow2.f32 %v1249_v16 }
 0x69d   :  { %4360 = vmatmul.msk.f32.gmra.mxu1 %vm2242_vm12, %v3751_v21  ;;  %4641 = vpow2.f32 %v1253_v13  ;;  %v1164_v13 = vsub.f32 %v8484_v56, %v7426_v41 }
 0x69e   :  { %4643 = vpow2.f32 %v1257_v43 }
 0x69f   :  { %4645 = vpow2.f32 %v1261_v46  ;;  %v1273_v22 = vmul.f32 1.442695, %v1164_v13  ;;  %v7557_v13 = vld [vmem:[#allocation23] sm:$0xff] }
 0x6a0   :  { %4647 = vpow2.f32 %v1265_v47 }
 0x6a1   :  { %v7429_v15 = vpop.f32.mrf.mxu3 }
 0x6a2   :  { %v3356_v26 = vpop.f32.mrf.mxu1 }
 0x6a3   :  { %v3378_v9 = vmul.f32 %v7447_v38, %v3356_v26  ;;  %v3376_v26 = vmul.f32 %v7461_v2, %v7412_v24  ;;  %v3374_v24 = vmul.f32 %v7475_v58, %v7380_v63 }
 0x6a4   :  { %3143 = vmatmul.f32.gmra.mxu2 %v3103_v30 }
 0x6a5   :  { %4361 = vmatmul.msk.f32.gmra.mxu1 %vm2242_vm12, %v3752_v49  ;;  %v3377_v49 = vmul.f32 %v7454_v7, %v3353_v32  ;;  %v3375_v32 = vmul.f32 %v7467_v51, %v7397_v25  ;;  %v3373_v25 = vmul.f32 %v7481_v40, %v7358_v59 }
 0x6a9   :  { %v7450_v30 = vpop.f32.mrf.mxu3 }
 0x6aa   :  { %v3359_v0 = vpop.f32.mrf.mxu1 }
 0x6ab   :  { %v3379_v21 = vmul.f32 %v7441_v19, %v3359_v0 }
 0x6ac   :  { %3146 = vmatmul.f32.gmra.mxu2 %v3106_v35  ;;  %v1472_v35 = vmul.f32 %v7452_v17, %v7431_v3 }
 0x6ad   :  { %4362 = vmatmul.msk.f32.gmra.mxu1 %vm2242_vm12, %v3753_v48  ;;  %v7473_v48 = vpop.eup %4639 }
 0x6ae   :  { %v7479_v0 = vpop.eup %4641  ;;  %v1473_v50 = vsub.f32 1.0, %v1472_v35  ;;  %v7524_v35 = vld [vmem:[#allocation23 + $0x20] sm:$0xff] }
 0x6af   :  { %v1376_v63 = vadd.f32 %v7479_v0, %v7473_v48  ;;  %v7497_v59 = vpop.eup %4643 }
 0x6b0   :  { %v7514_v43 = vpop.eup %4645 }
 0x6b2   :  { %v3362_v1 = vpop.f32.mrf.mxu1 }
 0x6b3   :  { %v3380_v23 = vmul.f32 %v7438_v12, %v3362_v1 }
 0x6b4   :  { %3149 = vmatmul.f32.gmra.mxu2 %v3109_v44  ;;  %v3115_v44 = vpop.f32.mrf.mxu0 }
 0x6b5   :  { %3381 = vmatpush.msra.mxu2 %v3380_v23  ;;  %4363 = vmatmul.msk.f32.gmra.mxu1 %vm2242_vm12, %v3754_v4  ;;  %v7489_v4 = vpop.f32.mrf.mxu3  ;;  %v7493_v23 = vld [vmem:[#allocation23 + $0x38] sm:$0xff]  ;;  %vm1476_vm12 = vweird.f32 %v7431_v3 }
 0x6b6   :  { %v3372_v16 = vmul.f32 %v7493_v23, %v7345_v53  ;;  %v1269_v53 = vmul.f32 1.442695, %v1162_v20  ;;  %vm7520_vm9 = vmor %vm1476_vm12, %vm1477_vm0  ;;  %v7537_v20 = vpop.eup %4647 }
 0x6b7   :  { %3382 = vmatpush.msra.mxu2 %v3379_v21  ;;  %v1474_v21 = vmul.f32 %v7452_v17, %v1473_v50 }
 0x6b8   :  { %4649 = vpow2.f32 %v1269_v53  ;;  %v8491_v53 = vld [vmem:[#allocation49_spill] sm:$0xff] }
 0x6b9   :  { %3383 = vmatpush.msra.mxu2 %v3378_v9  ;;  %v1377_v9 = vadd.f32 %v7497_v59, %v1376_v63  ;;  %v1475_v8 = vadd.f32 %v7452_v17, %v1474_v21  ;;  %4651 = vpow2.f32 %v1273_v22  ;;  %v7579_v22 = vld [vmem:[#allocation20 + $0x78] sm:$0xff] }
 0x6ba   :  { %v7459_v33 = vpop.f32.mrf.mxu1  ;;  %8497 = vst [vmem:[#allocation127_spill] sm:$0xff] %v7579_v22 }
 0x6bb   :  { %8486 = vst [vmem:[#allocation48_spill] sm:$0xff] %v7459_v33  ;;  %3384 = vmatpush.msra.mxu2 %v3377_v49  ;;  %v7510_v49 = vld [vmem:[#allocation23 + $0x28] sm:$0xff] }
 0x6bc   :  { %3152 = vmatmul.f32.gmra.mxu2 %v3112_v31  ;;  %v1482_v31 = vand.u32 2147483648, %v7431_v3  ;;  %v3370_v28 = vmul.f32 %v7510_v49, %v7317_v55  ;;  %v1166_v55 = vsub.f32 %v8485_v6, %v7426_v41  ;;  %v3118_v50 = vpop.f32.mrf.mxu0  ;;  %v7544_v41 = vld [vmem:[#allocation23 + $0x10] sm:$0xff]  ;;  %v8535_v33 = vld [vmem:[#allocation116_spill] sm:$0xff] }
 0x6bd   :  { %3385 = vmatpush.msra.mxu2 %v3376_v26  ;;  %v1480_v26 = vand.u32 2147483647, %v7431_v3  ;;  %v1378_v3 = vadd.f32 %v7514_v43, %v1377_v9  ;;  %v7542_v6 = vpop.f32.mrf.mxu3  ;;  %v3367_v47 = vmul.f32 %v7544_v41, %v7254_v37  ;;  %v3365_v37 = vmul.f32 %v7557_v13, %v8491_v53  ;;  %v7602_v53 = vld [vmem:[#allocation20 + $0x60] sm:$0xff] }
 0x6be   :  { %v1277_v63 = vmul.f32 1.442695, %v1166_v55  ;;  %v7574_v55 = vld [vmem:[#allocation22 + $0x70] sm:$0xff]  ;;  %8504 = vst [vmem:[#allocation95_spill] sm:$0xff] %v7602_v53 }
 0x6bf   :  { %3386 = vmatpush.msra.mxu2 %v3375_v32  ;;  %v3369_v32 = vmul.f32 %v7524_v35, %v7299_v18  ;;  %v1479_v18 = vsel %vm7520_vm9, %v7452_v17, %v1475_v8  ;;  %vm1481_vm10 = vcmp.eq.f32.partialorder %v1480_v26, 8.507059e+37  ;;  %v7568_v8 = vld [vmem:[#allocation22 + $0x78] sm:$0xff]  ;;  %8495 = vst [vmem:[#allocation53_spill] sm:$0xff] %v7574_v55 }
 0x6c0   :  { %4653 = vpow2.f32 %v1277_v63  ;;  %8494 = vst [vmem:[#allocation58_spill] sm:$0xff] %v7568_v8  ;;  %v7596_v63 = vld [vmem:[#allocation20 + $0x68] sm:$0xff] }
 0x6c1   :  { %3387 = vmatpush.msra.mxu2 %v3374_v24  ;;  %v1483_v24 = vor.u32 1.1754944e-38, %v1482_v31  ;;  %8502 = vst [vmem:[#allocation63_spill] sm:$0xff] %v7596_v63 }
 0x6c2   :  { %v7487_v1 = vpop.f32.mrf.mxu1 }
 0x6c3   :  { %8487 = vst [vmem:[#allocation106_spill] sm:$0xff] %v7487_v1  ;;  %3388 = vmatpush.msra.mxu2 %v3373_v25  ;;  %v7553_v17 = vsel %vm1481_vm10, %v1483_v24, %v1479_v18  ;;  %v7582_v24 = vld [vmem:[#allocation22 + $0x68] sm:$0xff]  ;;  %v7590_v18 = vld [vmem:[#allocation20 + $0x70] sm:$0xff] }
 0x6c4   :  { %3155 = vmatmul.f32.gmra.mxu2 %v3115_v44  ;;  %v7533_v44 = vld [vmem:[#allocation23 + $0x18] sm:$0xff]  ;;  %v1559_v9 = vmul.f32 %v7362_v5, %v7553_v17  ;;  %8498 = vst [vmem:[#allocation128_spill] sm:$0xff] %v7582_v24 }
 0x6c5   :  { %3389 = vmatpush.msra.mxu2 %v3372_v16  ;;  %v3368_v25 = vmul.f32 %v7533_v44, %v7282_v27  ;;  %v1379_v27 = vadd.f32 %v7537_v20, %v1378_v3  ;;  %v7549_v16 = vld [vmem:[#allocation23 + $0x8] sm:$0xff]  ;;  %v7571_v26 = vpop.f32.mrf.mxu3  ;;  %8500 = vst [vmem:[#allocation93_spill] sm:$0xff] %v7590_v18 }
 0x6c6   :  { %v3366_v21 = vmul.f32 %v7549_v16, %v7223_v14 }
 0x6c7   :  { %3390 = vmatpush.msra.mxu2 %v3371_v57  ;;  %v7555_v57 = vpop.eup %4649 }
 0x6c8   :  { %v7566_v14 = vpop.eup %4651 }
 0x6c9   :  { %3391 = vmatpush.msra.mxu2 %v3370_v28  ;;  %v1380_v28 = vadd.f32 %v7555_v57, %v1379_v27  ;;  %8493 = vst [vmem:[#allocation60_spill] sm:$0xff] %v7566_v14  ;;  %v7577_v5 = vpop.eup %4653  ;;  %v7599_v27 = vld [vmem:[#allocation22 + $0x58] sm:$0xff] }
 0x6ca   :  { %v7530_v46 = vpop.f32.mrf.mxu1  ;;  %8496 = vst [vmem:[#allocation52_spill] sm:$0xff] %v7577_v5 }
 0x6cb   :  { %8490 = vst [vmem:[#allocation107_spill] sm:$0xff] %v7530_v46  ;;  %3392 = vmatpush.msra.mxu2 %v3369_v32  ;;  %v1381_v56 = vadd.f32 %v7566_v14, %v1380_v28  ;;  %v7610_v28 = vld [vmem:[#allocation20 + $0x58] sm:$0xff] }
 0x6cc   :  { %3158 = vmatmul.f32.gmra.mxu2 %v3118_v50  ;;  %v1561_v50 = vmul.f32 %v7364_v34, %v7553_v17  ;;  %8503 = vst [vmem:[#allocation61_spill] sm:$0xff] %v7599_v27  ;;  %v8536_v46 = vld [vmem:[#allocation118_spill] sm:$0xff] }
 0x6cd   :  { %3393 = vmatpush.msra.mxu2 %v3368_v25  ;;  %v1382_v25 = vadd.f32 %v7577_v5, %v1381_v56  ;;  %8506 = vst [vmem:[#allocation102_spill] sm:$0xff] %v7610_v28  ;;  %v7613_v56 = vld [vmem:[#allocation22 + $0x48] sm:$0xff] }
 0x6ce   :  { %8507 = vst [vmem:[#allocation105_spill] sm:$0xff] %v7613_v56 }
 0x6cf   :  { %3394 = vmatpush.msra.mxu2 %v3367_v47  ;;  %v7593_v47 = vld [vmem:[#allocation22 + $0x60] sm:$0xff]  ;;  %v1383_v34 = vrot.slane %v1382_v25, 4 }
 0x6d0   :  { %8501 = vst [vmem:[#allocation65_spill] sm:$0xff] %v7593_v47 }
 0x6d1   :  { %3395 = vmatpush.msra.mxu2 %v3366_v21 }
 0x6d2   :  { %v7561_v31 = vpop.f32.mrf.mxu1 }
 0x6d3   :  { %8492 = vst [vmem:[#allocation109_spill] sm:$0xff] %v7561_v31  ;;  %3396 = vmatpush.msra.mxu2 %v3365_v37  ;;  %v7605_v37 = vld [vmem:[#allocation22 + $0x50] sm:$0xff] }
 0x6d4   :  { %3397 = vmatmul.f32.vlgmr.msra.gmra.mxu2 %v1559_v9  ;;  %8505 = vst [vmem:[#allocation98_spill] sm:$0xff] %v7605_v37  ;;  %v7608_v9 = vpop.f32.mrf.mxu3 }
 0x6d5   :  { %3624 = vmatpush.msrb.mxu2 %v7568_v8 }
 0x6d7   :  { %v2895_v32 = vpop.f32.mrf.mxu2  ;;  %3625 = vmatpush.msrb.mxu2 %v7574_v55  ;;  %v1565_v55 = vmul.f32 %v7385_v52, %v7553_v17 }
 0x6d8   :  { %3178 = vmatmul.f32.vlgmr.msra.gmra.mxu0 %v2895_v32 }
 0x6d9   :  { %3665 = vmatpush.msra.mxu0 %v7579_v22  ;;  %3626 = vmatpush.msrb.mxu2 %v7582_v24 }
 0x6da   :  { %v7585_v3 = vpop.f32.mrf.mxu1 }
 0x6db   :  { %8499 = vst [vmem:[#allocation66_spill] sm:$0xff] %v7585_v3  ;;  %3666 = vmatpush.msra.mxu0 %v7590_v18  ;;  %3627 = vmatpush.msrb.mxu2 %v7593_v47  ;;  %v7620_v47 = vld [vmem:[#allocation20 + $0x50] sm:$0xff] }
 0x6dc   :  { %3400 = vmatmul.f32.gmra.mxu2 %v1561_v50  ;;  %v1563_v50 = vmul.f32 %v7375_v42, %v7553_v17  ;;  %8509 = vst [vmem:[#allocation55_spill] sm:$0xff] %v7620_v47  ;;  %v7648_v8 = vpop.f32.mrf.mxu3 }
 0x6dd   :  { %3667 = vmatpush.msra.mxu0 %v7596_v63  ;;  %3628 = vmatpush.msrb.mxu2 %v7599_v27  ;;  %v1384_v27 = vadd.f32 %v1383_v34, %v1382_v25  ;;  %v7632_v25 = vld [vmem:[#allocation20 + $0x40] sm:$0xff]  ;;  %v7635_v34 = vld [vmem:[#allocation22 + $0x30] sm:$0xff]  ;;  %v8534_v63 = vld [vmem:[#allocation114_spill] sm:$0xff] }
 0x6de   :  { %8513 = vst [vmem:[#allocation111_spill] sm:$0xff] %v7632_v25 }
 0x6df   :  { %v2898_v21 = vpop.f32.mrf.mxu2  ;;  %3668 = vmatpush.msra.mxu0 %v7602_v53  ;;  %3629 = vmatpush.msrb.mxu2 %v7605_v37  ;;  %v7626_v37 = vld [vmem:[#allocation20 + $0x48] sm:$0xff]  ;;  %v1385_v24 = vrot.slane %v1384_v27, 2  ;;  %8514 = vst [vmem:[#allocation113_spill] sm:$0xff] %v7635_v34 }
 0x6e0   :  { %3181 = vmatmul.f32.gmra.mxu0 %v2898_v21  ;;  %v7623_v21 = vld [vmem:[#allocation22 + $0x40] sm:$0xff]  ;;  %8511 = vst [vmem:[#allocation110_spill] sm:$0xff] %v7626_v37 }
 0x6e1   :  { %3669 = vmatpush.msra.mxu0 %v7610_v28  ;;  %3630 = vmatpush.msrb.mxu2 %v7613_v56  ;;  %8510 = vst [vmem:[#allocation108_spill] sm:$0xff] %v7623_v21  ;;  %v7629_v56 = vld [vmem:[#allocation22 + $0x38] sm:$0xff] }
 0x6e2   :  { %v7616_v32 = vpop.f32.mrf.mxu1  ;;  %8512 = vst [vmem:[#allocation39_spill] sm:$0xff] %v7629_v56 }
 0x6e3   :  { %8508 = vst [vmem:[#allocation54_spill] sm:$0xff] %v7616_v32  ;;  %3670 = vmatpush.msra.mxu0 %v7620_v47  ;;  %3631 = vmatpush.msrb.mxu2 %v7623_v21  ;;  %v7641_v21 = vld [vmem:[#allocation22 + $0x28] sm:$0xff]  ;;  %v7687_v47 = vld [vmem:[#allocation20] sm:$0xff] }
 0x6e4   :  { %3403 = vmatmul.f32.gmra.mxu2 %v1563_v50  ;;  %v7638_v50 = vld [vmem:[#allocation20 + $0x38] sm:$0xff]  ;;  %8516 = vst [vmem:[#allocation117_spill] sm:$0xff] %v7641_v21 }
 0x6e5   :  { %3671 = vmatpush.msra.mxu0 %v7626_v37  ;;  %3632 = vmatpush.msrb.mxu2 %v7629_v56  ;;  %8515 = vst [vmem:[#allocation115_spill] sm:$0xff] %v7638_v50  ;;  %v7650_v37 = vld [vmem:[#allocation20 + $0x30] sm:$0xff] }
 0x6e6   :  { %8518 = vst [vmem:[#allocation124_spill] sm:$0xff] %v7650_v37 }
 0x6e7   :  { %v2901_v42 = vpop.f32.mrf.mxu2  ;;  %3672 = vmatpush.msra.mxu0 %v7632_v25  ;;  %3633 = vmatpush.msrb.mxu2 %v7635_v34  ;;  %v1386_v25 = vadd.f32 %v1385_v24, %v1384_v27  ;;  %v7656_v34 = vld [vmem:[#allocation20 + $0x28] sm:$0xff]  ;;  %v7662_v24 = vld [vmem:[#allocation20 + $0x20] sm:$0xff]  ;;  %v7665_v27 = vld [vmem:[#allocation22 + $0x10] sm:$0xff]  ;;  %8530 = vst [vmem:[#allocation83_spill] sm:$0xff] %v7687_v47 }
 0x6e8   :  { %3184 = vmatmul.f32.gmra.mxu0 %v2901_v42  ;;  %v7653_v42 = vld [vmem:[#allocation22 + $0x20] sm:$0xff]  ;;  %8520 = vst [vmem:[#allocation70_spill] sm:$0xff] %v7656_v34 }
 0x6e9   :  { %3673 = vmatpush.msra.mxu0 %v7638_v50  ;;  %3634 = vmatpush.msrb.mxu2 %v7641_v21  ;;  %8519 = vst [vmem:[#allocation71_spill] sm:$0xff] %v7653_v42  ;;  %v7659_v21 = vld [vmem:[#allocation22 + $0x18] sm:$0xff]  ;;  %v1387_v52 = vrot.slane %v1386_v25, 1 }
 0x6ea   :  { %v7644_v56 = vpop.f32.mrf.mxu1  ;;  %8521 = vst [vmem:[#allocation72_spill] sm:$0xff] %v7659_v21 }
 0x6eb   :  { %8517 = vst [vmem:[#allocation119_spill] sm:$0xff] %v7644_v56  ;;  %3674 = vmatpush.msra.mxu0 %v7650_v37  ;;  %3635 = vmatpush.msrb.mxu2 %v7653_v42  ;;  %v7671_v42 = vld [vmem:[#allocation22 + $0x8] sm:$0xff]  ;;  %v1388_v37 = vadd.f32 %v1387_v52, %v1386_v25  ;;  %v1569_v25 = vmul.f32 %v7402_v61, %v7553_v17 }
 0x6ec   :  { %3406 = vmatmul.f32.gmra.mxu2 %v1565_v55  ;;  %8522 = vst [vmem:[#allocation73_spill] sm:$0xff] %v7662_v24  ;;  %v7668_v55 = vld [vmem:[#allocation20 + $0x18] sm:$0xff] }
 0x6ed   :  { %3675 = vmatpush.msra.mxu0 %v7656_v34  ;;  %3636 = vmatpush.msrb.mxu2 %v7659_v21  ;;  %8523 = vst [vmem:[#allocation74_spill] sm:$0xff] %v7665_v27  ;;  %v1567_v34 = vmul.f32 %v7394_v39, %v7553_v17  ;;  %4655 = vrcp.f32 %v1388_v37  ;;  %vm1490_vm11 = vweird.f32 %v1388_v37  ;;  %v1496_v3 = vand.u32 2147483648, %v1388_v37 }
 0x6ee   :  { %8524 = vst [vmem:[#allocation76_spill] sm:$0xff] %v7668_v55 }
 0x6ef   :  { %v2904_v50 = vpop.f32.mrf.mxu2  ;;  %3676 = vmatpush.msra.mxu0 %v7662_v24  ;;  %3637 = vmatpush.msrb.mxu2 %v7665_v27  ;;  %8525 = vst [vmem:[#allocation78_spill] sm:$0xff] %v7671_v42  ;;  %v7678_v24 = vld [vmem:[#allocation20 + $0x10] sm:$0xff]  ;;  %v7681_v27 = vld [vmem:[#allocation22] sm:$0xff] }
 0x6f0   :  { %3187 = vmatmul.f32.gmra.mxu0 %v2904_v50  ;;  %8527 = vst [vmem:[#allocation121_spill] sm:$0xff] %v7678_v24  ;;  %v4058_v50 = vpop.f32.mrf.mxu3 }
 0x6f1   :  { %3677 = vmatpush.msra.mxu0 %v7668_v55  ;;  %3638 = vmatpush.msrb.mxu2 %v7671_v42  ;;  %8528 = vst [vmem:[#allocation123_spill] sm:$0xff] %v7681_v27  ;;  %v7684_v55 = vld [vmem:[#allocation20 + $0x8] sm:$0xff] }
 0x6f2   :  { %v7674_v21 = vpop.f32.mrf.mxu1  ;;  %8529 = vst [vmem:[#allocation80_spill] sm:$0xff] %v7684_v55 }
 0x6f3   :  { %8526 = vst [vmem:[#allocation79_spill] sm:$0xff] %v7674_v21  ;;  %3678 = vmatpush.msra.mxu0 %v7678_v24  ;;  %3639 = vmatpush.msrb.mxu2 %v7681_v27  ;;  %v4656_v52 = vpop.eup %4655  ;;  %v8533_v27 = vld [vmem:[#allocation69_spill] sm:$0xff] }
 0x6f4   :  { %3409 = vmatmul.f32.gmra.mxu2 %v1567_v34  ;;  %v8532_v34 = vld [vmem:[#allocation112_spill] sm:$0xff]  ;;  %vm1491_vm13 = vweird.f32 %v4656_v52 }
 0x6f5   :  { %3679 = vmatpush.msra.mxu0 %v7684_v55  ;;  %v1106_v24 = vmax.f32 %v8533_v27, %v8532_v34  ;;  %v1486_v55 = vmul.f32 %v4656_v52, %v1388_v37  ;;  %vm1492_vm14 = vmor %vm1490_vm11, %vm1491_vm13 }
 0x6f7   :  { %v2907_v42 = vpop.f32.mrf.mxu2  ;;  %3680 = vmatpush.msra.mxu0 %v7687_v47  ;;  %v1107_v18 = vmax.f32 %v1106_v24, %v8534_v63  ;;  %v1487_v47 = vsub.f32 1.0, %v1486_v55  ;;  %v1573_v24 = vmul.f32 %v7415_v60, %v7553_v17  ;;  %v8537_v55 = vld [vmem:[#allocation122_spill] sm:$0xff] }
 0x6f8   :  { %3190 = vmatmul.f32.gmra.mxu0 %v2907_v42  ;;  %v4061_v28 = vpop.f32.mrf.mxu3  ;;  %v1571_v42 = vmul.f32 %v7407_v10, %v7553_v17  ;;  %v1494_v10 = vand.u32 2147483647, %v1388_v37  ;;  %v8539_v60 = vld [vmem:[#allocation126_spill] sm:$0xff] }
 0x6f9   :  { %v1108_v61 = vmax.f32 %v1107_v18, %v8535_v33  ;;  %v1488_v1 = vmul.f32 %v4656_v52, %v1487_v47 }
 0x6fa   :  { %v7690_v39 = vpop.f32.mrf.mxu1  ;;  %vm1495_vm15 = vcmp.eq.f32.partialorder %v1494_v10, 8.507059e+37  ;;  %v4082_v10 = vmul.f32 %v7454_v7, %v4058_v50  ;;  %v4079_v50 = vmul.f32 %v7475_v58, %v7571_v26 }
 0x6fb   :  { %8531 = vst [vmem:[#allocation84_spill] sm:$0xff] %v7690_v39  ;;  %v1109_v31 = vmax.f32 %v1108_v61, %v8536_v46  ;;  %v1489_v14 = vadd.f32 %v4656_v52, %v1488_v1  ;;  %v8538_v61 = vld [vmem:[#allocation62_spill] sm:$0xff] }
 0x6fc   :  { %3412 = vmatmul.f32.gmra.mxu2 %v1569_v25 }
 0x6fd   :  { %v1110_v18 = vmax.f32 %v1109_v31, %v8537_v55 }
 0x6ff   :  { %v2910_v53 = vpop.f32.mrf.mxu2  ;;  %v1111_v32 = vmax.f32 %v1110_v18, %v8538_v61 }
 0x700   :  { %3193 = vmatmul.f32.gmra.mxu0 %v2910_v53  ;;  %v4064_v5 = vpop.f32.mrf.mxu3 }
 0x701   :  { %v1112_v17 = vmax.f32 %v1111_v32, %v8539_v60  ;;  %v4084_v31 = vmul.f32 %v7441_v19, %v4064_v5  ;;  %v4081_v32 = vmul.f32 %v7461_v2, %v7648_v8  ;;  %v4080_v5 = vmul.f32 %v7467_v51, %v7608_v9 }
 0x702   :  { %v7697_v22 = vpop.f32.mrf.mxu1  ;;  %v4078_v8 = vmul.f32 %v7481_v40, %v7542_v6  ;;  %v4075_v6 = vmul.f32 %v7510_v49, %v7429_v15 }
 0x704   :  { %3415 = vmatmul.f32.gmra.mxu2 %v1571_v42  ;;  %v1497_v42 = vor.u32 1.1754944e-38, %v1496_v3 }
 0x707   :  { %v2913_v25 = vpop.f32.mrf.mxu2 }
 0x708   :  { %3196 = vmatmul.f32.gmra.mxu0 %v2913_v25  ;;  %v1493_v25 = vsel %vm1492_vm14, %v4656_v52, %v1489_v14  ;;  %v4067_v21 = vpop.f32.mrf.mxu3  ;;  %v1113_v14 = vrot.slane %v1112_v17, 4  ;;  %v4083_v52 = vmul.f32 %v7447_v38, %v4061_v28 }
 0x709   :  { %v7711_v39 = vsel %vm1495_vm15, %v1497_v42, %v1493_v25  ;;  %v4085_v1 = vmul.f32 %v7438_v12, %v4067_v21  ;;  %v4076_v25 = vmul.f32 %v7501_v45, %v7450_v30 }
 0x70a   :  { %v7703_v53 = vpop.f32.mrf.mxu1  ;;  %v1560_v37 = vmul.f32 %v7473_v48, %v7711_v39  ;;  %v1114_v18 = vmax.f32 %v1112_v17, %v1113_v14  ;;  %v1562_v48 = vmul.f32 %v7479_v0, %v7711_v39  ;;  %v4077_v0 = vmul.f32 %v7493_v23, %v7489_v4 }
 0x70b   :  { %v1564_v9 = vmul.f32 %v7497_v59, %v7711_v39  ;;  %v4074_v4 = vmul.f32 %v7524_v35, %v7423_v29  ;;  %v4073_v59 = vmul.f32 %v7533_v44, %v7420_v62  ;;  %v1566_v30 = vmul.f32 %v7514_v43, %v7711_v39 }
 0x70c   :  { %3418 = vmatmul.f32.gmra.mxu2 %v1573_v24  ;;  %v1115_v28 = vrot.slane %v1114_v18, 2  ;;  %v4071_v14 = vmul.f32 %v7549_v16, %v7392_v54  ;;  %v4070_v43 = vmul.f32 %v7557_v13, %v7373_v11 }
 0x70f   :  { %v2916_v47 = vpop.f32.mrf.mxu2 }
 0x710   :  { %3199 = vmatmul.f32.gmra.mxu0 %v2916_v47  ;;  %v1116_v47 = vmax.f32 %v1114_v18, %v1115_v28 }
 0x712   :  { %v7709_v56 = vpop.f32.mrf.mxu1  ;;  %v1117_v26 = vrot.slane %v1116_v47, 1 }
 0x717   :  { %v7718_v3 = vpop.f32.mrf.mxu2 }
 0x718   :  { %3599 = vmatmul.f32.vlgmr.msrb.gmra.mxu0 %v1560_v37  ;;  %v7746_v37 = vmax.f32 %v1116_v47, %v1117_v26 }
 0x719   :  { %4086 = vmatpush.msrb.mxu0 %v4085_v1 }
 0x71a   :  { %v3856_v24 = vpop.f32.mrf.mxu1  ;;  %v1168_v29 = vsub.f32 %v8533_v27, %v7746_v37  ;;  %v1170_v62 = vsub.f32 %v8532_v34, %v7746_v37  ;;  %v1172_v54 = vsub.f32 %v8534_v63, %v7746_v37  ;;  %v1568_v34 = vmul.f32 %v7537_v20, %v7711_v39 }
 0x71b   :  { %4087 = vmatpush.msrb.mxu0 %v4084_v31  ;;  %v4072_v31 = vmul.f32 %v7544_v41, %v7409_v36  ;;  %v1174_v63 = vsub.f32 %v8535_v33, %v7746_v37  ;;  %v1570_v33 = vmul.f32 %v7555_v57, %v7711_v39  ;;  %v1178_v57 = vsub.f32 %v8537_v55, %v7746_v37 }
 0x71c   :  { %v1281_v18 = vmul.f32 1.442695, %v1168_v29  ;;  %v1285_v27 = vmul.f32 1.442695, %v1170_v62  ;;  %v1289_v20 = vmul.f32 1.442695, %v1172_v54  ;;  %v1180_v55 = vsub.f32 %v8538_v61, %v7746_v37 }
 0x71d   :  { %4088 = vmatpush.msrb.mxu0 %v4083_v52  ;;  %v8552_v61 = vld [vmem:[#allocation45_spill] sm:$0xff] }
 0x71e   :  { %4657 = vpow2.f32 %v1281_v18  ;;  %v1182_v18 = vsub.f32 %v8539_v60, %v7746_v37 }
 0x71f   :  { %4089 = vmatpush.msrb.mxu0 %v4082_v10  ;;  %v7728_v21 = vpop.f32.mrf.mxu2  ;;  %4659 = vpow2.f32 %v1285_v27 }
 0x720   :  { %3602 = vmatmul.f32.gmra.mxu0 %v1562_v48  ;;  %v3880_v48 = vmul.f32 %v7454_v7, %v3856_v24  ;;  %v3878_v7 = vmul.f32 %v7467_v51, %v7703_v53  ;;  %v8542_v24 = vld [vmem:[#allocation38_spill] sm:$0xff]  ;;  %4661 = vpow2.f32 %v1289_v20 }
 0x721   :  { %4090 = vmatpush.msrb.mxu0 %v4081_v32 }
 0x722   :  { %v3859_v42 = vpop.f32.mrf.mxu1 }
 0x723   :  { %4091 = vmatpush.msrb.mxu0 %v4080_v5  ;;  %v3881_v32 = vmul.f32 %v7447_v38, %v3859_v42  ;;  %v3879_v38 = vmul.f32 %v7461_v2, %v7709_v56  ;;  %v1176_v42 = vsub.f32 %v8536_v46, %v7746_v37  ;;  %v1293_v2 = vmul.f32 1.442695, %v1174_v63  ;;  %v8556_v37 = vld [vmem:[#allocation106_spill] sm:$0xff] }
 0x724   :  { %v7789_v56 = vpop.eup %4657  ;;  %v3869_v20 = vmul.f32 %v7549_v16, %v8556_v37  ;;  %v8569_v37 = vld [vmem:[#allocation70_spill] sm:$0xff] }
 0x725   :  { %4092 = vmatpush.msrb.mxu0 %v4079_v50  ;;  %v3877_v50 = vmul.f32 %v7475_v58, %v7697_v22  ;;  %v7795_v47 = vpop.eup %4659  ;;  %v8544_v58 = vld [vmem:[#allocation40_spill] sm:$0xff]  ;;  %4663 = vpow2.f32 %v1293_v2 }
 0x727   :  { %4093 = vmatpush.msrb.mxu0 %v4078_v8  ;;  %v7740_v17 = vpop.f32.mrf.mxu2  ;;  %v8543_v8 = vld [vmem:[#allocation84_spill] sm:$0xff] }
 0x728   :  { %3605 = vmatmul.f32.gmra.mxu0 %v1564_v9  ;;  %v3876_v51 = vmul.f32 %v7481_v40, %v8543_v8  ;;  %v1297_v9 = vmul.f32 1.442695, %v1176_v42  ;;  %v1402_v40 = vadd.f32 %v7795_v47, %v7789_v56  ;;  %v8558_v42 = vld [vmem:[#allocation46_spill] sm:$0xff] }
 0x729   :  { %4094 = vmatpush.msrb.mxu0 %v4077_v0  ;;  %v8545_v0 = vld [vmem:[#allocation79_spill] sm:$0xff] }
 0x72a   :  { %v3862_v1 = vpop.f32.mrf.mxu1  ;;  %v3875_v46 = vmul.f32 %v7493_v23, %v8545_v0  ;;  %4665 = vpow2.f32 %v1297_v9  ;;  %v8559_v9 = vld [vmem:[#allocation127_spill] sm:$0xff] }
 0x72b   :  { %4095 = vmatpush.msrb.mxu0 %v4076_v25  ;;  %v3882_v36 = vmul.f32 %v7441_v19, %v3862_v1  ;;  %v8541_v19 = vld [vmem:[#allocation35_spill] sm:$0xff]  ;;  %v8547_v1 = vld [vmem:[#allocation44_spill] sm:$0xff] }
 0x72c   :  { %v8546_v25 = vld [vmem:[#allocation119_spill] sm:$0xff] }
 0x72d   :  { %4096 = vmatpush.msrb.mxu0 %v4075_v6  ;;  %v3874_v26 = vmul.f32 %v7501_v45, %v8546_v25  ;;  %v7806_v6 = vpop.eup %4661  ;;  %v8550_v45 = vld [vmem:[#allocation66_spill] sm:$0xff] }
 0x72e   :  { %v3872_v62 = vmul.f32 %v7524_v35, %v8550_v45  ;;  %v8553_v35 = vld [vmem:[#allocation107_spill] sm:$0xff] }
 0x72f   :  { %4097 = vmatpush.msrb.mxu0 %v4074_v4  ;;  %v7754_v15 = vpop.f32.mrf.mxu2  ;;  %v3870_v27 = vmul.f32 %v7544_v41, %v8553_v35  ;;  %v8566_v35 = vld [vmem:[#allocation111_spill] sm:$0xff] }
 0x730   :  { %3608 = vmatmul.f32.gmra.mxu0 %v1566_v30  ;;  %v1301_v30 = vmul.f32 1.442695, %v1178_v57 }
 0x731   :  { %4098 = vmatpush.msrb.mxu0 %v4073_v59  ;;  %v8548_v59 = vld [vmem:[#allocation54_spill] sm:$0xff] }
 0x732   :  { %v3865_v52 = vpop.f32.mrf.mxu1  ;;  %v3873_v23 = vmul.f32 %v7510_v49, %v8548_v59  ;;  %v8551_v49 = vld [vmem:[#allocation109_spill] sm:$0xff]  ;;  %4667 = vpow2.f32 %v1301_v30 }
 0x733   :  { %v3883_v10 = vmul.f32 %v7438_v12, %v3865_v52  ;;  %4099 = vmatpush.msrb.mxu0 %v4072_v31  ;;  %v8540_v12 = vld [vmem:[#allocation36_spill] sm:$0xff] }
 0x734   :  { %v1093_v5 = vmax.f32 %v8541_v19, %v8540_v12  ;;  %v8549_v31 = vld [vmem:[#allocation60_spill] sm:$0xff] }
 0x735   :  { %4100 = vmatpush.msrb.mxu0 %v4071_v14  ;;  %3884 = vmatpush.msra.mxu2 %v3883_v10  ;;  %v1572_v29 = vmul.f32 %v8549_v31, %v7711_v39  ;;  %v1403_v14 = vadd.f32 %v7806_v6, %v1402_v40  ;;  %v8562_v31 = vld [vmem:[#allocation95_spill] sm:$0xff] }
 0x736   :  { %v1094_v28 = vmax.f32 %v1093_v5, %v8542_v24 }
 0x737   :  { %4101 = vmatpush.msrb.mxu0 %v4070_v43  ;;  %v7772_v11 = vpop.f32.mrf.mxu2  ;;  %3885 = vmatpush.msra.mxu2 %v3882_v36  ;;  %v7820_v43 = vpop.eup %4663  ;;  %v3871_v36 = vmul.f32 %v7533_v44, %v8551_v49  ;;  %v1309_v44 = vmul.f32 1.442695, %v1182_v18  ;;  %v8564_v49 = vld [vmem:[#allocation55_spill] sm:$0xff] }
 0x738   :  { %3611 = vmatmul.f32.gmra.mxu0 %v1568_v34  ;;  %v1095_v22 = vmax.f32 %v1094_v28, %v8544_v58  ;;  %v1404_v54 = vadd.f32 %v7820_v43, %v1403_v14  ;;  %v7830_v34 = vpop.eup %4665  ;;  %v8557_v28 = vld [vmem:[#allocation48_spill] sm:$0xff]  ;;  %v8563_v14 = vld [vmem:[#allocation102_spill] sm:$0xff] }
 0x739   :  { %3886 = vmatpush.msra.mxu2 %v3881_v32  ;;  %v1305_v32 = vmul.f32 1.442695, %v1180_v55  ;;  %v7840_v41 = vpop.eup %4667 }
 0x73a   :  { %v1096_v4 = vmax.f32 %v1095_v22, %v8547_v1  ;;  %v1405_v60 = vadd.f32 %v7830_v34, %v1404_v54 }
 0x73b   :  { %3887 = vmatpush.msra.mxu2 %v3880_v48  ;;  %v8554_v48 = vld [vmem:[#allocation43_spill] sm:$0xff]  ;;  %4669 = vpow2.f32 %v1305_v32 }
 0x73c   :  { %v1097_v10 = vmax.f32 %v1096_v4, %v8552_v61  ;;  %4671 = vpow2.f32 %v1309_v44  ;;  %v8561_v4 = vld [vmem:[#allocation63_spill] sm:$0xff] }
 0x73d   :  { %3888 = vmatpush.msra.mxu2 %v3879_v38  ;;  %v8555_v38 = vld [vmem:[#allocation52_spill] sm:$0xff] }
 0x73e   :  { %v1098_v5 = vmax.f32 %v1097_v10, %v8554_v48  ;;  %v1574_v63 = vmul.f32 %v8555_v38, %v7711_v39  ;;  %v1406_v39 = vadd.f32 %v7840_v41, %v1405_v60  ;;  %v8565_v10 = vld [vmem:[#allocation110_spill] sm:$0xff] }
 0x73f   :  { %v7793_v53 = vpop.f32.mrf.mxu2  ;;  %3889 = vmatpush.msra.mxu2 %v3878_v7 }
 0x740   :  { %3614 = vmatmul.f32.gmra.mxu0 %v1570_v33  ;;  %v1099_v2 = vmax.f32 %v1098_v5, %v8558_v42  ;;  %v8567_v5 = vld [vmem:[#allocation115_spill] sm:$0xff] }
 0x741   :  { %3890 = vmatpush.msra.mxu2 %v3877_v50  ;;  %v3868_v50 = vmul.f32 %v7557_v13, %v8557_v28  ;;  %v7846_v33 = vpop.eup %4669  ;;  %v7855_v13 = vld [vmem:[%s8035_s17] ss:$0 sm:$0xff]  ;;  %s5178_s17 = smov [#allocation25]  }
 0x742   :  { %v1100_v16 = vrot.slane %v1099_v2, 4  ;;  %v1407_v22 = vadd.f32 %v7846_v33, %v1406_v39  ;;  %s4230_s11 = sshll.u32 %s5178_s17, 4  ;;  %s4231_s11 = int_to_ptr.vmem [resolvable:$true] %s4230_s11 }
 0x743   :  { %3891 = vmatpush.msra.mxu2 %v3876_v51 }
 0x744   :  { %v1101_v40 = vmax.f32 %v1099_v2, %v1100_v16  ;;  %v8570_v2 = vld [vmem:[#allocation73_spill] sm:$0xff]  ;;  %v8571_v16 = vld [vmem:[#allocation76_spill] sm:$0xff] }
 0x745   :  { %3892 = vmatpush.msra.mxu2 %v3875_v46  ;;  %v7850_v46 = vpop.eup %4671 }
 0x746   :  { %v1408_v25 = vadd.f32 %v7850_v46, %v1407_v22  ;;  %v1102_v59 = vrot.slane %v1101_v40, 2 }
 0x747   :  { %v7818_v52 = vpop.f32.mrf.mxu2  ;;  %3893 = vmatpush.msra.mxu2 %v3874_v26 }
 0x748   :  { %3617 = vmatmul.f32.gmra.mxu0 %v1572_v29  ;;  %v1409_v55 = vrot.slane %v1408_v25, 4  ;;  %v1103_v45 = vmax.f32 %v1101_v40, %v1102_v59  ;;  %v8573_v40 = vld [vmem:[#allocation80_spill] sm:$0xff] }
 0x749   :  { %3894 = vmatpush.msra.mxu2 %v3873_v23 }
 0x74a   :  { %v1104_v18 = vrot.slane %v1103_v45, 1 }
 0x74b   :  { %3895 = vmatpush.msra.mxu2 %v3872_v62  ;;  %v1410_v62 = vadd.f32 %v1409_v55, %v1408_v25 }
 0x74c   :  { %v7872_v44 = vmax.f32 %v1103_v45, %v1104_v18 }
 0x74d   :  { %3896 = vmatpush.msra.mxu2 %v3871_v36  ;;  %v1411_v32 = vrot.slane %v1410_v62, 2 }
 0x74e   :  { %v1169_v39 = vsub.f32 %v8540_v12, %v7872_v44  ;;  %v1173_v59 = vsub.f32 %v8544_v58, %v7872_v44  ;;  %v1177_v58 = vsub.f32 %v8552_v61, %v7872_v44 }
 0x74f   :  { %v7838_v7 = vpop.f32.mrf.mxu2  ;;  %3897 = vmatpush.msra.mxu2 %v3870_v27  ;;  %v1412_v38 = vadd.f32 %v1411_v32, %v1410_v62 }
 0x750   :  { %3620 = vmatmul.f32.gmra.mxu0 %v1574_v63  ;;  %v8568_v63 = vld [vmem:[#allocation124_spill] sm:$0xff] }
 0x751   :  { %3898 = vmatpush.msra.mxu2 %v3869_v20  ;;  %v1413_v28 = vrot.slane %v1412_v38, 1 }
 0x753   :  { %3899 = vmatpush.msra.mxu2 %v3868_v50  ;;  %v7884_v22 = vadd.f32 %v1413_v28, %v1412_v38  ;;  %v1299_v38 = vmul.f32 1.442695, %v1177_v58 }
 0x755   :  { %v3179_v8 = vpop.f32.mrf.mxu0  ;;  %vm1518_vm1 = vweird.f32 %v7884_v22 }
 0x756   :  { %v3180_v51 = vadd.f32 %v3179_v8, %v7718_v3  ;;  %v8560_v3 = vld [vmem:[#allocation93_spill] sm:$0xff] }
 0x757   :  { %v3398_v0 = vpop.f32.mrf.mxu2 }
 0x758   :  { %v3203_v57 = vadd.f32 %v7855_v13, %v3180_v51  ;;  %3681 = vmatmul.f32.vlgmr.msra.gmra.mxu0 %v3398_v0  ;;  %v8572_v0 = vld [vmem:[#allocation121_spill] sm:$0xff] }
 0x759   :  { %4168 = vmatpush.msra.mxu0 %v8559_v9 }
 0x75a   :  { %3212 = vst [vmem:[#allocation25 + $0x40] sm:$0xff] %v3203_v57 }
 0x75b   :  { %4169 = vmatpush.msra.mxu0 %v8560_v3 }
 0x75d   :  { %v3182_v26 = vpop.f32.mrf.mxu0  ;;  %4170 = vmatpush.msra.mxu0 %v8561_v4 }
 0x75e   :  { %v3183_v23 = vadd.f32 %v3182_v26, %v7728_v21  ;;  %v8574_v26 = vld [vmem:[#allocation83_spill] sm:$0xff] }
 0x75f   :  { %v3401_v30 = vpop.f32.mrf.mxu2  ;;  %4171 = vmatpush.msra.mxu0 %v8562_v31 }
 0x760   :  { %v3204_v29 = vadd.f32 %v7855_v13, %v3183_v23  ;;  %3684 = vmatmul.f32.gmra.mxu0 %v3401_v30  ;;  %v1175_v30 = vsub.f32 %v8547_v1, %v7872_v44 }
 0x761   :  { %4172 = vmatpush.msra.mxu0 %v8563_v14 }
 0x762   :  { %3213 = vst [vmem:[#allocation25 + $0x48] sm:$0xff] %v3204_v29 }
 0x763   :  { %4173 = vmatpush.msra.mxu0 %v8564_v49 }
 0x765   :  { %v3185_v36 = vpop.f32.mrf.mxu0  ;;  %4174 = vmatpush.msra.mxu0 %v8565_v10 }
 0x766   :  { %v3186_v21 = vadd.f32 %v3185_v36, %v7740_v17  ;;  %v1167_v17 = vsub.f32 %v8541_v19, %v7872_v44  ;;  %v1283_v19 = vmul.f32 1.442695, %v1169_v39 }
 0x767   :  { %v3404_v54 = vpop.f32.mrf.mxu2  ;;  %4175 = vmatpush.msra.mxu0 %v8566_v35 }
 0x768   :  { %v3205_v27 = vadd.f32 %v7855_v13, %v3186_v21  ;;  %3687 = vmatmul.f32.gmra.mxu0 %v3404_v54  ;;  %v1279_v51 = vmul.f32 1.442695, %v1167_v17  ;;  %v1295_v21 = vmul.f32 1.442695, %v1175_v30 }
 0x769   :  { %4176 = vmatpush.msra.mxu0 %v8567_v5 }
 0x76a   :  { %3214 = vst [vmem:[#allocation25 + $0x50] sm:$0xff] %v3205_v27  ;;  %4673 = vpow2.f32 %v1279_v51 }
 0x76b   :  { %4177 = vmatpush.msra.mxu0 %v8568_v63  ;;  %4675 = vrcp.f32 %v7884_v22 }
 0x76c   :  { %4677 = vpow2.f32 %v1283_v19 }
 0x76d   :  { %v3188_v60 = vpop.f32.mrf.mxu0  ;;  %4178 = vmatpush.msra.mxu0 %v8569_v37 }
 0x76e   :  { %v3189_v20 = vadd.f32 %v3188_v60, %v7754_v15  ;;  %v1171_v15 = vsub.f32 %v8542_v24, %v7872_v44 }
 0x76f   :  { %v3407_v50 = vpop.f32.mrf.mxu2  ;;  %4179 = vmatpush.msra.mxu0 %v8570_v2 }
 0x770   :  { %v3206_v8 = vadd.f32 %v7855_v13, %v3189_v20  ;;  %3690 = vmatmul.f32.gmra.mxu0 %v3407_v50  ;;  %v1287_v23 = vmul.f32 1.442695, %v1171_v15  ;;  %v7896_v24 = vpop.eup %4673  ;;  %v1181_v50 = vsub.f32 %v8558_v42, %v7872_v44 }
 0x771   :  { %4180 = vmatpush.msra.mxu0 %v8571_v16  ;;  %v4676_v29 = vpop.eup %4675 }
 0x772   :  { %3215 = vst [vmem:[#allocation25 + $0x58] sm:$0xff] %v3206_v8  ;;  %4679 = vpow2.f32 %v1287_v23  ;;  %v7900_v62 = vpop.eup %4677  ;;  %v1514_v32 = vmul.f32 %v4676_v29, %v7884_v22  ;;  %vm1519_vm2 = vweird.f32 %v4676_v29 }
 0x773   :  { %4181 = vmatpush.msra.mxu0 %v8572_v0  ;;  %v1389_v1 = vadd.f32 %v7900_v62, %v7896_v24  ;;  %vm1520_vm3 = vmor %vm1518_vm1, %vm1519_vm2 }
 0x774   :  { %v1515_v61 = vsub.f32 1.0, %v1514_v32 }
 0x775   :  { %v3191_v57 = vpop.f32.mrf.mxu0  ;;  %4182 = vmatpush.msra.mxu0 %v8573_v40 }
 0x776   :  { %v3192_v12 = vadd.f32 %v3191_v57, %v7772_v11  ;;  %v1291_v11 = vmul.f32 1.442695, %v1173_v59  ;;  %v1516_v51 = vmul.f32 %v4676_v29, %v1515_v61  ;;  %v1307_v57 = vmul.f32 1.442695, %v1181_v50  ;;  %v8580_v50 = vld [vmem:[#allocation98_spill] sm:$0xff] }
 0x777   :  { %v3410_v25 = vpop.f32.mrf.mxu2  ;;  %4183 = vmatpush.msra.mxu0 %v8574_v26 }
 0x778   :  { %v3207_v55 = vadd.f32 %v7855_v13, %v3192_v12  ;;  %3693 = vmatmul.f32.gmra.mxu0 %v3410_v25  ;;  %4681 = vpow2.f32 %v1291_v11  ;;  %v7909_v27 = vpop.eup %4679  ;;  %v1517_v42 = vadd.f32 %v4676_v29, %v1516_v51 }
 0x779   :  { %4683 = vpow2.f32 %v1295_v21  ;;  %v1390_v60 = vadd.f32 %v7909_v27, %v1389_v1  ;;  %v8576_v1 = vld [vmem:[#allocation53_spill] sm:$0xff] }
 0x77a   :  { %3216 = vst [vmem:[#allocation25 + $0x60] sm:$0xff] %v3207_v55  ;;  %4685 = vpow2.f32 %v1299_v38 }
 0x77d   :  { %v3194_v45 = vpop.f32.mrf.mxu0 }
 0x77e   :  { %v3195_v36 = vadd.f32 %v3194_v45, %v7793_v53  ;;  %v1179_v53 = vsub.f32 %v8554_v48, %v7872_v44  ;;  %v7914_v20 = vpop.eup %4681  ;;  %v1522_v44 = vand.u32 2147483647, %v7884_v22  ;;  %v1521_v45 = vsel %vm1520_vm3, %v4676_v29, %v1517_v42  ;;  %v8585_v42 = vld [vmem:[#allocation117_spill] sm:$0xff] }
 0x77f   :  { %v3413_v18 = vpop.f32.mrf.mxu2  ;;  %v1391_v48 = vadd.f32 %v7914_v20, %v1390_v60  ;;  %v7921_v19 = vpop.eup %4683  ;;  %v8578_v60 = vld [vmem:[#allocation65_spill] sm:$0xff] }
 0x780   :  { %v3208_v54 = vadd.f32 %v7855_v13, %v3195_v36  ;;  %3696 = vmatmul.f32.gmra.mxu0 %v3413_v18  ;;  %v1303_v8 = vmul.f32 1.442695, %v1179_v53  ;;  %v7927_v59 = vpop.eup %4685  ;;  %vm1523_vm4 = vcmp.eq.f32.partialorder %v1522_v44, 8.507059e+37  ;;  %v8577_v53 = vld [vmem:[#allocation128_spill] sm:$0xff] }
 0x781   :  { %v1392_v12 = vadd.f32 %v7921_v19, %v1391_v48 }
 0x782   :  { %3217 = vst [vmem:[#allocation25 + $0x68] sm:$0xff] %v3208_v54  ;;  %4687 = vpow2.f32 %v1303_v8  ;;  %v8575_v54 = vld [vmem:[#allocation58_spill] sm:$0xff] }
 0x783   :  { %4689 = vpow2.f32 %v1307_v57  ;;  %v1393_v36 = vadd.f32 %v7927_v59, %v1392_v12  ;;  %v8584_v57 = vld [vmem:[#allocation113_spill] sm:$0xff] }
 0x785   :  { %v3197_v17 = vpop.f32.mrf.mxu0 }
 0x786   :  { %v3198_v28 = vadd.f32 %v3197_v17, %v7818_v52  ;;  %v1524_v52 = vand.u32 2147483648, %v7884_v22 }
 0x787   :  { %v3416_v39 = vpop.f32.mrf.mxu2 }
 0x788   :  { %v3209_v15 = vadd.f32 %v7855_v13, %v3198_v28  ;;  %3699 = vmatmul.f32.gmra.mxu0 %v3416_v39  ;;  %v1525_v55 = vor.u32 1.1754944e-38, %v1524_v52  ;;  %v7932_v58 = vpop.eup %4687  ;;  %v8579_v28 = vld [vmem:[#allocation61_spill] sm:$0xff]  ;;  %v8583_v52 = vld [vmem:[#allocation39_spill] sm:$0xff] }
 0x789   :  { %v1394_v18 = vadd.f32 %v7932_v58, %v1393_v36  ;;  %v7937_v32 = vpop.eup %4689  ;;  %v8581_v39 = vld [vmem:[#allocation105_spill] sm:$0xff]  ;;  %v8590_v36 = vld [vmem:[#allocation123_spill] sm:$0xff] }
 0x78a   :  { %3218 = vst [vmem:[#allocation25 + $0x70] sm:$0xff] %v3209_v15  ;;  %v7934_v22 = vsel %vm1523_vm4, %v1525_v55, %v1521_v45  ;;  %v8582_v15 = vld [vmem:[#allocation108_spill] sm:$0xff] }
 0x78b   :  { %v1395_v29 = vadd.f32 %v7937_v32, %v1394_v18  ;;  %v1578_v17 = vmul.f32 %v7795_v47, %v7934_v22  ;;  %v1580_v48 = vmul.f32 %v7806_v6, %v7934_v22  ;;  %v8587_v55 = vld [vmem:[#allocation72_spill] sm:$0xff]  ;;  %v1584_v18 = vmul.f32 %v7830_v34, %v7934_v22 }
 0x78d   :  { %v3200_v25 = vpop.f32.mrf.mxu0  ;;  %v1396_v38 = vrot.slane %v1395_v29, 4 }
 0x78e   :  { %v3201_v23 = vadd.f32 %v3200_v25, %v7838_v7  ;;  %v1576_v7 = vmul.f32 %v7789_v56, %v7934_v22  ;;  %v8586_v25 = vld [vmem:[#allocation71_spill] sm:$0xff] }
 0x78f   :  { %v3419_v30 = vpop.f32.mrf.mxu2  ;;  %v1397_v56 = vadd.f32 %v1396_v38, %v1395_v29  ;;  %v1588_v38 = vmul.f32 %v7846_v33, %v7934_v22 }
 0x790   :  { %v3210_v11 = vadd.f32 %v7855_v13, %v3201_v23  ;;  %3702 = vmatmul.f32.gmra.mxu0 %v3419_v30  ;;  %v1582_v23 = vmul.f32 %v7820_v43, %v7934_v22  ;;  %v8588_v30 = vld [vmem:[#allocation74_spill] sm:$0xff] }
 0x791   :  { %v1398_v8 = vrot.slane %v1397_v56, 2 }
 0x792   :  { %3219 = vst [vmem:[#allocation25 + $0x78] sm:$0xff] %v3210_v11  ;;  %v8589_v11 = vld [vmem:[#allocation78_spill] sm:$0xff] }
 0x793   :  { %v1399_v47 = vadd.f32 %v1398_v8, %v1397_v56 }
 0x795   :  { %v3600_v21 = vpop.f32.mrf.mxu0  ;;  %v1400_v44 = vrot.slane %v1399_v47, 1 }
 0x796   :  { %3640 = vmatmul.f32.vlgmr.msrb.gmra.mxu2 %v3600_v21 }
 0x797   :  { %4127 = vmatpush.msrb.mxu2 %v8575_v54  ;;  %v1401_v6 = vadd.f32 %v1400_v44, %v1399_v47  ;;  %v1586_v54 = vmul.f32 %v7840_v41, %v7934_v22  ;;  %v1590_v41 = vmul.f32 %v7850_v46, %v7934_v22 }
 0x798   :  { %4102 = vmatmul.f32.vlgmr.msrb.gmra.mxu0 %v1576_v7 }
 0x799   :  { %4128 = vmatpush.msrb.mxu2 %v8576_v1  ;;  %4691 = vrcp.f32 %v1401_v6  ;;  %vm1504_vm5 = vweird.f32 %v1401_v6  ;;  %v1510_v34 = vand.u32 2147483648, %v1401_v6 }
 0x79b   :  { %4129 = vmatpush.msrb.mxu2 %v8577_v53 }
 0x79d   :  { %v3603_v61 = vpop.f32.mrf.mxu0  ;;  %4130 = vmatpush.msrb.mxu2 %v8578_v60  ;;  %v1508_v60 = vand.u32 2147483647, %v1401_v6 }
 0x79e   :  { %3643 = vmatmul.f32.gmra.mxu2 %v3603_v61 }
 0x79f   :  { %4131 = vmatpush.msrb.mxu2 %v8579_v28  ;;  %v4692_v21 = vpop.eup %4691  ;;  %vm1509_vm8 = vcmp.eq.f32.partialorder %v1508_v60, 8.507059e+37 }
 0x7a0   :  { %4105 = vmatmul.f32.gmra.mxu0 %v1578_v17  ;;  %v1500_v43 = vmul.f32 %v4692_v21, %v1401_v6  ;;  %vm1505_vm6 = vweird.f32 %v4692_v21  ;;  %v1511_v17 = vor.u32 1.1754944e-38, %v1510_v34 }
 0x7a1   :  { %4132 = vmatpush.msrb.mxu2 %v8580_v50  ;;  %vm1506_vm7 = vmor %vm1504_vm5, %vm1505_vm6 }
 0x7a2   :  { %v1501_v29 = vsub.f32 1.0, %v1500_v43 }
 0x7a3   :  { %4133 = vmatpush.msrb.mxu2 %v8581_v39 }
 0x7a4   :  { %v1502_v53 = vmul.f32 %v4692_v21, %v1501_v29 }
 0x7a5   :  { %v3606_v51 = vpop.f32.mrf.mxu0  ;;  %4134 = vmatpush.msrb.mxu2 %v8582_v15 }
 0x7a6   :  { %3646 = vmatmul.f32.gmra.mxu2 %v3606_v51  ;;  %v1503_v61 = vadd.f32 %v4692_v21, %v1502_v53 }
 0x7a7   :  { %4135 = vmatpush.msrb.mxu2 %v8583_v52 }
 0x7a8   :  { %4108 = vmatmul.f32.gmra.mxu0 %v1580_v48  ;;  %v1507_v56 = vsel %vm1506_vm7, %v4692_v21, %v1503_v61 }
 0x7a9   :  { %4136 = vmatpush.msrb.mxu2 %v8584_v57  ;;  %v1512_v50 = vsel %vm1509_vm8, %v1511_v17, %v1507_v56 }
 0x7aa   :  { %v1575_v39 = vmul.f32 %v7896_v24, %v1512_v50  ;;  %v1577_v8 = vmul.f32 %v7900_v62, %v1512_v50  ;;  %v1579_v46 = vmul.f32 %v7909_v27, %v1512_v50 }
 0x7ab   :  { %4137 = vmatpush.msrb.mxu2 %v8585_v42 }
 0x7ad   :  { %v3609_v12 = vpop.f32.mrf.mxu0  ;;  %4138 = vmatpush.msrb.mxu2 %v8586_v25 }
 0x7ae   :  { %3649 = vmatmul.f32.gmra.mxu2 %v3609_v12 }
 0x7af   :  { %4139 = vmatpush.msrb.mxu2 %v8587_v55 }
 0x7b0   :  { %4111 = vmatmul.f32.gmra.mxu0 %v1582_v23 }
 0x7b1   :  { %4140 = vmatpush.msrb.mxu2 %v8588_v30 }
 0x7b3   :  { %4141 = vmatpush.msrb.mxu2 %v8589_v11 }
 0x7b5   :  { %v3612_v45 = vpop.f32.mrf.mxu0  ;;  %4142 = vmatpush.msrb.mxu2 %v8590_v36 }
 0x7b6   :  { %3652 = vmatmul.f32.gmra.mxu2 %v3612_v45 }
 0x7b8   :  { %4114 = vmatmul.f32.gmra.mxu0 %v1584_v18 }
 0x7bd   :  { %v3615_v7 = vpop.f32.mrf.mxu0 }
 0x7be   :  { %3655 = vmatmul.f32.gmra.mxu2 %v3615_v7 }
 0x7c0   :  { %4117 = vmatmul.f32.gmra.mxu0 %v1586_v54 }
 0x7c5   :  { %v3618_v1 = vpop.f32.mrf.mxu0 }
 0x7c6   :  { %3658 = vmatmul.f32.gmra.mxu2 %v3618_v1 }
 0x7c8   :  { %4120 = vmatmul.f32.gmra.mxu0 %v1588_v38 }
 0x7cd   :  { %v3621_v28 = vpop.f32.mrf.mxu0 }
 0x7ce   :  { %3661 = vmatmul.f32.gmra.mxu2 %v3621_v28 }
 0x7d0   :  { %4123 = vmatmul.f32.gmra.mxu0 %v1590_v41 }
 0x7d5   :  { %v3682_v33 = vpop.f32.mrf.mxu0 }
 0x7d6   :  { %3900 = vmatmul.f32.vlgmr.msra.gmra.mxu2 %v1575_v39 }
 0x7d7   :  { %4412 = vmatpush.msra.mxu2 %v8559_v9  ;;  %v1581_v9 = vmul.f32 %v7914_v20, %v1512_v50 }
 0x7d9   :  { %4413 = vmatpush.msra.mxu2 %v8560_v3 }
 0x7db   :  { %4414 = vmatpush.msra.mxu2 %v8561_v4  ;;  %v1583_v4 = vmul.f32 %v7921_v19, %v1512_v50 }
 0x7dd   :  { %v3685_v51 = vpop.f32.mrf.mxu0  ;;  %4415 = vmatpush.msra.mxu2 %v8562_v31 }
 0x7de   :  { %3903 = vmatmul.f32.gmra.mxu2 %v1577_v8 }
 0x7df   :  { %4416 = vmatpush.msra.mxu2 %v8563_v14  ;;  %v1585_v14 = vmul.f32 %v7927_v59, %v1512_v50 }
 0x7e1   :  { %4417 = vmatpush.msra.mxu2 %v8564_v49 }
 0x7e3   :  { %4418 = vmatpush.msra.mxu2 %v8565_v10  ;;  %v1587_v10 = vmul.f32 %v7932_v58, %v1512_v50 }
 0x7e5   :  { %v3688_v24 = vpop.f32.mrf.mxu0  ;;  %4419 = vmatpush.msra.mxu2 %v8566_v35 }
 0x7e6   :  { %3906 = vmatmul.f32.gmra.mxu2 %v1579_v46 }
 0x7e7   :  { %4420 = vmatpush.msra.mxu2 %v8567_v5  ;;  %v1589_v5 = vmul.f32 %v7937_v32, %v1512_v50 }
 0x7e9   :  { %4421 = vmatpush.msra.mxu2 %v8568_v63 }
 0x7eb   :  { %4422 = vmatpush.msra.mxu2 %v8569_v37 }
 0x7ed   :  { %v3691_v3 = vpop.f32.mrf.mxu0  ;;  %4423 = vmatpush.msra.mxu2 %v8570_v2 }
 0x7ee   :  { %3909 = vmatmul.f32.gmra.mxu2 %v1581_v9 }
 0x7ef   :  { %4424 = vmatpush.msra.mxu2 %v8571_v16 }
 0x7f1   :  { %4425 = vmatpush.msra.mxu2 %v8572_v0 }
 0x7f3   :  { %4426 = vmatpush.msra.mxu2 %v8573_v40 }
 0x7f5   :  { %v3694_v31 = vpop.f32.mrf.mxu0  ;;  %4427 = vmatpush.msra.mxu2 %v8574_v26 }
 0x7f6   :  { %3912 = vmatmul.f32.gmra.mxu2 %v1583_v4 }
 0x7fd   :  { %v3697_v49 = vpop.f32.mrf.mxu0 }
 0x7fe   :  { %3915 = vmatmul.f32.gmra.mxu2 %v1585_v14 }
 0x805   :  { %v3700_v35 = vpop.f32.mrf.mxu0 }
 0x806   :  { %3918 = vmatmul.f32.gmra.mxu2 %v1587_v10 }
 0x80d   :  { %v3703_v63 = vpop.f32.mrf.mxu0 }
 0x80e   :  { %3921 = vmatmul.f32.gmra.mxu2 %v1589_v5 }
 0x815   :  { %v4103_v37 = vpop.f32.mrf.mxu0 }
 0x816   :  { %4143 = vmatmul.f32.vlgmr.msrb.gmra.mxu2 %v4103_v37 }
 0x819   :  { %v3641_v2 = vpop.f32.mrf.mxu2 }
 0x81a   :  { %v3683_v16 = vadd.f32 %v3682_v33, %v3641_v2 }
 0x81c   :  { %v3706_v0 = vadd.f32 %v7855_v13, %v3683_v16 }
 0x81d   :  { %v4106_v40 = vpop.f32.mrf.mxu0 }
 0x81e   :  { %3715 = vst [vmem:[#allocation25 + $0x80] sm:$0xff] %v3706_v0  ;;  %4146 = vmatmul.f32.gmra.mxu2 %v4106_v40 }
 0x821   :  { %v3644_v26 = vpop.f32.mrf.mxu2 }
 0x822   :  { %v3686_v62 = vadd.f32 %v3685_v51, %v3644_v26 }
 0x824   :  { %v3707_v27 = vadd.f32 %v7855_v13, %v3686_v62 }
 0x825   :  { %v4109_v20 = vpop.f32.mrf.mxu0 }
 0x826   :  { %3716 = vst [vmem:[#allocation25 + $0x88] sm:$0xff] %v3707_v27  ;;  %4149 = vmatmul.f32.gmra.mxu2 %v4109_v20 }
 0x829   :  { %v3647_v19 = vpop.f32.mrf.mxu2 }
 0x82a   :  { %v3689_v59 = vadd.f32 %v3688_v24, %v3647_v19 }
 0x82c   :  { %v3708_v58 = vadd.f32 %v7855_v13, %v3689_v59 }
 0x82d   :  { %v4112_v22 = vpop.f32.mrf.mxu0 }
 0x82e   :  { %3717 = vst [vmem:[#allocation25 + $0x90] sm:$0xff] %v3708_v58  ;;  %4152 = vmatmul.f32.gmra.mxu2 %v4112_v22 }
 0x831   :  { %v3650_v32 = vpop.f32.mrf.mxu2 }
 0x832   :  { %v3692_v15 = vadd.f32 %v3691_v3, %v3650_v32 }
 0x834   :  { %v3709_v48 = vadd.f32 %v7855_v13, %v3692_v15 }
 0x835   :  { %v4115_v52 = vpop.f32.mrf.mxu0 }
 0x836   :  { %3718 = vst [vmem:[#allocation25 + $0x98] sm:$0xff] %v3709_v48  ;;  %4155 = vmatmul.f32.gmra.mxu2 %v4115_v52 }
 0x839   :  { %v3653_v47 = vpop.f32.mrf.mxu2 }
 0x83a   :  { %v3695_v57 = vadd.f32 %v3694_v31, %v3653_v47 }
 0x83c   :  { %v3710_v42 = vadd.f32 %v7855_v13, %v3695_v57 }
 0x83d   :  { %v4118_v44 = vpop.f32.mrf.mxu0 }
 0x83e   :  { %3719 = vst [vmem:[#allocation25 + $0xa0] sm:$0xff] %v3710_v42  ;;  %4158 = vmatmul.f32.gmra.mxu2 %v4118_v44 }
 0x841   :  { %v3656_v12 = vpop.f32.mrf.mxu2 }
 0x842   :  { %v3698_v25 = vadd.f32 %v3697_v49, %v3656_v12 }
 0x844   :  { %v3711_v23 = vadd.f32 %v7855_v13, %v3698_v25 }
 0x845   :  { %v4121_v55 = vpop.f32.mrf.mxu0 }
 0x846   :  { %3720 = vst [vmem:[#allocation25 + $0xa8] sm:$0xff] %v3711_v23  ;;  %4161 = vmatmul.f32.gmra.mxu2 %v4121_v55 }
 0x849   :  { %v3659_v6 = vpop.f32.mrf.mxu2 }
 0x84a   :  { %v3701_v30 = vadd.f32 %v3700_v35, %v3659_v6 }
 0x84c   :  { %v3712_v11 = vadd.f32 %v7855_v13, %v3701_v30 }
 0x84d   :  { %v4124_v45 = vpop.f32.mrf.mxu0 }
 0x84e   :  { %3721 = vst [vmem:[#allocation25 + $0xb0] sm:$0xff] %v3712_v11  ;;  %4164 = vmatmul.f32.gmra.mxu2 %v4124_v45 }
 0x851   :  { %v3662_v36 = vpop.f32.mrf.mxu2 }
 0x852   :  { %v3704_v18 = vadd.f32 %v3703_v63, %v3662_v36 }
 0x854   :  { %v3713_v21 = vadd.f32 %v7855_v13, %v3704_v18 }
 0x856   :  { %3722 = vst [vmem:[#allocation25 + $0xb8] sm:$0xff] %v3713_v21 }
 0x859   :  { %v3901_v7 = vpop.f32.mrf.mxu2 }
 0x85a   :  { %4184 = vmatmul.f32.vlgmr.msra.gmra.mxu0 %v3901_v7 }
 0x861   :  { %v3904_v43 = vpop.f32.mrf.mxu2 }
 0x862   :  { %4187 = vmatmul.f32.gmra.mxu0 %v3904_v43 }
 0x869   :  { %v3907_v54 = vpop.f32.mrf.mxu2 }
 0x86a   :  { %4190 = vmatmul.f32.gmra.mxu0 %v3907_v54 }
 0x871   :  { %v3910_v29 = vpop.f32.mrf.mxu2 }
 0x872   :  { %4193 = vmatmul.f32.gmra.mxu0 %v3910_v29 }
 0x879   :  { %v3913_v1 = vpop.f32.mrf.mxu2 }
 0x87a   :  { %4196 = vmatmul.f32.gmra.mxu0 %v3913_v1 }
 0x881   :  { %v3916_v53 = vpop.f32.mrf.mxu2 }
 0x882   :  { %4199 = vmatmul.f32.gmra.mxu0 %v3916_v53 }
 0x889   :  { %v3919_v38 = vpop.f32.mrf.mxu2 }
 0x88a   :  { %4202 = vmatmul.f32.vlgmr.msra.gmra.mxu2 %v3919_v38 }
 0x891   :  { %v3922_v34 = vpop.f32.mrf.mxu2 }
 0x892   :  { %4205 = vmatmul.f32.gmra.mxu2 %v3922_v34 }
 0x899   :  { %v4144_v61 = vpop.f32.mrf.mxu2 }
 0x8a1   :  { %v4147_v60 = vpop.f32.mrf.mxu2 }
 0x8a9   :  { %v4150_v17 = vpop.f32.mrf.mxu2 }
 0x8b1   :  { %v4153_v50 = vpop.f32.mrf.mxu2 }
 0x8b9   :  { %v4156_v51 = vpop.f32.mrf.mxu2 }
 0x8c1   :  { %v4159_v31 = vpop.f32.mrf.mxu2 }
 0x8c9   :  { %v4162_v5 = vpop.f32.mrf.mxu2 }
 0x8d1   :  { %v4165_v16 = vpop.f32.mrf.mxu2 }
 0x8d7   :  { %v4185_v28 = vpop.f32.mrf.mxu0 }
 0x8d8   :  { %v4186_v41 = vadd.f32 %v4185_v28, %v4144_v61 }
 0x8da   :  { %v4209_v56 = vadd.f32 %v7855_v13, %v4186_v41 }
 0x8dc   :  { %4218 = vst [vmem:[#allocation25 + $0xc0] sm:$0xff] %v4209_v56 }
 0x8df   :  { %v4188_v39 = vpop.f32.mrf.mxu0 }
 0x8e0   :  { %v4189_v33 = vadd.f32 %v4188_v39, %v4147_v60 }
 0x8e2   :  { %v4210_v8 = vadd.f32 %v7855_v13, %v4189_v33 }
 0x8e4   :  { %4219 = vst [vmem:[#allocation25 + $0xc8] sm:$0xff] %v4210_v8 }
 0x8e7   :  { %v4191_v46 = vpop.f32.mrf.mxu0 }
 0x8e8   :  { %v4192_v24 = vadd.f32 %v4191_v46, %v4150_v17 }
 0x8ea   :  { %v4211_v9 = vadd.f32 %v7855_v13, %v4192_v24 }
 0x8ec   :  { %4220 = vst [vmem:[#allocation25 + $0xd0] sm:$0xff] %v4211_v9 }
 0x8ef   :  { %v4194_v3 = vpop.f32.mrf.mxu0 }
 0x8f0   :  { %v4195_v4 = vadd.f32 %v4194_v3, %v4153_v50 }
 0x8f2   :  { %v4212_v14 = vadd.f32 %v7855_v13, %v4195_v4 }
 0x8f4   :  { %4221 = vst [vmem:[#allocation25 + $0xd8] sm:$0xff] %v4212_v14 }
 0x8f7   :  { %v4197_v49 = vpop.f32.mrf.mxu0 }
 0x8f8   :  { %v4198_v10 = vadd.f32 %v4197_v49, %v4156_v51 }
 0x8fa   :  { %v4213_v35 = vadd.f32 %v7855_v13, %v4198_v10 }
 0x8fc   :  { %4222 = vst [vmem:[#allocation25 + $0xe0] sm:$0xff] %v4213_v35 }
 0x8ff   :  { %v4200_v63 = vpop.f32.mrf.mxu0 }
 0x900   :  { %v4201_v37 = vadd.f32 %v4200_v63, %v4159_v31 }
 0x902   :  { %v4214_v2 = vadd.f32 %v7855_v13, %v4201_v37 }
 0x904   :  { %4223 = vst [vmem:[#allocation25 + $0xe8] sm:$0xff] %v4214_v2 }
 0x90d   :  { %v4203_v0 = vpop.f32.mrf.mxu2 }
 0x90e   :  { %v4204_v40 = vadd.f32 %v4203_v0, %v4162_v5 }
 0x910   :  { %v4215_v26 = vadd.f32 %v7855_v13, %v4204_v40 }
 0x912   :  { %4224 = vst [vmem:[#allocation25 + $0xf0] sm:$0xff] %v4215_v26 }
 0x915   :  { %v4206_v62 = vpop.f32.mrf.mxu2 }
 0x916   :  { %v4207_v27 = vadd.f32 %v4206_v62, %v4165_v16 }
 0x918   :  { %v4216_v20 = vadd.f32 %v7855_v13, %v4207_v27 }
 0x91a   :  { %4225 = vst [vmem:[#allocation25 + $0xf8] sm:$0xff] %v4216_v20 }
 0x91b   :  { %4238 = dma.vmem_to_hbm [thread:$0]  %s4231_s11, 4096, %s4233_s23, [#allocation4], %s5161_s3, %s5161_s3, %s5162_s26  }
 0x91c   :  { %5158 = dma.done.wait [#allocation4], 4096  }
 0x91d   :  { %5159 = vsyncadd [#allocation4], 4294963200 }
 0x91e   :  { %4243 = vsyncpa [#allocation3], 1 }
 0x91f   :  { %4244 = vsyncpa [#allocation6], 1 }
 0x920   :  { %4245 = vsyncpa [#allocation9], 1 }
 0x921   :  { %4246 = vsyncpa [#allocation12], 1 }
 0x922   :  { %4247 = vsyncpa [#allocation15], 1 }
 0x923   :  { %4248 = vsyncpa [#allocation18], 1 }
 0x924   :  { %4249 = vsyncpa [#allocation21], 1 }
 0x925   :  { %4250 = vsyncpa [#allocation24], 1 }
 0x926   :  { %4251 = vsyncpa [#allocation4], 1 }

</bundles_post_ra>
